<compile_context>
chip_gen: v6e
topology: v6e:2x2x1
jax: 0.10.0
libtpu: 0.0.40
codegen_flags: <defaults>
</compile_context>

<pallas_src>
import functools

import jax
import jax.numpy as jnp
from jax.experimental import pallas as pl
from jax.experimental.pallas import tpu as pltpu

# Matmul-weight dtype.  Flip to jnp.bfloat16 on v6e/v7x for ~2x MXU throughput
# and half the weight VMEM (accumulation stays f32); kept f32 here so results
# match the unpadded f32 math exactly.
MXU_DTYPE = jnp.float32


# ------------------------------ fused kernel -------------------------------

def _net_kernel(n_img, x_ref, w1_ref, b1_ref, w2_ref, b2t_ref,
                wf1_ref, bf1_ref, wf2_ref, bf2_ref, out_ref):
    """One grid step = n_img images; all intermediates stay in VMEM/vregs.

    x_ref  : (1, n_img*192, 128) conv1 im2col, rows = n*192 + i*16 + j
             (i,j = pooled output position, j < 12 real), lanes = quad*32 + tap
             (tap = kh*5+kw, < 25 real).
    w1_ref : (128, 512)  block-diagonal conv1 weight (one 32x128 block / quad)
    w2_ref : (3200, 128) conv2, row = (kh*5+kw)*128 + cin, col = cout
    wf1_ref: (2048, 128) fc1,   row = (h*4+w)*128 + c (NCHW flatten folded in)
    wf2_ref: (128, 128)  fc2
    out_ref: (1, n_img, 128) log-probs in lanes 0..9, zeros elsewhere.
    """
    f32 = jnp.float32
    N = n_img

    # ---- conv1 on the MXU --------------------------------------------------
    xm = x_ref[0].astype(w1_ref.dtype)                               # (N*192, 128)
    c1 = jnp.dot(xm, w1_ref[...], preferred_element_type=f32)        # (N*192, 512)

    # 2x2 maxpool = max over the 4 quad column blocks, then bias + relu
    # (relu(maxpool(x) + b) == relu(maxpool(x + b)) for a per-channel bias).
    qmax = jnp.maximum(jnp.maximum(c1[:, 0:128], c1[:, 128:256]),
                       jnp.maximum(c1[:, 256:384], c1[:, 384:512]))
    pool1 = jnp.maximum(qmax + b1_ref[...], 0.0)                     # (N*192, 128)

    # ---- conv2 as ONE big MXU matmul (M = 64 * n_img) -----------------------
    # TODO(synk): Dropout2d on conv2's output is eval-mode identity here.
    # TODO(synk): if MXU-bound at large batch, repack cin 128->16 lanes to cut
    # the padded K (3200 -> ~512); irrelevant at these sizes.
    # TODO(synk): the kw sub-slices below are still misaligned sublane reads;
    # restructure (width in lanes + pltpu.roll) only if a profile shows it.
    rows2 = []
    for n in range(N):
        p1 = pool1[n * 192:(n + 1) * 192, :]                         # aligned (192, 128)
        for oh in range(8):
            pieces = []
            for kh in range(5):
                blk = p1[(oh + kh) * 16:(oh + kh) * 16 + 16, :]      # aligned (16, 128)
                for kw in range(5):
                    pieces.append(blk[kw:kw + 8, :])                 # (8, 128), rows = ow
            rows2.append(jnp.concatenate(pieces, axis=1))            # (8, 3200)
    lhs2 = jnp.concatenate(rows2, axis=0).astype(w2_ref.dtype)       # (N*64, 3200)
    c2 = jnp.dot(lhs2, w2_ref[...], preferred_element_type=f32)      # (N*64, 128)

    # ---- 2x2 maxpool + bias + relu, flattened to fc1's (h*4+w, c) lane order
    feat_rows = []
    for n in range(N):
        ci = c2[n * 64:(n + 1) * 64, :]                              # (64, 128), rows = oh*8+ow
        blocks = []
        for i in range(4):
            h2 = jnp.maximum(ci[16 * i:16 * i + 8, :],
                             ci[16 * i + 8:16 * i + 16, :])          # (8, 128), rows = ow
            for j in range(4):
                blocks.append(jnp.maximum(h2[2 * j:2 * j + 1, :],
                                          h2[2 * j + 1:2 * j + 2, :]))
        feat_rows.append(jnp.concatenate(blocks, axis=1))            # (1, 2048)
    feats = jnp.maximum(jnp.concatenate(feat_rows, axis=0) + b2t_ref[...], 0.0)

    # ---- fc1 + relu (F.dropout after fc1 is eval-mode identity) -------------
    z = jnp.dot(feats.astype(wf1_ref.dtype), wf1_ref[...],
                preferred_element_type=f32) + bf1_ref[...]
    z = jnp.maximum(z, 0.0)                                          # (N, 128), cols>=50 are 0

    # ---- fc2 + masked log_softmax over the 10 real classes ------------------
    logits = jnp.dot(z.astype(wf2_ref.dtype), wf2_ref[...],
                     preferred_element_type=f32) + bf2_ref[...]
    col = jax.lax.broadcasted_iota(jnp.int32, (N, 128), 1)
    valid = col < 10
    masked = jnp.where(valid, logits, jnp.float32(-1e30))
    m = jnp.max(masked, axis=-1, keepdims=True)
    e = jnp.where(valid, jnp.exp(masked - m), 0.0)
    lse = jnp.log(jnp.sum(e, axis=-1, keepdims=True))
    out_ref[0] = jnp.where(valid, masked - m - lse, 0.0)             # zeros in pad lanes


# --------------------------- parameter preparation --------------------------

def prepare_params(params):
    """One-time weight repack (outside the jitted forward): matmul-friendly
    layouts, block-diagonal per-pooling-quad conv1 weight, fold PyTorch's
    x.view(-1, 320) channel-major flatten into fc1, zero-pad to 128 lanes."""
    f32 = jnp.float32
    mm = MXU_DTYPE

    w1 = params["conv1_w"].astype(f32).reshape(10, 25).T              # (25, 10), row = kh*5+kw
    w1 = jnp.pad(w1, ((0, 7), (0, 118)))                              # (32, 128)
    w1q = jnp.zeros((128, 512), f32)                                  # one block per pooling quad
    for q in range(4):
        w1q = w1q.at[q * 32:(q + 1) * 32, q * 128:(q + 1) * 128].set(w1)
    b1 = jnp.pad(params["conv1_b"].astype(f32), (0, 118)).reshape(1, 128)

    w2 = jnp.transpose(params["conv2_w"].astype(f32), (2, 3, 1, 0))   # (5,5,10,20)
    w2 = jnp.pad(w2, ((0, 0), (0, 0), (0, 118), (0, 108))).reshape(3200, 128)
    b2 = jnp.pad(params["conv2_b"].astype(f32), (0, 108)).reshape(1, 128)
    b2t = jnp.tile(b2, (1, 16))                                       # bias for (h*4+w, c) flatten

    wf1 = params["fc1_w"].astype(f32).reshape(50, 20, 4, 4)
    wf1 = jnp.transpose(wf1, (2, 3, 1, 0))                            # (4,4,20,50)
    wf1 = jnp.pad(wf1, ((0, 0), (0, 0), (0, 108), (0, 78))).reshape(2048, 128)
    bf1 = jnp.pad(params["fc1_b"].astype(f32), (0, 78)).reshape(1, 128)

    wf2 = jnp.pad(params["fc2_w"].astype(f32).T, ((0, 78), (0, 118)))  # (128, 128)
    bf2 = jnp.pad(params["fc2_b"].astype(f32), (0, 118)).reshape(1, 128)

    return {"w1q": w1q.astype(mm), "b1": b1, "w2": w2.astype(mm), "b2t": b2t,
            "wf1": wf1.astype(mm), "bf1": bf1, "wf2": wf2.astype(mm), "bf2": bf2}


def init_params(key):
    """Deterministic synthetic params, PyTorch default-init-style bounds."""
    def u(k, shape, fan_in):
        bound = 1.0 / float(fan_in) ** 0.5
        return jax.random.uniform(k, shape, jnp.float32, -bound, bound)

    ks = jax.random.split(key, 8)
    return {
        "conv1_w": u(ks[0], (10, 1, 5, 5), 1 * 5 * 5),    # OIHW
        "conv1_b": u(ks[1], (10,), 1 * 5 * 5),
        "conv2_w": u(ks[2], (20, 10, 5, 5), 10 * 5 * 5),  # OIHW
        "conv2_b": u(ks[3], (20,), 10 * 5 * 5),
        "fc1_w": u(ks[4], (50, 320), 320),                # (out, in) like torch
        "fc1_b": u(ks[5], (50,), 320),
        "fc2_w": u(ks[6], (10, 50), 50),
        "fc2_b": u(ks[7], (10,), 50),
    }


# --------------------------------- forward ----------------------------------

def _im2col_pool_quads(img):
    """img: (B, 28, 28) f32 -> (B, 192, 128) conv1 im2col packed per pooled
    output position (rows i*16 + j, j < 12 real) with the 4 pooling-quad
    patches in 32-lane blocks (taps kh*5+kw, padded 25->32)."""
    taps = jnp.stack([img[:, kh:kh + 24, kw:kw + 24]
                      for kh in range(5) for kw in range(5)], axis=-1)   # (B,24,24,25)
    quads = jnp.stack([taps[:, a::2, b::2, :]
                       for a in range(2) for b in range(2)], axis=3)     # (B,12,12,4,25)
    quads = jnp.pad(quads, ((0, 0), (0, 0), (0, 4), (0, 0), (0, 7)))     # (B,12,16,4,32)
    return quads.reshape(img.shape[0], 192, 128)


def net_forward(prep, x_nchw, block_b=None):
    B = x_nchw.shape[0]
    if block_b is None:
        # Up to 8 images per grid step; keep grid length >= 2 when B >= 2 so
        # v7x's two TensorCores both get work ("parallel" grid axis).
        block_b = max(1, min(8, B // 2))
    n_blocks = (B + block_b - 1) // block_b
    Bp = n_blocks * block_b

    img = x_nchw[:, 0].astype(jnp.float32)
    if Bp != B:
        img = jnp.pad(img, ((0, Bp - B), (0, 0), (0, 0)))
    xcols = _im2col_pool_quads(img).reshape(n_blocks, block_b * 192, 128)

    out = pl.pallas_call(
        functools.partial(_net_kernel, block_b),
        out_shape=jax.ShapeDtypeStruct((n_blocks, block_b, 128), jnp.float32),
        grid=(n_blocks,),
        in_specs=[
            pl.BlockSpec((1, block_b * 192, 128), lambda b: (b, 0, 0)),  # images (im2col)
            # Weights/biases are grid-invariant (constant index maps).
            # TODO(synk): pipeline_mode=pl.Buffered(1) would drop their second
            # buffer (~3 MB); not needed at this VMEM footprint.
            pl.BlockSpec((128, 512), lambda b: (0, 0)),     # conv1 w (quad block-diag)
            pl.BlockSpec((1, 128), lambda b: (0, 0)),       # conv1 b
            pl.BlockSpec((3200, 128), lambda b: (0, 0)),    # conv2 w
            pl.BlockSpec((1, 2048), lambda b: (0, 0)),      # conv2 b (tiled x16)
            pl.BlockSpec((2048, 128), lambda b: (0, 0)),    # fc1 w
            pl.BlockSpec((1, 128), lambda b: (0, 0)),       # fc1 b
            pl.BlockSpec((128, 128), lambda b: (0, 0)),     # fc2 w
            pl.BlockSpec((1, 128), lambda b: (0, 0)),       # fc2 b
        ],
        out_specs=pl.BlockSpec((1, block_b, 128), lambda b: (b, 0, 0)),
        compiler_params=pltpu.CompilerParams(
            dimension_semantics=("parallel",),
            vmem_limit_bytes=40 * 1024 * 1024,               # headroom, v7x-safe
        ),
    )(xcols, prep["w1q"], prep["b1"], prep["w2"], prep["b2t"],
      prep["wf1"], prep["bf1"], prep["wf2"], prep["bf2"])

    return out.reshape(Bp, 128)[:B, :10]                     # (B, 10) log-probs


if __name__ == "__main__":
    key = jax.random.PRNGKey(0)
    pkey, xkey = jax.random.split(key)
    params = init_params(pkey)
    prep = prepare_params(params)                 # weight repack hoisted out of jit
    # Spatial size is fixed at 28x28 by the architecture (320 = 20*4*4 flatten).
    x = jax.random.normal(xkey, (2, 1, 28, 28), jnp.float32)
    out = jax.jit(net_forward)(prep, x)
    jax.block_until_ready(out)
    assert out.shape == (2, 10)
    assert bool(jnp.all(jnp.isfinite(out)))
    print("KERNEL_OK")
</pallas_src>

<mosaic_0001>
module attributes {stable_mosaic.version = 11 : i64} {
  func.func @_net_kernel(%arg0: i32, %arg1: memref<1x192x128xf32, #tpu.memory_space<vmem>>, %arg2: memref<128x512xf32, #tpu.memory_space<vmem>>, %arg3: memref<1x128xf32, #tpu.memory_space<vmem>>, %arg4: memref<3200x128xf32, #tpu.memory_space<vmem>>, %arg5: memref<1x2048xf32, #tpu.memory_space<vmem>>, %arg6: memref<2048x128xf32, #tpu.memory_space<vmem>>, %arg7: memref<1x128xf32, #tpu.memory_space<vmem>>, %arg8: memref<128x128xf32, #tpu.memory_space<vmem>>, %arg9: memref<1x128xf32, #tpu.memory_space<vmem>>, %arg10: memref<1x1x128xf32, #tpu.memory_space<vmem>>) attributes {dimension_semantics = [#tpu.dimension_semantics<parallel>], iteration_bounds = array<i64: 2>, scalar_prefetch = 0 : i64, scratch_operands = 0 : i64, tpu.core_type = #tpu.core_type<tc>, window_params = [{transform_indices = @transform_0, window_bounds = array<i64: 1, 192, 128>}, {pipeline_mode = #tpu.pipeline_mode<synchronous>, transform_indices = @transform_1, window_bounds = array<i64: 128, 512>}, {pipeline_mode = #tpu.pipeline_mode<synchronous>, transform_indices = @transform_2, window_bounds = array<i64: 1, 128>}, {pipeline_mode = #tpu.pipeline_mode<synchronous>, transform_indices = @transform_3, window_bounds = array<i64: 3200, 128>}, {pipeline_mode = #tpu.pipeline_mode<synchronous>, transform_indices = @transform_4, window_bounds = array<i64: 1, 2048>}, {pipeline_mode = #tpu.pipeline_mode<synchronous>, transform_indices = @transform_5, window_bounds = array<i64: 2048, 128>}, {pipeline_mode = #tpu.pipeline_mode<synchronous>, transform_indices = @transform_6, window_bounds = array<i64: 1, 128>}, {pipeline_mode = #tpu.pipeline_mode<synchronous>, transform_indices = @transform_7, window_bounds = array<i64: 128, 128>}, {pipeline_mode = #tpu.pipeline_mode<synchronous>, transform_indices = @transform_8, window_bounds = array<i64: 1, 128>}, {transform_indices = @transform_9, window_bounds = array<i64: 1, 1, 128>}]} {
    %c0 = arith.constant 0 : index
    %c0_0 = arith.constant 0 : index
    %c0_1 = arith.constant 0 : index
    %0 = vector.load %arg1[%c0, %c0_0, %c0_1] : memref<1x192x128xf32, #tpu.memory_space<vmem>>, vector<1x192x128xf32>
    %1 = vector.shape_cast %0 : vector<1x192x128xf32> to vector<192x128xf32>
    %c0_2 = arith.constant 0 : index
    %c0_3 = arith.constant 0 : index
    %2 = vector.load %arg2[%c0_2, %c0_3] : memref<128x512xf32, #tpu.memory_space<vmem>>, vector<128x512xf32>
    %cst = arith.constant dense<0.000000e+00> : vector<192x512xf32>
    %3 = tpu.matmul %1, %2, %cst {dimension_numbers = #tpu.dot_dimension_numbers<[1], [0], [0], [1], [0, 0, 1, 1], [], []>} : vector<192x128xf32>, vector<128x512xf32>, vector<192x512xf32> -> vector<192x512xf32>
    %4 = vector.extract_strided_slice %3 {offsets = [0, 0], sizes = [192, 128], strides = [1, 1]} : vector<192x512xf32> to vector<192x128xf32>
    %5 = vector.extract_strided_slice %3 {offsets = [0, 128], sizes = [192, 128], strides = [1, 1]} : vector<192x512xf32> to vector<192x128xf32>
    %6 = arith.maximumf %4, %5 : vector<192x128xf32>
    %7 = vector.extract_strided_slice %3 {offsets = [0, 256], sizes = [192, 128], strides = [1, 1]} : vector<192x512xf32> to vector<192x128xf32>
    %8 = vector.extract_strided_slice %3 {offsets = [0, 384], sizes = [192, 128], strides = [1, 1]} : vector<192x512xf32> to vector<192x128xf32>
    %9 = arith.maximumf %7, %8 : vector<192x128xf32>
    %10 = arith.maximumf %6, %9 : vector<192x128xf32>
    %c0_4 = arith.constant 0 : index
    %c0_5 = arith.constant 0 : index
    %11 = vector.load %arg3[%c0_4, %c0_5] : memref<1x128xf32, #tpu.memory_space<vmem>>, vector<1x128xf32>
    %12 = vector.broadcast %11 : vector<1x128xf32> to vector<192x128xf32>
    %13 = arith.addf %10, %12 : vector<192x128xf32>
    %cst_6 = arith.constant 0.000000e+00 : f32
    %14 = vector.broadcast %cst_6 : f32 to vector<192x128xf32>
    %15 = arith.maximumf %13, %14 : vector<192x128xf32>
    %16 = vector.extract_strided_slice %15 {offsets = [0, 0], sizes = [16, 128], strides = [1, 1]} : vector<192x128xf32> to vector<16x128xf32>
    %17 = vector.extract_strided_slice %16 {offsets = [0, 0], sizes = [8, 128], strides = [1, 1]} : vector<16x128xf32> to vector<8x128xf32>
    %18 = vector.extract_strided_slice %16 {offsets = [1, 0], sizes = [8, 128], strides = [1, 1]} : vector<16x128xf32> to vector<8x128xf32>
    %19 = vector.extract_strided_slice %16 {offsets = [2, 0], sizes = [8, 128], strides = [1, 1]} : vector<16x128xf32> to vector<8x128xf32>
    %20 = vector.extract_strided_slice %16 {offsets = [3, 0], sizes = [8, 128], strides = [1, 1]} : vector<16x128xf32> to vector<8x128xf32>
    %21 = vector.extract_strided_slice %16 {offsets = [4, 0], sizes = [8, 128], strides = [1, 1]} : vector<16x128xf32> to vector<8x128xf32>
    %22 = vector.extract_strided_slice %15 {offsets = [16, 0], sizes = [16, 128], strides = [1, 1]} : vector<192x128xf32> to vector<16x128xf32>
    %23 = vector.extract_strided_slice %22 {offsets = [0, 0], sizes = [8, 128], strides = [1, 1]} : vector<16x128xf32> to vector<8x128xf32>
    %24 = vector.extract_strided_slice %22 {offsets = [1, 0], sizes = [8, 128], strides = [1, 1]} : vector<16x128xf32> to vector<8x128xf32>
    %25 = vector.extract_strided_slice %22 {offsets = [2, 0], sizes = [8, 128], strides = [1, 1]} : vector<16x128xf32> to vector<8x128xf32>
    %26 = vector.extract_strided_slice %22 {offsets = [3, 0], sizes = [8, 128], strides = [1, 1]} : vector<16x128xf32> to vector<8x128xf32>
    %27 = vector.extract_strided_slice %22 {offsets = [4, 0], sizes = [8, 128], strides = [1, 1]} : vector<16x128xf32> to vector<8x128xf32>
    %28 = vector.extract_strided_slice %15 {offsets = [32, 0], sizes = [16, 128], strides = [1, 1]} : vector<192x128xf32> to vector<16x128xf32>
    %29 = vector.extract_strided_slice %28 {offsets = [0, 0], sizes = [8, 128], strides = [1, 1]} : vector<16x128xf32> to vector<8x128xf32>
    %30 = vector.extract_strided_slice %28 {offsets = [1, 0], sizes = [8, 128], strides = [1, 1]} : vector<16x128xf32> to vector<8x128xf32>
    %31 = vector.extract_strided_slice %28 {offsets = [2, 0], sizes = [8, 128], strides = [1, 1]} : vector<16x128xf32> to vector<8x128xf32>
    %32 = vector.extract_strided_slice %28 {offsets = [3, 0], sizes = [8, 128], strides = [1, 1]} : vector<16x128xf32> to vector<8x128xf32>
    %33 = vector.extract_strided_slice %28 {offsets = [4, 0], sizes = [8, 128], strides = [1, 1]} : vector<16x128xf32> to vector<8x128xf32>
    %34 = vector.extract_strided_slice %15 {offsets = [48, 0], sizes = [16, 128], strides = [1, 1]} : vector<192x128xf32> to vector<16x128xf32>
    %35 = vector.extract_strided_slice %34 {offsets = [0, 0], sizes = [8, 128], strides = [1, 1]} : vector<16x128xf32> to vector<8x128xf32>
    %36 = vector.extract_strided_slice %34 {offsets = [1, 0], sizes = [8, 128], strides = [1, 1]} : vector<16x128xf32> to vector<8x128xf32>
    %37 = vector.extract_strided_slice %34 {offsets = [2, 0], sizes = [8, 128], strides = [1, 1]} : vector<16x128xf32> to vector<8x128xf32>
    %38 = vector.extract_strided_slice %34 {offsets = [3, 0], sizes = [8, 128], strides = [1, 1]} : vector<16x128xf32> to vector<8x128xf32>
    %39 = vector.extract_strided_slice %34 {offsets = [4, 0], sizes = [8, 128], strides = [1, 1]} : vector<16x128xf32> to vector<8x128xf32>
    %40 = vector.extract_strided_slice %15 {offsets = [64, 0], sizes = [16, 128], strides = [1, 1]} : vector<192x128xf32> to vector<16x128xf32>
    %41 = vector.extract_strided_slice %40 {offsets = [0, 0], sizes = [8, 128], strides = [1, 1]} : vector<16x128xf32> to vector<8x128xf32>
    %42 = vector.extract_strided_slice %40 {offsets = [1, 0], sizes = [8, 128], strides = [1, 1]} : vector<16x128xf32> to vector<8x128xf32>
    %43 = vector.extract_strided_slice %40 {offsets = [2, 0], sizes = [8, 128], strides = [1, 1]} : vector<16x128xf32> to vector<8x128xf32>
    %44 = vector.extract_strided_slice %40 {offsets = [3, 0], sizes = [8, 128], strides = [1, 1]} : vector<16x128xf32> to vector<8x128xf32>
    %45 = vector.extract_strided_slice %40 {offsets = [4, 0], sizes = [8, 128], strides = [1, 1]} : vector<16x128xf32> to vector<8x128xf32>
    %46 = tpu.concatenate %17, %18, %19, %20, %21, %23, %24, %25, %26, %27, %29, %30, %31, %32, %33, %35 in 1 : vector<8x128xf32>, vector<8x128xf32>, vector<8x128xf32>, vector<8x128xf32>, vector<8x128xf32>, vector<8x128xf32>, vector<8x128xf32>, vector<8x128xf32>, vector<8x128xf32>, vector<8x128xf32>, vector<8x128xf32>, vector<8x128xf32>, vector<8x128xf32>, vector<8x128xf32>, vector<8x128xf32>, vector<8x128xf32> -> vector<8x2048xf32>
    %47 = tpu.concatenate %36, %37, %38, %39, %41, %42, %43, %44, %45 in 1 : vector<8x128xf32>, vector<8x128xf32>, vector<8x128xf32>, vector<8x128xf32>, vector<8x128xf32>, vector<8x128xf32>, vector<8x128xf32>, vector<8x128xf32>, vector<8x128xf32> -> vector<8x1152xf32>
    %48 = tpu.concatenate %46, %47 in 1 : vector<8x2048xf32>, vector<8x1152xf32> -> vector<8x3200xf32>
    %49 = vector.extract_strided_slice %15 {offsets = [16, 0], sizes = [16, 128], strides = [1, 1]} : vector<192x128xf32> to vector<16x128xf32>
    %50 = vector.extract_strided_slice %49 {offsets = [0, 0], sizes = [8, 128], strides = [1, 1]} : vector<16x128xf32> to vector<8x128xf32>
    %51 = vector.extract_strided_slice %49 {offsets = [1, 0], sizes = [8, 128], strides = [1, 1]} : vector<16x128xf32> to vector<8x128xf32>
    %52 = vector.extract_strided_slice %49 {offsets = [2, 0], sizes = [8, 128], strides = [1, 1]} : vector<16x128xf32> to vector<8x128xf32>
    %53 = vector.extract_strided_slice %49 {offsets = [3, 0], sizes = [8, 128], strides = [1, 1]} : vector<16x128xf32> to vector<8x128xf32>
    %54 = vector.extract_strided_slice %49 {offsets = [4, 0], sizes = [8, 128], strides = [1, 1]} : vector<16x128xf32> to vector<8x128xf32>
    %55 = vector.extract_strided_slice %15 {offsets = [32, 0], sizes = [16, 128], strides = [1, 1]} : vector<192x128xf32> to vector<16x128xf32>
    %56 = vector.extract_strided_slice %55 {offsets = [0, 0], sizes = [8, 128], strides = [1, 1]} : vector<16x128xf32> to vector<8x128xf32>
    %57 = vector.extract_strided_slice %55 {offsets = [1, 0], sizes = [8, 128], strides = [1, 1]} : vector<16x128xf32> to vector<8x128xf32>
    %58 = vector.extract_strided_slice %55 {offsets = [2, 0], sizes = [8, 128], strides = [1, 1]} : vector<16x128xf32> to vector<8x128xf32>
    %59 = vector.extract_strided_slice %55 {offsets = [3, 0], sizes = [8, 128], strides = [1, 1]} : vector<16x128xf32> to vector<8x128xf32>
    %60 = vector.extract_strided_slice %55 {offsets = [4, 0], sizes = [8, 128], strides = [1, 1]} : vector<16x128xf32> to vector<8x128xf32>
    %61 = vector.extract_strided_slice %15 {offsets = [48, 0], sizes = [16, 128], strides = [1, 1]} : vector<192x128xf32> to vector<16x128xf32>
    %62 = vector.extract_strided_slice %61 {offsets = [0, 0], sizes = [8, 128], strides = [1, 1]} : vector<16x128xf32> to vector<8x128xf32>
    %63 = vector.extract_strided_slice %61 {offsets = [1, 0], sizes = [8, 128], strides = [1, 1]} : vector<16x128xf32> to vector<8x128xf32>
    %64 = vector.extract_strided_slice %61 {offsets = [2, 0], sizes = [8, 128], strides = [1, 1]} : vector<16x128xf32> to vector<8x128xf32>
    %65 = vector.extract_strided_slice %61 {offsets = [3, 0], sizes = [8, 128], strides = [1, 1]} : vector<16x128xf32> to vector<8x128xf32>
    %66 = vector.extract_strided_slice %61 {offsets = [4, 0], sizes = [8, 128], strides = [1, 1]} : vector<16x128xf32> to vector<8x128xf32>
    %67 = vector.extract_strided_slice %15 {offsets = [64, 0], sizes = [16, 128], strides = [1, 1]} : vector<192x128xf32> to vector<16x128xf32>
    %68 = vector.extract_strided_slice %67 {offsets = [0, 0], sizes = [8, 128], strides = [1, 1]} : vector<16x128xf32> to vector<8x128xf32>
    %69 = vector.extract_strided_slice %67 {offsets = [1, 0], sizes = [8, 128], strides = [1, 1]} : vector<16x128xf32> to vector<8x128xf32>
    %70 = vector.extract_strided_slice %67 {offsets = [2, 0], sizes = [8, 128], strides = [1, 1]} : vector<16x128xf32> to vector<8x128xf32>
    %71 = vector.extract_strided_slice %67 {offsets = [3, 0], sizes = [8, 128], strides = [1, 1]} : vector<16x128xf32> to vector<8x128xf32>
    %72 = vector.extract_strided_slice %67 {offsets = [4, 0], sizes = [8, 128], strides = [1, 1]} : vector<16x128xf32> to vector<8x128xf32>
    %73 = vector.extract_strided_slice %15 {offsets = [80, 0], sizes = [16, 128], strides = [1, 1]} : vector<192x128xf32> to vector<16x128xf32>
    %74 = vector.extract_strided_slice %73 {offsets = [0, 0], sizes = [8, 128], strides = [1, 1]} : vector<16x128xf32> to vector<8x128xf32>
    %75 = vector.extract_strided_slice %73 {offsets = [1, 0], sizes = [8, 128], strides = [1, 1]} : vector<16x128xf32> to vector<8x128xf32>
    %76 = vector.extract_strided_slice %73 {offsets = [2, 0], sizes = [8, 128], strides = [1, 1]} : vector<16x128xf32> to vector<8x128xf32>
    %77 = vector.extract_strided_slice %73 {offsets = [3, 0], sizes = [8, 128], strides = [1, 1]} : vector<16x128xf32> to vector<8x128xf32>
    %78 = vector.extract_strided_slice %73 {offsets = [4, 0], sizes = [8, 128], strides = [1, 1]} : vector<16x128xf32> to vector<8x128xf32>
    %79 = tpu.concatenate %50, %51, %52, %53, %54, %56, %57, %58, %59, %60, %62, %63, %64, %65, %66, %68 in 1 : vector<8x128xf32>, vector<8x128xf32>, vector<8x128xf32>, vector<8x128xf32>, vector<8x128xf32>, vector<8x128xf32>, vector<8x128xf32>, vector<8x128xf32>, vector<8x128xf32>, vector<8x128xf32>, vector<8x128xf32>, vector<8x128xf32>, vector<8x128xf32>, vector<8x128xf32>, vector<8x128xf32>, vector<8x128xf32> -> vector<8x2048xf32>
    %80 = tpu.concatenate %69, %70, %71, %72, %74, %75, %76, %77, %78 in 1 : vector<8x128xf32>, vector<8x128xf32>, vector<8x128xf32>, vector<8x128xf32>, vector<8x128xf32>, vector<8x128xf32>, vector<8x128xf32>, vector<8x128xf32>, vector<8x128xf32> -> vector<8x1152xf32>
    %81 = tpu.concatenate %79, %80 in 1 : vector<8x2048xf32>, vector<8x1152xf32> -> vector<8x3200xf32>
    %82 = vector.extract_strided_slice %15 {offsets = [32, 0], sizes = [16, 128], strides = [1, 1]} : vector<192x128xf32> to vector<16x128xf32>
    %83 = vector.extract_strided_slice %82 {offsets = [0, 0], sizes = [8, 128], strides = [1, 1]} : vector<16x128xf32> to vector<8x128xf32>
    %84 = vector.extract_strided_slice %82 {offsets = [1, 0], sizes = [8, 128], strides = [1, 1]} : vector<16x128xf32> to vector<8x128xf32>
    %85 = vector.extract_strided_slice %82 {offsets = [2, 0], sizes = [8, 128], strides = [1, 1]} : vector<16x128xf32> to vector<8x128xf32>
    %86 = vector.extract_strided_slice %82 {offsets = [3, 0], sizes = [8, 128], strides = [1, 1]} : vector<16x128xf32> to vector<8x128xf32>
    %87 = vector.extract_strided_slice %82 {offsets = [4, 0], sizes = [8, 128], strides = [1, 1]} : vector<16x128xf32> to vector<8x128xf32>
    %88 = vector.extract_strided_slice %15 {offsets = [48, 0], sizes = [16, 128], strides = [1, 1]} : vector<192x128xf32> to vector<16x128xf32>
    %89 = vector.extract_strided_slice %88 {offsets = [0, 0], sizes = [8, 128], strides = [1, 1]} : vector<16x128xf32> to vector<8x128xf32>
    %90 = vector.extract_strided_slice %88 {offsets = [1, 0], sizes = [8, 128], strides = [1, 1]} : vector<16x128xf32> to vector<8x128xf32>
    %91 = vector.extract_strided_slice %88 {offsets = [2, 0], sizes = [8, 128], strides = [1, 1]} : vector<16x128xf32> to vector<8x128xf32>
    %92 = vector.extract_strided_slice %88 {offsets = [3, 0], sizes = [8, 128], strides = [1, 1]} : vector<16x128xf32> to vector<8x128xf32>
    %93 = vector.extract_strided_slice %88 {offsets = [4, 0], sizes = [8, 128], strides = [1, 1]} : vector<16x128xf32> to vector<8x128xf32>
    %94 = vector.extract_strided_slice %15 {offsets = [64, 0], sizes = [16, 128], strides = [1, 1]} : vector<192x128xf32> to vector<16x128xf32>
    %95 = vector.extract_strided_slice %94 {offsets = [0, 0], sizes = [8, 128], strides = [1, 1]} : vector<16x128xf32> to vector<8x128xf32>
    %96 = vector.extract_strided_slice %94 {offsets = [1, 0], sizes = [8, 128], strides = [1, 1]} : vector<16x128xf32> to vector<8x128xf32>
    %97 = vector.extract_strided_slice %94 {offsets = [2, 0], sizes = [8, 128], strides = [1, 1]} : vector<16x128xf32> to vector<8x128xf32>
    %98 = vector.extract_strided_slice %94 {offsets = [3, 0], sizes = [8, 128], strides = [1, 1]} : vector<16x128xf32> to vector<8x128xf32>
    %99 = vector.extract_strided_slice %94 {offsets = [4, 0], sizes = [8, 128], strides = [1, 1]} : vector<16x128xf32> to vector<8x128xf32>
    %100 = vector.extract_strided_slice %15 {offsets = [80, 0], sizes = [16, 128], strides = [1, 1]} : vector<192x128xf32> to vector<16x128xf32>
    %101 = vector.extract_strided_slice %100 {offsets = [0, 0], sizes = [8, 128], strides = [1, 1]} : vector<16x128xf32> to vector<8x128xf32>
    %102 = vector.extract_strided_slice %100 {offsets = [1, 0], sizes = [8, 128], strides = [1, 1]} : vector<16x128xf32> to vector<8x128xf32>
    %103 = vector.extract_strided_slice %100 {offsets = [2, 0], sizes = [8, 128], strides = [1, 1]} : vector<16x128xf32> to vector<8x128xf32>
    %104 = vector.extract_strided_slice %100 {offsets = [3, 0], sizes = [8, 128], strides = [1, 1]} : vector<16x128xf32> to vector<8x128xf32>
    %105 = vector.extract_strided_slice %100 {offsets = [4, 0], sizes = [8, 128], strides = [1, 1]} : vector<16x128xf32> to vector<8x128xf32>
    %106 = vector.extract_strided_slice %15 {offsets = [96, 0], sizes = [16, 128], strides = [1, 1]} : vector<192x128xf32> to vector<16x128xf32>
    %107 = vector.extract_strided_slice %106 {offsets = [0, 0], sizes = [8, 128], strides = [1, 1]} : vector<16x128xf32> to vector<8x128xf32>
    %108 = vector.extract_strided_slice %106 {offsets = [1, 0], sizes = [8, 128], strides = [1, 1]} : vector<16x128xf32> to vector<8x128xf32>
    %109 = vector.extract_strided_slice %106 {offsets = [2, 0], sizes = [8, 128], strides = [1, 1]} : vector<16x128xf32> to vector<8x128xf32>
    %110 = vector.extract_strided_slice %106 {offsets = [3, 0], sizes = [8, 128], strides = [1, 1]} : vector<16x128xf32> to vector<8x128xf32>
    %111 = vector.extract_strided_slice %106 {offsets = [4, 0], sizes = [8, 128], strides = [1, 1]} : vector<16x128xf32> to vector<8x128xf32>
    %112 = tpu.concatenate %83, %84, %85, %86, %87, %89, %90, %91, %92, %93, %95, %96, %97, %98, %99, %101 in 1 : vector<8x128xf32>, vector<8x128xf32>, vector<8x128xf32>, vector<8x128xf32>, vector<8x128xf32>, vector<8x128xf32>, vector<8x128xf32>, vector<8x128xf32>, vector<8x128xf32>, vector<8x128xf32>, vector<8x128xf32>, vector<8x128xf32>, vector<8x128xf32>, vector<8x128xf32>, vector<8x128xf32>, vector<8x128xf32> -> vector<8x2048xf32>
    %113 = tpu.concatenate %102, %103, %104, %105, %107, %108, %109, %110, %111 in 1 : vector<8x128xf32>, vector<8x128xf32>, vector<8x128xf32>, vector<8x128xf32>, vector<8x128xf32>, vector<8x128xf32>, vector<8x128xf32>, vector<8x128xf32>, vector<8x128xf32> -> vector<8x1152xf32>
    %114 = tpu.concatenate %112, %113 in 1 : vector<8x2048xf32>, vector<8x1152xf32> -> vector<8x3200xf32>
    %115 = vector.extract_strided_slice %15 {offsets = [48, 0], sizes = [16, 128], strides = [1, 1]} : vector<192x128xf32> to vector<16x128xf32>
    %116 = vector.extract_strided_slice %115 {offsets = [0, 0], sizes = [8, 128], strides = [1, 1]} : vector<16x128xf32> to vector<8x128xf32>
    %117 = vector.extract_strided_slice %115 {offsets = [1, 0], sizes = [8, 128], strides = [1, 1]} : vector<16x128xf32> to vector<8x128xf32>
    %118 = vector.extract_strided_slice %115 {offsets = [2, 0], sizes = [8, 128], strides = [1, 1]} : vector<16x128xf32> to vector<8x128xf32>
    %119 = vector.extract_strided_slice %115 {offsets = [3, 0], sizes = [8, 128], strides = [1, 1]} : vector<16x128xf32> to vector<8x128xf32>
    %120 = vector.extract_strided_slice %115 {offsets = [4, 0], sizes = [8, 128], strides = [1, 1]} : vector<16x128xf32> to vector<8x128xf32>
    %121 = vector.extract_strided_slice %15 {offsets = [64, 0], sizes = [16, 128], strides = [1, 1]} : vector<192x128xf32> to vector<16x128xf32>
    %122 = vector.extract_strided_slice %121 {offsets = [0, 0], sizes = [8, 128], strides = [1, 1]} : vector<16x128xf32> to vector<8x128xf32>
    %123 = vector.extract_strided_slice %121 {offsets = [1, 0], sizes = [8, 128], strides = [1, 1]} : vector<16x128xf32> to vector<8x128xf32>
    %124 = vector.extract_strided_slice %121 {offsets = [2, 0], sizes = [8, 128], strides = [1, 1]} : vector<16x128xf32> to vector<8x128xf32>
    %125 = vector.extract_strided_slice %121 {offsets = [3, 0], sizes = [8, 128], strides = [1, 1]} : vector<16x128xf32> to vector<8x128xf32>
    %126 = vector.extract_strided_slice %121 {offsets = [4, 0], sizes = [8, 128], strides = [1, 1]} : vector<16x128xf32> to vector<8x128xf32>
    %127 = vector.extract_strided_slice %15 {offsets = [80, 0], sizes = [16, 128], strides = [1, 1]} : vector<192x128xf32> to vector<16x128xf32>
    %128 = vector.extract_strided_slice %127 {offsets = [0, 0], sizes = [8, 128], strides = [1, 1]} : vector<16x128xf32> to vector<8x128xf32>
    %129 = vector.extract_strided_slice %127 {offsets = [1, 0], sizes = [8, 128], strides = [1, 1]} : vector<16x128xf32> to vector<8x128xf32>
    %130 = vector.extract_strided_slice %127 {offsets = [2, 0], sizes = [8, 128], strides = [1, 1]} : vector<16x128xf32> to vector<8x128xf32>
    %131 = vector.extract_strided_slice %127 {offsets = [3, 0], sizes = [8, 128], strides = [1, 1]} : vector<16x128xf32> to vector<8x128xf32>
    %132 = vector.extract_strided_slice %127 {offsets = [4, 0], sizes = [8, 128], strides = [1, 1]} : vector<16x128xf32> to vector<8x128xf32>
    %133 = vector.extract_strided_slice %15 {offsets = [96, 0], sizes = [16, 128], strides = [1, 1]} : vector<192x128xf32> to vector<16x128xf32>
    %134 = vector.extract_strided_slice %133 {offsets = [0, 0], sizes = [8, 128], strides = [1, 1]} : vector<16x128xf32> to vector<8x128xf32>
    %135 = vector.extract_strided_slice %133 {offsets = [1, 0], sizes = [8, 128], strides = [1, 1]} : vector<16x128xf32> to vector<8x128xf32>
    %136 = vector.extract_strided_slice %133 {offsets = [2, 0], sizes = [8, 128], strides = [1, 1]} : vector<16x128xf32> to vector<8x128xf32>
    %137 = vector.extract_strided_slice %133 {offsets = [3, 0], sizes = [8, 128], strides = [1, 1]} : vector<16x128xf32> to vector<8x128xf32>
    %138 = vector.extract_strided_slice %133 {offsets = [4, 0], sizes = [8, 128], strides = [1, 1]} : vector<16x128xf32> to vector<8x128xf32>
    %139 = vector.extract_strided_slice %15 {offsets = [112, 0], sizes = [16, 128], strides = [1, 1]} : vector<192x128xf32> to vector<16x128xf32>
    %140 = vector.extract_strided_slice %139 {offsets = [0, 0], sizes = [8, 128], strides = [1, 1]} : vector<16x128xf32> to vector<8x128xf32>
    %141 = vector.extract_strided_slice %139 {offsets = [1, 0], sizes = [8, 128], strides = [1, 1]} : vector<16x128xf32> to vector<8x128xf32>
    %142 = vector.extract_strided_slice %139 {offsets = [2, 0], sizes = [8, 128], strides = [1, 1]} : vector<16x128xf32> to vector<8x128xf32>
    %143 = vector.extract_strided_slice %139 {offsets = [3, 0], sizes = [8, 128], strides = [1, 1]} : vector<16x128xf32> to vector<8x128xf32>
    %144 = vector.extract_strided_slice %139 {offsets = [4, 0], sizes = [8, 128], strides = [1, 1]} : vector<16x128xf32> to vector<8x128xf32>
    %145 = tpu.concatenate %116, %117, %118, %119, %120, %122, %123, %124, %125, %126, %128, %129, %130, %131, %132, %134 in 1 : vector<8x128xf32>, vector<8x128xf32>, vector<8x128xf32>, vector<8x128xf32>, vector<8x128xf32>, vector<8x128xf32>, vector<8x128xf32>, vector<8x128xf32>, vector<8x128xf32>, vector<8x128xf32>, vector<8x128xf32>, vector<8x128xf32>, vector<8x128xf32>, vector<8x128xf32>, vector<8x128xf32>, vector<8x128xf32> -> vector<8x2048xf32>
    %146 = tpu.concatenate %135, %136, %137, %138, %140, %141, %142, %143, %144 in 1 : vector<8x128xf32>, vector<8x128xf32>, vector<8x128xf32>, vector<8x128xf32>, vector<8x128xf32>, vector<8x128xf32>, vector<8x128xf32>, vector<8x128xf32>, vector<8x128xf32> -> vector<8x1152xf32>
    %147 = tpu.concatenate %145, %146 in 1 : vector<8x2048xf32>, vector<8x1152xf32> -> vector<8x3200xf32>
    %148 = vector.extract_strided_slice %15 {offsets = [64, 0], sizes = [16, 128], strides = [1, 1]} : vector<192x128xf32> to vector<16x128xf32>
    %149 = vector.extract_strided_slice %148 {offsets = [0, 0], sizes = [8, 128], strides = [1, 1]} : vector<16x128xf32> to vector<8x128xf32>
    %150 = vector.extract_strided_slice %148 {offsets = [1, 0], sizes = [8, 128], strides = [1, 1]} : vector<16x128xf32> to vector<8x128xf32>
    %151 = vector.extract_strided_slice %148 {offsets = [2, 0], sizes = [8, 128], strides = [1, 1]} : vector<16x128xf32> to vector<8x128xf32>
    %152 = vector.extract_strided_slice %148 {offsets = [3, 0], sizes = [8, 128], strides = [1, 1]} : vector<16x128xf32> to vector<8x128xf32>
    %153 = vector.extract_strided_slice %148 {offsets = [4, 0], sizes = [8, 128], strides = [1, 1]} : vector<16x128xf32> to vector<8x128xf32>
    %154 = vector.extract_strided_slice %15 {offsets = [80, 0], sizes = [16, 128], strides = [1, 1]} : vector<192x128xf32> to vector<16x128xf32>
    %155 = vector.extract_strided_slice %154 {offsets = [0, 0], sizes = [8, 128], strides = [1, 1]} : vector<16x128xf32> to vector<8x128xf32>
    %156 = vector.extract_strided_slice %154 {offsets = [1, 0], sizes = [8, 128], strides = [1, 1]} : vector<16x128xf32> to vector<8x128xf32>
    %157 = vector.extract_strided_slice %154 {offsets = [2, 0], sizes = [8, 128], strides = [1, 1]} : vector<16x128xf32> to vector<8x128xf32>
    %158 = vector.extract_strided_slice %154 {offsets = [3, 0], sizes = [8, 128], strides = [1, 1]} : vector<16x128xf32> to vector<8x128xf32>
    %159 = vector.extract_strided_slice %154 {offsets = [4, 0], sizes = [8, 128], strides = [1, 1]} : vector<16x128xf32> to vector<8x128xf32>
    %160 = vector.extract_strided_slice %15 {offsets = [96, 0], sizes = [16, 128], strides = [1, 1]} : vector<192x128xf32> to vector<16x128xf32>
    %161 = vector.extract_strided_slice %160 {offsets = [0, 0], sizes = [8, 128], strides = [1, 1]} : vector<16x128xf32> to vector<8x128xf32>
    %162 = vector.extract_strided_slice %160 {offsets = [1, 0], sizes = [8, 128], strides = [1, 1]} : vector<16x128xf32> to vector<8x128xf32>
    %163 = vector.extract_strided_slice %160 {offsets = [2, 0], sizes = [8, 128], strides = [1, 1]} : vector<16x128xf32> to vector<8x128xf32>
    %164 = vector.extract_strided_slice %160 {offsets = [3, 0], sizes = [8, 128], strides = [1, 1]} : vector<16x128xf32> to vector<8x128xf32>
    %165 = vector.extract_strided_slice %160 {offsets = [4, 0], sizes = [8, 128], strides = [1, 1]} : vector<16x128xf32> to vector<8x128xf32>
    %166 = vector.extract_strided_slice %15 {offsets = [112, 0], sizes = [16, 128], strides = [1, 1]} : vector<192x128xf32> to vector<16x128xf32>
    %167 = vector.extract_strided_slice %166 {offsets = [0, 0], sizes = [8, 128], strides = [1, 1]} : vector<16x128xf32> to vector<8x128xf32>
    %168 = vector.extract_strided_slice %166 {offsets = [1, 0], sizes = [8, 128], strides = [1, 1]} : vector<16x128xf32> to vector<8x128xf32>
    %169 = vector.extract_strided_slice %166 {offsets = [2, 0], sizes = [8, 128], strides = [1, 1]} : vector<16x128xf32> to vector<8x128xf32>
    %170 = vector.extract_strided_slice %166 {offsets = [3, 0], sizes = [8, 128], strides = [1, 1]} : vector<16x128xf32> to vector<8x128xf32>
    %171 = vector.extract_strided_slice %166 {offsets = [4, 0], sizes = [8, 128], strides = [1, 1]} : vector<16x128xf32> to vector<8x128xf32>
    %172 = vector.extract_strided_slice %15 {offsets = [128, 0], sizes = [16, 128], strides = [1, 1]} : vector<192x128xf32> to vector<16x128xf32>
    %173 = vector.extract_strided_slice %172 {offsets = [0, 0], sizes = [8, 128], strides = [1, 1]} : vector<16x128xf32> to vector<8x128xf32>
    %174 = vector.extract_strided_slice %172 {offsets = [1, 0], sizes = [8, 128], strides = [1, 1]} : vector<16x128xf32> to vector<8x128xf32>
    %175 = vector.extract_strided_slice %172 {offsets = [2, 0], sizes = [8, 128], strides = [1, 1]} : vector<16x128xf32> to vector<8x128xf32>
    %176 = vector.extract_strided_slice %172 {offsets = [3, 0], sizes = [8, 128], strides = [1, 1]} : vector<16x128xf32> to vector<8x128xf32>
    %177 = vector.extract_strided_slice %172 {offsets = [4, 0], sizes = [8, 128], strides = [1, 1]} : vector<16x128xf32> to vector<8x128xf32>
    %178 = tpu.concatenate %149, %150, %151, %152, %153, %155, %156, %157, %158, %159, %161, %162, %163, %164, %165, %167 in 1 : vector<8x128xf32>, vector<8x128xf32>, vector<8x128xf32>, vector<8x128xf32>, vector<8x128xf32>, vector<8x128xf32>, vector<8x128xf32>, vector<8x128xf32>, vector<8x128xf32>, vector<8x128xf32>, vector<8x128xf32>, vector<8x128xf32>, vector<8x128xf32>, vector<8x128xf32>, vector<8x128xf32>, vector<8x128xf32> -> vector<8x2048xf32>
    %179 = tpu.concatenate %168, %169, %170, %171, %173, %174, %175, %176, %177 in 1 : vector<8x128xf32>, vector<8x128xf32>, vector<8x128xf32>, vector<8x128xf32>, vector<8x128xf32>, vector<8x128xf32>, vector<8x128xf32>, vector<8x128xf32>, vector<8x128xf32> -> vector<8x1152xf32>
    %180 = tpu.concatenate %178, %179 in 1 : vector<8x2048xf32>, vector<8x1152xf32> -> vector<8x3200xf32>
    %181 = vector.extract_strided_slice %15 {offsets = [80, 0], sizes = [16, 128], strides = [1, 1]} : vector<192x128xf32> to vector<16x128xf32>
    %182 = vector.extract_strided_slice %181 {offsets = [0, 0], sizes = [8, 128], strides = [1, 1]} : vector<16x128xf32> to vector<8x128xf32>
    %183 = vector.extract_strided_slice %181 {offsets = [1, 0], sizes = [8, 128], strides = [1, 1]} : vector<16x128xf32> to vector<8x128xf32>
    %184 = vector.extract_strided_slice %181 {offsets = [2, 0], sizes = [8, 128], strides = [1, 1]} : vector<16x128xf32> to vector<8x128xf32>
    %185 = vector.extract_strided_slice %181 {offsets = [3, 0], sizes = [8, 128], strides = [1, 1]} : vector<16x128xf32> to vector<8x128xf32>
    %186 = vector.extract_strided_slice %181 {offsets = [4, 0], sizes = [8, 128], strides = [1, 1]} : vector<16x128xf32> to vector<8x128xf32>
    %187 = vector.extract_strided_slice %15 {offsets = [96, 0], sizes = [16, 128], strides = [1, 1]} : vector<192x128xf32> to vector<16x128xf32>
    %188 = vector.extract_strided_slice %187 {offsets = [0, 0], sizes = [8, 128], strides = [1, 1]} : vector<16x128xf32> to vector<8x128xf32>
    %189 = vector.extract_strided_slice %187 {offsets = [1, 0], sizes = [8, 128], strides = [1, 1]} : vector<16x128xf32> to vector<8x128xf32>
    %190 = vector.extract_strided_slice %187 {offsets = [2, 0], sizes = [8, 128], strides = [1, 1]} : vector<16x128xf32> to vector<8x128xf32>
    %191 = vector.extract_strided_slice %187 {offsets = [3, 0], sizes = [8, 128], strides = [1, 1]} : vector<16x128xf32> to vector<8x128xf32>
    %192 = vector.extract_strided_slice %187 {offsets = [4, 0], sizes = [8, 128], strides = [1, 1]} : vector<16x128xf32> to vector<8x128xf32>
    %193 = vector.extract_strided_slice %15 {offsets = [112, 0], sizes = [16, 128], strides = [1, 1]} : vector<192x128xf32> to vector<16x128xf32>
    %194 = vector.extract_strided_slice %193 {offsets = [0, 0], sizes = [8, 128], strides = [1, 1]} : vector<16x128xf32> to vector<8x128xf32>
    %195 = vector.extract_strided_slice %193 {offsets = [1, 0], sizes = [8, 128], strides = [1, 1]} : vector<16x128xf32> to vector<8x128xf32>
    %196 = vector.extract_strided_slice %193 {offsets = [2, 0], sizes = [8, 128], strides = [1, 1]} : vector<16x128xf32> to vector<8x128xf32>
    %197 = vector.extract_strided_slice %193 {offsets = [3, 0], sizes = [8, 128], strides = [1, 1]} : vector<16x128xf32> to vector<8x128xf32>
    %198 = vector.extract_strided_slice %193 {offsets = [4, 0], sizes = [8, 128], strides = [1, 1]} : vector<16x128xf32> to vector<8x128xf32>
    %199 = vector.extract_strided_slice %15 {offsets = [128, 0], sizes = [16, 128], strides = [1, 1]} : vector<192x128xf32> to vector<16x128xf32>
    %200 = vector.extract_strided_slice %199 {offsets = [0, 0], sizes = [8, 128], strides = [1, 1]} : vector<16x128xf32> to vector<8x128xf32>
    %201 = vector.extract_strided_slice %199 {offsets = [1, 0], sizes = [8, 128], strides = [1, 1]} : vector<16x128xf32> to vector<8x128xf32>
    %202 = vector.extract_strided_slice %199 {offsets = [2, 0], sizes = [8, 128], strides = [1, 1]} : vector<16x128xf32> to vector<8x128xf32>
    %203 = vector.extract_strided_slice %199 {offsets = [3, 0], sizes = [8, 128], strides = [1, 1]} : vector<16x128xf32> to vector<8x128xf32>
    %204 = vector.extract_strided_slice %199 {offsets = [4, 0], sizes = [8, 128], strides = [1, 1]} : vector<16x128xf32> to vector<8x128xf32>
    %205 = vector.extract_strided_slice %15 {offsets = [144, 0], sizes = [16, 128], strides = [1, 1]} : vector<192x128xf32> to vector<16x128xf32>
    %206 = vector.extract_strided_slice %205 {offsets = [0, 0], sizes = [8, 128], strides = [1, 1]} : vector<16x128xf32> to vector<8x128xf32>
    %207 = vector.extract_strided_slice %205 {offsets = [1, 0], sizes = [8, 128], strides = [1, 1]} : vector<16x128xf32> to vector<8x128xf32>
    %208 = vector.extract_strided_slice %205 {offsets = [2, 0], sizes = [8, 128], strides = [1, 1]} : vector<16x128xf32> to vector<8x128xf32>
    %209 = vector.extract_strided_slice %205 {offsets = [3, 0], sizes = [8, 128], strides = [1, 1]} : vector<16x128xf32> to vector<8x128xf32>
    %210 = vector.extract_strided_slice %205 {offsets = [4, 0], sizes = [8, 128], strides = [1, 1]} : vector<16x128xf32> to vector<8x128xf32>
    %211 = tpu.concatenate %182, %183, %184, %185, %186, %188, %189, %190, %191, %192, %194, %195, %196, %197, %198, %200 in 1 : vector<8x128xf32>, vector<8x128xf32>, vector<8x128xf32>, vector<8x128xf32>, vector<8x128xf32>, vector<8x128xf32>, vector<8x128xf32>, vector<8x128xf32>, vector<8x128xf32>, vector<8x128xf32>, vector<8x128xf32>, vector<8x128xf32>, vector<8x128xf32>, vector<8x128xf32>, vector<8x128xf32>, vector<8x128xf32> -> vector<8x2048xf32>
    %212 = tpu.concatenate %201, %202, %203, %204, %206, %207, %208, %209, %210 in 1 : vector<8x128xf32>, vector<8x128xf32>, vector<8x128xf32>, vector<8x128xf32>, vector<8x128xf32>, vector<8x128xf32>, vector<8x128xf32>, vector<8x128xf32>, vector<8x128xf32> -> vector<8x1152xf32>
    %213 = tpu.concatenate %211, %212 in 1 : vector<8x2048xf32>, vector<8x1152xf32> -> vector<8x3200xf32>
    %214 = vector.extract_strided_slice %15 {offsets = [96, 0], sizes = [16, 128], strides = [1, 1]} : vector<192x128xf32> to vector<16x128xf32>
    %215 = vector.extract_strided_slice %214 {offsets = [0, 0], sizes = [8, 128], strides = [1, 1]} : vector<16x128xf32> to vector<8x128xf32>
    %216 = vector.extract_strided_slice %214 {offsets = [1, 0], sizes = [8, 128], strides = [1, 1]} : vector<16x128xf32> to vector<8x128xf32>
    %217 = vector.extract_strided_slice %214 {offsets = [2, 0], sizes = [8, 128], strides = [1, 1]} : vector<16x128xf32> to vector<8x128xf32>
    %218 = vector.extract_strided_slice %214 {offsets = [3, 0], sizes = [8, 128], strides = [1, 1]} : vector<16x128xf32> to vector<8x128xf32>
    %219 = vector.extract_strided_slice %214 {offsets = [4, 0], sizes = [8, 128], strides = [1, 1]} : vector<16x128xf32> to vector<8x128xf32>
    %220 = vector.extract_strided_slice %15 {offsets = [112, 0], sizes = [16, 128], strides = [1, 1]} : vector<192x128xf32> to vector<16x128xf32>
    %221 = vector.extract_strided_slice %220 {offsets = [0, 0], sizes = [8, 128], strides = [1, 1]} : vector<16x128xf32> to vector<8x128xf32>
    %222 = vector.extract_strided_slice %220 {offsets = [1, 0], sizes = [8, 128], strides = [1, 1]} : vector<16x128xf32> to vector<8x128xf32>
    %223 = vector.extract_strided_slice %220 {offsets = [2, 0], sizes = [8, 128], strides = [1, 1]} : vector<16x128xf32> to vector<8x128xf32>
    %224 = vector.extract_strided_slice %220 {offsets = [3, 0], sizes = [8, 128], strides = [1, 1]} : vector<16x128xf32> to vector<8x128xf32>
    %225 = vector.extract_strided_slice %220 {offsets = [4, 0], sizes = [8, 128], strides = [1, 1]} : vector<16x128xf32> to vector<8x128xf32>
    %226 = vector.extract_strided_slice %15 {offsets = [128, 0], sizes = [16, 128], strides = [1, 1]} : vector<192x128xf32> to vector<16x128xf32>
    %227 = vector.extract_strided_slice %226 {offsets = [0, 0], sizes = [8, 128], strides = [1, 1]} : vector<16x128xf32> to vector<8x128xf32>
    %228 = vector.extract_strided_slice %226 {offsets = [1, 0], sizes = [8, 128], strides = [1, 1]} : vector<16x128xf32> to vector<8x128xf32>
    %229 = vector.extract_strided_slice %226 {offsets = [2, 0], sizes = [8, 128], strides = [1, 1]} : vector<16x128xf32> to vector<8x128xf32>
    %230 = vector.extract_strided_slice %226 {offsets = [3, 0], sizes = [8, 128], strides = [1, 1]} : vector<16x128xf32> to vector<8x128xf32>
    %231 = vector.extract_strided_slice %226 {offsets = [4, 0], sizes = [8, 128], strides = [1, 1]} : vector<16x128xf32> to vector<8x128xf32>
    %232 = vector.extract_strided_slice %15 {offsets = [144, 0], sizes = [16, 128], strides = [1, 1]} : vector<192x128xf32> to vector<16x128xf32>
    %233 = vector.extract_strided_slice %232 {offsets = [0, 0], sizes = [8, 128], strides = [1, 1]} : vector<16x128xf32> to vector<8x128xf32>
    %234 = vector.extract_strided_slice %232 {offsets = [1, 0], sizes = [8, 128], strides = [1, 1]} : vector<16x128xf32> to vector<8x128xf32>
    %235 = vector.extract_strided_slice %232 {offsets = [2, 0], sizes = [8, 128], strides = [1, 1]} : vector<16x128xf32> to vector<8x128xf32>
    %236 = vector.extract_strided_slice %232 {offsets = [3, 0], sizes = [8, 128], strides = [1, 1]} : vector<16x128xf32> to vector<8x128xf32>
    %237 = vector.extract_strided_slice %232 {offsets = [4, 0], sizes = [8, 128], strides = [1, 1]} : vector<16x128xf32> to vector<8x128xf32>
    %238 = vector.extract_strided_slice %15 {offsets = [160, 0], sizes = [16, 128], strides = [1, 1]} : vector<192x128xf32> to vector<16x128xf32>
    %239 = vector.extract_strided_slice %238 {offsets = [0, 0], sizes = [8, 128], strides = [1, 1]} : vector<16x128xf32> to vector<8x128xf32>
    %240 = vector.extract_strided_slice %238 {offsets = [1, 0], sizes = [8, 128], strides = [1, 1]} : vector<16x128xf32> to vector<8x128xf32>
    %241 = vector.extract_strided_slice %238 {offsets = [2, 0], sizes = [8, 128], strides = [1, 1]} : vector<16x128xf32> to vector<8x128xf32>
    %242 = vector.extract_strided_slice %238 {offsets = [3, 0], sizes = [8, 128], strides = [1, 1]} : vector<16x128xf32> to vector<8x128xf32>
    %243 = vector.extract_strided_slice %238 {offsets = [4, 0], sizes = [8, 128], strides = [1, 1]} : vector<16x128xf32> to vector<8x128xf32>
    %244 = tpu.concatenate %215, %216, %217, %218, %219, %221, %222, %223, %224, %225, %227, %228, %229, %230, %231, %233 in 1 : vector<8x128xf32>, vector<8x128xf32>, vector<8x128xf32>, vector<8x128xf32>, vector<8x128xf32>, vector<8x128xf32>, vector<8x128xf32>, vector<8x128xf32>, vector<8x128xf32>, vector<8x128xf32>, vector<8x128xf32>, vector<8x128xf32>, vector<8x128xf32>, vector<8x128xf32>, vector<8x128xf32>, vector<8x128xf32> -> vector<8x2048xf32>
    %245 = tpu.concatenate %234, %235, %236, %237, %239, %240, %241, %242, %243 in 1 : vector<8x128xf32>, vector<8x128xf32>, vector<8x128xf32>, vector<8x128xf32>, vector<8x128xf32>, vector<8x128xf32>, vector<8x128xf32>, vector<8x128xf32>, vector<8x128xf32> -> vector<8x1152xf32>
    %246 = tpu.concatenate %244, %245 in 1 : vector<8x2048xf32>, vector<8x1152xf32> -> vector<8x3200xf32>
    %247 = vector.extract_strided_slice %15 {offsets = [112, 0], sizes = [16, 128], strides = [1, 1]} : vector<192x128xf32> to vector<16x128xf32>
    %248 = vector.extract_strided_slice %247 {offsets = [0, 0], sizes = [8, 128], strides = [1, 1]} : vector<16x128xf32> to vector<8x128xf32>
    %249 = vector.extract_strided_slice %247 {offsets = [1, 0], sizes = [8, 128], strides = [1, 1]} : vector<16x128xf32> to vector<8x128xf32>
    %250 = vector.extract_strided_slice %247 {offsets = [2, 0], sizes = [8, 128], strides = [1, 1]} : vector<16x128xf32> to vector<8x128xf32>
    %251 = vector.extract_strided_slice %247 {offsets = [3, 0], sizes = [8, 128], strides = [1, 1]} : vector<16x128xf32> to vector<8x128xf32>
    %252 = vector.extract_strided_slice %247 {offsets = [4, 0], sizes = [8, 128], strides = [1, 1]} : vector<16x128xf32> to vector<8x128xf32>
    %253 = vector.extract_strided_slice %15 {offsets = [128, 0], sizes = [16, 128], strides = [1, 1]} : vector<192x128xf32> to vector<16x128xf32>
    %254 = vector.extract_strided_slice %253 {offsets = [0, 0], sizes = [8, 128], strides = [1, 1]} : vector<16x128xf32> to vector<8x128xf32>
    %255 = vector.extract_strided_slice %253 {offsets = [1, 0], sizes = [8, 128], strides = [1, 1]} : vector<16x128xf32> to vector<8x128xf32>
    %256 = vector.extract_strided_slice %253 {offsets = [2, 0], sizes = [8, 128], strides = [1, 1]} : vector<16x128xf32> to vector<8x128xf32>
    %257 = vector.extract_strided_slice %253 {offsets = [3, 0], sizes = [8, 128], strides = [1, 1]} : vector<16x128xf32> to vector<8x128xf32>
    %258 = vector.extract_strided_slice %253 {offsets = [4, 0], sizes = [8, 128], strides = [1, 1]} : vector<16x128xf32> to vector<8x128xf32>
    %259 = vector.extract_strided_slice %15 {offsets = [144, 0], sizes = [16, 128], strides = [1, 1]} : vector<192x128xf32> to vector<16x128xf32>
    %260 = vector.extract_strided_slice %259 {offsets = [0, 0], sizes = [8, 128], strides = [1, 1]} : vector<16x128xf32> to vector<8x128xf32>
    %261 = vector.extract_strided_slice %259 {offsets = [1, 0], sizes = [8, 128], strides = [1, 1]} : vector<16x128xf32> to vector<8x128xf32>
    %262 = vector.extract_strided_slice %259 {offsets = [2, 0], sizes = [8, 128], strides = [1, 1]} : vector<16x128xf32> to vector<8x128xf32>
    %263 = vector.extract_strided_slice %259 {offsets = [3, 0], sizes = [8, 128], strides = [1, 1]} : vector<16x128xf32> to vector<8x128xf32>
    %264 = vector.extract_strided_slice %259 {offsets = [4, 0], sizes = [8, 128], strides = [1, 1]} : vector<16x128xf32> to vector<8x128xf32>
    %265 = vector.extract_strided_slice %15 {offsets = [160, 0], sizes = [16, 128], strides = [1, 1]} : vector<192x128xf32> to vector<16x128xf32>
    %266 = vector.extract_strided_slice %265 {offsets = [0, 0], sizes = [8, 128], strides = [1, 1]} : vector<16x128xf32> to vector<8x128xf32>
    %267 = vector.extract_strided_slice %265 {offsets = [1, 0], sizes = [8, 128], strides = [1, 1]} : vector<16x128xf32> to vector<8x128xf32>
    %268 = vector.extract_strided_slice %265 {offsets = [2, 0], sizes = [8, 128], strides = [1, 1]} : vector<16x128xf32> to vector<8x128xf32>
    %269 = vector.extract_strided_slice %265 {offsets = [3, 0], sizes = [8, 128], strides = [1, 1]} : vector<16x128xf32> to vector<8x128xf32>
    %270 = vector.extract_strided_slice %265 {offsets = [4, 0], sizes = [8, 128], strides = [1, 1]} : vector<16x128xf32> to vector<8x128xf32>
    %271 = vector.extract_strided_slice %15 {offsets = [176, 0], sizes = [16, 128], strides = [1, 1]} : vector<192x128xf32> to vector<16x128xf32>
    %272 = vector.extract_strided_slice %271 {offsets = [0, 0], sizes = [8, 128], strides = [1, 1]} : vector<16x128xf32> to vector<8x128xf32>
    %273 = vector.extract_strided_slice %271 {offsets = [1, 0], sizes = [8, 128], strides = [1, 1]} : vector<16x128xf32> to vector<8x128xf32>
    %274 = vector.extract_strided_slice %271 {offsets = [2, 0], sizes = [8, 128], strides = [1, 1]} : vector<16x128xf32> to vector<8x128xf32>
    %275 = vector.extract_strided_slice %271 {offsets = [3, 0], sizes = [8, 128], strides = [1, 1]} : vector<16x128xf32> to vector<8x128xf32>
    %276 = vector.extract_strided_slice %271 {offsets = [4, 0], sizes = [8, 128], strides = [1, 1]} : vector<16x128xf32> to vector<8x128xf32>
    %277 = tpu.concatenate %248, %249, %250, %251, %252, %254, %255, %256, %257, %258, %260, %261, %262, %263, %264, %266 in 1 : vector<8x128xf32>, vector<8x128xf32>, vector<8x128xf32>, vector<8x128xf32>, vector<8x128xf32>, vector<8x128xf32>, vector<8x128xf32>, vector<8x128xf32>, vector<8x128xf32>, vector<8x128xf32>, vector<8x128xf32>, vector<8x128xf32>, vector<8x128xf32>, vector<8x128xf32>, vector<8x128xf32>, vector<8x128xf32> -> vector<8x2048xf32>
    %278 = tpu.concatenate %267, %268, %269, %270, %272, %273, %274, %275, %276 in 1 : vector<8x128xf32>, vector<8x128xf32>, vector<8x128xf32>, vector<8x128xf32>, vector<8x128xf32>, vector<8x128xf32>, vector<8x128xf32>, vector<8x128xf32>, vector<8x128xf32> -> vector<8x1152xf32>
    %279 = tpu.concatenate %277, %278 in 1 : vector<8x2048xf32>, vector<8x1152xf32> -> vector<8x3200xf32>
    %280 = tpu.concatenate %48, %81, %114, %147, %180, %213, %246, %279 in 0 : vector<8x3200xf32>, vector<8x3200xf32>, vector<8x3200xf32>, vector<8x3200xf32>, vector<8x3200xf32>, vector<8x3200xf32>, vector<8x3200xf32>, vector<8x3200xf32> -> vector<64x3200xf32>
    %c0_7 = arith.constant 0 : index
    %c0_8 = arith.constant 0 : index
    %281 = vector.load %arg4[%c0_7, %c0_8] : memref<3200x128xf32, #tpu.memory_space<vmem>>, vector<3200x128xf32>
    %cst_9 = arith.constant dense<0.000000e+00> : vector<64x128xf32>
    %282 = tpu.matmul %280, %281, %cst_9 {dimension_numbers = #tpu.dot_dimension_numbers<[1], [0], [0], [1], [0, 0, 1, 1], [], []>} : vector<64x3200xf32>, vector<3200x128xf32>, vector<64x128xf32> -> vector<64x128xf32>
    %283 = vector.extract_strided_slice %282 {offsets = [0, 0], sizes = [8, 128], strides = [1, 1]} : vector<64x128xf32> to vector<8x128xf32>
    %284 = vector.extract_strided_slice %282 {offsets = [8, 0], sizes = [8, 128], strides = [1, 1]} : vector<64x128xf32> to vector<8x128xf32>
    %285 = arith.maximumf %283, %284 : vector<8x128xf32>
    %286 = vector.extract_strided_slice %285 {offsets = [0, 0], sizes = [1, 128], strides = [1, 1]} : vector<8x128xf32> to vector<1x128xf32>
    %287 = vector.extract_strided_slice %285 {offsets = [1, 0], sizes = [1, 128], strides = [1, 1]} : vector<8x128xf32> to vector<1x128xf32>
    %288 = arith.maximumf %286, %287 : vector<1x128xf32>
    %289 = vector.extract_strided_slice %285 {offsets = [2, 0], sizes = [1, 128], strides = [1, 1]} : vector<8x128xf32> to vector<1x128xf32>
    %290 = vector.extract_strided_slice %285 {offsets = [3, 0], sizes = [1, 128], strides = [1, 1]} : vector<8x128xf32> to vector<1x128xf32>
    %291 = arith.maximumf %289, %290 : vector<1x128xf32>
    %292 = vector.extract_strided_slice %285 {offsets = [4, 0], sizes = [1, 128], strides = [1, 1]} : vector<8x128xf32> to vector<1x128xf32>
    %293 = vector.extract_strided_slice %285 {offsets = [5, 0], sizes = [1, 128], strides = [1, 1]} : vector<8x128xf32> to vector<1x128xf32>
    %294 = arith.maximumf %292, %293 : vector<1x128xf32>
    %295 = vector.extract_strided_slice %285 {offsets = [6, 0], sizes = [1, 128], strides = [1, 1]} : vector<8x128xf32> to vector<1x128xf32>
    %296 = vector.extract_strided_slice %285 {offsets = [7, 0], sizes = [1, 128], strides = [1, 1]} : vector<8x128xf32> to vector<1x128xf32>
    %297 = arith.maximumf %295, %296 : vector<1x128xf32>
    %298 = vector.extract_strided_slice %282 {offsets = [16, 0], sizes = [8, 128], strides = [1, 1]} : vector<64x128xf32> to vector<8x128xf32>
    %299 = vector.extract_strided_slice %282 {offsets = [24, 0], sizes = [8, 128], strides = [1, 1]} : vector<64x128xf32> to vector<8x128xf32>
    %300 = arith.maximumf %298, %299 : vector<8x128xf32>
    %301 = vector.extract_strided_slice %300 {offsets = [0, 0], sizes = [1, 128], strides = [1, 1]} : vector<8x128xf32> to vector<1x128xf32>
    %302 = vector.extract_strided_slice %300 {offsets = [1, 0], sizes = [1, 128], strides = [1, 1]} : vector<8x128xf32> to vector<1x128xf32>
    %303 = arith.maximumf %301, %302 : vector<1x128xf32>
    %304 = vector.extract_strided_slice %300 {offsets = [2, 0], sizes = [1, 128], strides = [1, 1]} : vector<8x128xf32> to vector<1x128xf32>
    %305 = vector.extract_strided_slice %300 {offsets = [3, 0], sizes = [1, 128], strides = [1, 1]} : vector<8x128xf32> to vector<1x128xf32>
    %306 = arith.maximumf %304, %305 : vector<1x128xf32>
    %307 = vector.extract_strided_slice %300 {offsets = [4, 0], sizes = [1, 128], strides = [1, 1]} : vector<8x128xf32> to vector<1x128xf32>
    %308 = vector.extract_strided_slice %300 {offsets = [5, 0], sizes = [1, 128], strides = [1, 1]} : vector<8x128xf32> to vector<1x128xf32>
    %309 = arith.maximumf %307, %308 : vector<1x128xf32>
    %310 = vector.extract_strided_slice %300 {offsets = [6, 0], sizes = [1, 128], strides = [1, 1]} : vector<8x128xf32> to vector<1x128xf32>
    %311 = vector.extract_strided_slice %300 {offsets = [7, 0], sizes = [1, 128], strides = [1, 1]} : vector<8x128xf32> to vector<1x128xf32>
    %312 = arith.maximumf %310, %311 : vector<1x128xf32>
    %313 = vector.extract_strided_slice %282 {offsets = [32, 0], sizes = [8, 128], strides = [1, 1]} : vector<64x128xf32> to vector<8x128xf32>
    %314 = vector.extract_strided_slice %282 {offsets = [40, 0], sizes = [8, 128], strides = [1, 1]} : vector<64x128xf32> to vector<8x128xf32>
    %315 = arith.maximumf %313, %314 : vector<8x128xf32>
    %316 = vector.extract_strided_slice %315 {offsets = [0, 0], sizes = [1, 128], strides = [1, 1]} : vector<8x128xf32> to vector<1x128xf32>
    %317 = vector.extract_strided_slice %315 {offsets = [1, 0], sizes = [1, 128], strides = [1, 1]} : vector<8x128xf32> to vector<1x128xf32>
    %318 = arith.maximumf %316, %317 : vector<1x128xf32>
    %319 = vector.extract_strided_slice %315 {offsets = [2, 0], sizes = [1, 128], strides = [1, 1]} : vector<8x128xf32> to vector<1x128xf32>
    %320 = vector.extract_strided_slice %315 {offsets = [3, 0], sizes = [1, 128], strides = [1, 1]} : vector<8x128xf32> to vector<1x128xf32>
    %321 = arith.maximumf %319, %320 : vector<1x128xf32>
    %322 = vector.extract_strided_slice %315 {offsets = [4, 0], sizes = [1, 128], strides = [1, 1]} : vector<8x128xf32> to vector<1x128xf32>
    %323 = vector.extract_strided_slice %315 {offsets = [5, 0], sizes = [1, 128], strides = [1, 1]} : vector<8x128xf32> to vector<1x128xf32>
    %324 = arith.maximumf %322, %323 : vector<1x128xf32>
    %325 = vector.extract_strided_slice %315 {offsets = [6, 0], sizes = [1, 128], strides = [1, 1]} : vector<8x128xf32> to vector<1x128xf32>
    %326 = vector.extract_strided_slice %315 {offsets = [7, 0], sizes = [1, 128], strides = [1, 1]} : vector<8x128xf32> to vector<1x128xf32>
    %327 = arith.maximumf %325, %326 : vector<1x128xf32>
    %328 = vector.extract_strided_slice %282 {offsets = [48, 0], sizes = [8, 128], strides = [1, 1]} : vector<64x128xf32> to vector<8x128xf32>
    %329 = vector.extract_strided_slice %282 {offsets = [56, 0], sizes = [8, 128], strides = [1, 1]} : vector<64x128xf32> to vector<8x128xf32>
    %330 = arith.maximumf %328, %329 : vector<8x128xf32>
    %331 = vector.extract_strided_slice %330 {offsets = [0, 0], sizes = [1, 128], strides = [1, 1]} : vector<8x128xf32> to vector<1x128xf32>
    %332 = vector.extract_strided_slice %330 {offsets = [1, 0], sizes = [1, 128], strides = [1, 1]} : vector<8x128xf32> to vector<1x128xf32>
    %333 = arith.maximumf %331, %332 : vector<1x128xf32>
    %334 = vector.extract_strided_slice %330 {offsets = [2, 0], sizes = [1, 128], strides = [1, 1]} : vector<8x128xf32> to vector<1x128xf32>
    %335 = vector.extract_strided_slice %330 {offsets = [3, 0], sizes = [1, 128], strides = [1, 1]} : vector<8x128xf32> to vector<1x128xf32>
    %336 = arith.maximumf %334, %335 : vector<1x128xf32>
    %337 = vector.extract_strided_slice %330 {offsets = [4, 0], sizes = [1, 128], strides = [1, 1]} : vector<8x128xf32> to vector<1x128xf32>
    %338 = vector.extract_strided_slice %330 {offsets = [5, 0], sizes = [1, 128], strides = [1, 1]} : vector<8x128xf32> to vector<1x128xf32>
    %339 = arith.maximumf %337, %338 : vector<1x128xf32>
    %340 = vector.extract_strided_slice %330 {offsets = [6, 0], sizes = [1, 128], strides = [1, 1]} : vector<8x128xf32> to vector<1x128xf32>
    %341 = vector.extract_strided_slice %330 {offsets = [7, 0], sizes = [1, 128], strides = [1, 1]} : vector<8x128xf32> to vector<1x128xf32>
    %342 = arith.maximumf %340, %341 : vector<1x128xf32>
    %343 = tpu.concatenate %288, %291, %294, %297, %303, %306, %309, %312, %318, %321, %324, %327, %333, %336, %339, %342 in 1 : vector<1x128xf32>, vector<1x128xf32>, vector<1x128xf32>, vector<1x128xf32>, vector<1x128xf32>, vector<1x128xf32>, vector<1x128xf32>, vector<1x128xf32>, vector<1x128xf32>, vector<1x128xf32>, vector<1x128xf32>, vector<1x128xf32>, vector<1x128xf32>, vector<1x128xf32>, vector<1x128xf32>, vector<1x128xf32> -> vector<1x2048xf32>
    %c0_10 = arith.constant 0 : index
    %c0_11 = arith.constant 0 : index
    %344 = vector.load %arg5[%c0_10, %c0_11] : memref<1x2048xf32, #tpu.memory_space<vmem>>, vector<1x2048xf32>
    %345 = arith.addf %343, %344 : vector<1x2048xf32>
    %cst_12 = arith.constant 0.000000e+00 : f32
    %346 = vector.broadcast %cst_12 : f32 to vector<1x2048xf32>
    %347 = arith.maximumf %345, %346 : vector<1x2048xf32>
    %c0_13 = arith.constant 0 : index
    %c0_14 = arith.constant 0 : index
    %348 = vector.load %arg6[%c0_13, %c0_14] : memref<2048x128xf32, #tpu.memory_space<vmem>>, vector<2048x128xf32>
    %cst_15 = arith.constant dense<0.000000e+00> : vector<1x128xf32>
    %349 = tpu.matmul %347, %348, %cst_15 {dimension_numbers = #tpu.dot_dimension_numbers<[1], [0], [0], [1], [0, 0, 1, 1], [], []>} : vector<1x2048xf32>, vector<2048x128xf32>, vector<1x128xf32> -> vector<1x128xf32>
    %c0_16 = arith.constant 0 : index
    %c0_17 = arith.constant 0 : index
    %350 = vector.load %arg7[%c0_16, %c0_17] : memref<1x128xf32, #tpu.memory_space<vmem>>, vector<1x128xf32>
    %351 = arith.addf %349, %350 : vector<1x128xf32>
    %cst_18 = arith.constant 0.000000e+00 : f32
    %352 = vector.broadcast %cst_18 : f32 to vector<1x128xf32>
    %353 = arith.maximumf %351, %352 : vector<1x128xf32>
    %c0_19 = arith.constant 0 : index
    %c0_20 = arith.constant 0 : index
    %354 = vector.load %arg8[%c0_19, %c0_20] : memref<128x128xf32, #tpu.memory_space<vmem>>, vector<128x128xf32>
    %cst_21 = arith.constant dense<0.000000e+00> : vector<1x128xf32>
    %355 = tpu.matmul %353, %354, %cst_21 {dimension_numbers = #tpu.dot_dimension_numbers<[1], [0], [0], [1], [0, 0, 1, 1], [], []>} : vector<1x128xf32>, vector<128x128xf32>, vector<1x128xf32> -> vector<1x128xf32>
    %c0_22 = arith.constant 0 : index
    %c0_23 = arith.constant 0 : index
    %356 = vector.load %arg9[%c0_22, %c0_23] : memref<1x128xf32, #tpu.memory_space<vmem>>, vector<1x128xf32>
    %357 = arith.addf %355, %356 : vector<1x128xf32>
    %358 = tpu.iota {dimensions = array<i32: 1>} : vector<1x128xi32>
    %c10_i32 = arith.constant 10 : i32
    %359 = vector.broadcast %c10_i32 : i32 to vector<1x128xi32>
    %360 = arith.cmpi slt, %358, %359 : vector<1x128xi32>
    %cst_24 = arith.constant -1.000000e+30 : f32
    %361 = vector.broadcast %cst_24 : f32 to vector<1x128xf32>
    %362 = arith.select %360, %357, %361 : vector<1x128xi1>, vector<1x128xf32>
    %cst_25 = arith.constant dense<0xFF800000> : vector<1xf32>
    %363 = vector.multi_reduction <maximumf>, %362, %cst_25 [1] : vector<1x128xf32> to vector<1xf32>
    %364 = vector.shape_cast %363 : vector<1xf32> to vector<1x1xf32>
    %365 = vector.broadcast %364 : vector<1x1xf32> to vector<1x128xf32>
    %366 = arith.subf %362, %365 : vector<1x128xf32>
    %367 = math.exp %366 : vector<1x128xf32>
    %cst_26 = arith.constant 0.000000e+00 : f32
    %368 = vector.broadcast %cst_26 : f32 to vector<1x128xf32>
    %369 = arith.select %360, %367, %368 : vector<1x128xi1>, vector<1x128xf32>
    %cst_27 = arith.constant dense<0.000000e+00> : vector<1xf32>
    %370 = vector.multi_reduction <add>, %369, %cst_27 [1] : vector<1x128xf32> to vector<1xf32>
    %371 = vector.shape_cast %370 : vector<1xf32> to vector<1x1xf32>
    %372 = math.log %371 : vector<1x1xf32>
    %373 = vector.broadcast %364 : vector<1x1xf32> to vector<1x128xf32>
    %374 = arith.subf %362, %373 : vector<1x128xf32>
    %375 = vector.broadcast %372 : vector<1x1xf32> to vector<1x128xf32>
    %376 = arith.subf %374, %375 : vector<1x128xf32>
    %cst_28 = arith.constant 0.000000e+00 : f32
    %377 = vector.broadcast %cst_28 : f32 to vector<1x128xf32>
    %378 = arith.select %360, %376, %377 : vector<1x128xi1>, vector<1x128xf32>
    %c0_29 = arith.constant 0 : index
    %c0_30 = arith.constant 0 : index
    %c0_31 = arith.constant 0 : index
    %379 = vector.load %arg10[%c0_29, %c0_30, %c0_31] : memref<1x1x128xf32, #tpu.memory_space<vmem>>, vector<1x1x128xf32>
    %380 = vector.shape_cast %379 : vector<1x1x128xf32> to vector<1x128xf32>
    %381 = vector.shape_cast %378 : vector<1x128xf32> to vector<1x1x128xf32>
    tpu.vector_store %arg10[%c0_29, %c0_30, %c0_31], %381 {strides = array<i32>} : memref<1x1x128xf32, #tpu.memory_space<vmem>>, vector<1x1x128xf32>,
    return
  }
  func.func @transform_0(%arg0: i32) -> (i32, i32, i32) {
    %c0_i32 = arith.constant 0 : i32
    %c0_i32_0 = arith.constant 0 : i32
    %c0_i32_1 = arith.constant 0 : i32
    return %arg0, %c0_i32, %c0_i32_0 : i32, i32, i32
  }
  func.func @transform_1(%arg0: i32) -> (i32, i32) {
    %c0_i32 = arith.constant 0 : i32
    %c0_i32_0 = arith.constant 0 : i32
    %c0_i32_1 = arith.constant 0 : i32
    return %c0_i32, %c0_i32_0 : i32, i32
  }
  func.func @transform_2(%arg0: i32) -> (i32, i32) {
    %c0_i32 = arith.constant 0 : i32
    %c0_i32_0 = arith.constant 0 : i32
    %c0_i32_1 = arith.constant 0 : i32
    return %c0_i32, %c0_i32_0 : i32, i32
  }
  func.func @transform_3(%arg0: i32) -> (i32, i32) {
    %c0_i32 = arith.constant 0 : i32
    %c0_i32_0 = arith.constant 0 : i32
    %c0_i32_1 = arith.constant 0 : i32
    return %c0_i32, %c0_i32_0 : i32, i32
  }
  func.func @transform_4(%arg0: i32) -> (i32, i32) {
    %c0_i32 = arith.constant 0 : i32
    %c0_i32_0 = arith.constant 0 : i32
    %c0_i32_1 = arith.constant 0 : i32
    return %c0_i32, %c0_i32_0 : i32, i32
  }
  func.func @transform_5(%arg0: i32) -> (i32, i32) {
    %c0_i32 = arith.constant 0 : i32
    %c0_i32_0 = arith.constant 0 : i32
    %c0_i32_1 = arith.constant 0 : i32
    return %c0_i32, %c0_i32_0 : i32, i32
  }
  func.func @transform_6(%arg0: i32) -> (i32, i32) {
    %c0_i32 = arith.constant 0 : i32
    %c0_i32_0 = arith.constant 0 : i32
    %c0_i32_1 = arith.constant 0 : i32
    return %c0_i32, %c0_i32_0 : i32, i32
  }
  func.func @transform_7(%arg0: i32) -> (i32, i32) {
    %c0_i32 = arith.constant 0 : i32
    %c0_i32_0 = arith.constant 0 : i32
    %c0_i32_1 = arith.constant 0 : i32
    return %c0_i32, %c0_i32_0 : i32, i32
  }
  func.func @transform_8(%arg0: i32) -> (i32, i32) {
    %c0_i32 = arith.constant 0 : i32
    %c0_i32_0 = arith.constant 0 : i32
    %c0_i32_1 = arith.constant 0 : i32
    return %c0_i32, %c0_i32_0 : i32, i32
  }
  func.func @transform_9(%arg0: i32) -> (i32, i32, i32) {
    %c0_i32 = arith.constant 0 : i32
    %c0_i32_0 = arith.constant 0 : i32
    %c0_i32_1 = arith.constant 0 : i32
    return %arg0, %c0_i32, %c0_i32_0 : i32, i32, i32
  }
}

</mosaic_0001>

<bundles_post_ra>
// kernel: net_forward.1
= control target key start
LH: loop header
LB: loop body
LE: loop exit
PB: predicated region body
PF: predicated region fallthrough
CT: control target
= control target key end

     0   :  { %14 = vsyncpa [#allocation3], 0  ;;  %s8897_s0 = inlined_call_operand.vmem [shape: f32[2,192,128], index: 0, kind: input, shape index: {}]   ;;  %s8898_s1 = inlined_call_operand.vmem [shape: f32[128,512], index: 1, kind: input, shape index: {}]   ;;  %s8899_s2 = inlined_call_operand.vmem [shape: f32[1,128], index: 2, kind: input, shape index: {}]   ;;  %s8900_s3 = inlined_call_operand.vmem [shape: f32[3200,128], index: 3, kind: input, shape index: {}]   ;;  %s8901_s4 = inlined_call_operand.vmem [shape: f32[1,2048], index: 4, kind: input, shape index: {}]   ;;  %s8902_s5 = inlined_call_operand.vmem [shape: f32[2048,128], index: 5, kind: input, shape index: {}]   ;;  %s8903_s6 = inlined_call_operand.vmem [shape: f32[1,128], index: 6, kind: input, shape index: {}]   ;;  %s8904_s7 = inlined_call_operand.vmem [shape: f32[128,128], index: 7, kind: input, shape index: {}]   ;;  %s8905_s8 = inlined_call_operand.vmem [shape: f32[1,128], index: 8, kind: input, shape index: {}]   ;;  %s8906_s9 = inlined_call_operand.hbm [shape: f32[2,1,128], index: 9, kind: output, shape index: {}]  }
   0x1   :  { %16 = vsyncpa [#allocation3 + $0x1], 0  ;;  %s5485_s30 = smov 0   ;;  %s5487_s10 = smov 0  }
   0x2   :  { %s5489_s11 = smov 0   ;;  %s5491_s12 = smov 0  }
   0x3 LB: > { %s5506_s13 = sadd.s32 4294967295, %s5430_s12   ;;  %s4233_s14 = sadd.s32 4294967294, %s5430_s12   ;;  %s5430_s12 = sphi %s5491_s12, %s8985_s12   ;;  %s5426_s11 = sphi %s5489_s11, %s8984_s11   ;;  %s5422_s10 = sphi %s5487_s10, %s8983_s10   ;;  %s5418_s30 = sphi %s5485_s30, %s8982_s30  }
   0x4   : > { %s5510_s15 = sadd.s32 1, %s5430_s12   ;;  %s223_s16 = sadd.s32 1, %s5426_s11 }
   0x5   : > { %s220_s17 = ssub.s32 %s5430_s12, %s5510_s15  ;;  %p233_p0 = scmp.ne.s32.totalorder %s5426_s11, %s5422_s10 }
   0x6   : > { %p221_p1 = scmp.eq.s32.totalorder %s220_s17, 0  ;;  %p234_p2 = scmp.eq.s32.totalorder %s5506_s13, 1 }
   0x7   : > { %p239_p3 = scmp.ne.s32.totalorder %s5422_s10, %s5418_s30  ;;  %p240_p4 = scmp.eq.s32.totalorder %s4233_s14, 1 }
   0x8   : > { %s5521_s18 = scalar_select %p221_p1, %s5426_s11, %s223_s16  }
   0x9   : > { %p5523_p5 = por %p234_p2, %p233_p0  ;;  %p5527_p6 = por %p240_p4, %p239_p3 }
   0xa   : > { %p4236_p7 = scmp.ge.s32.totalorder %s5430_s12, 1  ;;  %p290_p8 = scmp.lt.s32.totalorder %s5430_s12, 3 }
   0xc   : > { %p291_p9 = pnand %p4236_p7, %p290_p8 }
   0xe   : > { %294 = sbr.rel (%p291_p9) target bundleno = 1593 (0x639), region = 56 }
  0x13   : > { %v415_v0 = vld [vmem:[%s8898_s1 + $0x1e8] sm:$0xff]  ;;  %v417_v1 = vld [vmem:[%s8898_s1 + $0x1f8] sm:$0xff]  ;;  %v414_v2 = vld [vmem:[%s8898_s1 + $0x1e0] sm:$0xff]  ;;  %p325_p10 = scmp.lt.s32.totalorder %s5506_s13, 1  ;;  %vm965_vm0 = vcmask 1046528   ;;  %vm975_vm1 = vcmask 1044480  }
  0x14   : > { %418 = vmatprep.subr.mxu0 %v415_v0  ;;  %627 = vmatprep.subr.mxu1 %v417_v1  ;;  %v416_v3 = vld [vmem:[%s8898_s1 + $0x1f0] sm:$0xff]  ;;  %v411_v4 = vld [vmem:[%s8898_s1 + $0x1c8] sm:$0xff]  ;;  %v413_v5 = vld [vmem:[%s8898_s1 + $0x1d8] sm:$0xff]  ;;  %v8907_v1 = vmov 0.0   ;;  %vm970_vm2 = vcmask 1045504   ;;  %vm980_vm3 = vcmask 1043456  }
  0x15   : > { %419 = vmatpush1.msra.mxu0 %v414_v2  ;;  %628 = vmatpush1.msra.mxu1 %v416_v3  ;;  %v410_v6 = vld [vmem:[%s8898_s1 + $0x1c0] sm:$0xff]  ;;  %v412_v7 = vld [vmem:[%s8898_s1 + $0x1d0] sm:$0xff]  ;;  %v407_v8 = vld [vmem:[%s8898_s1 + $0x1a8] sm:$0xff]  ;;  %s5675_s29 = scalar_select %p325_p10, %s5506_s13, 1  ;;  %vm5433_vm4 = vmmov 0   ;;  %vm4149_vm6 = vcmask 1040384  }
  0x16   : > { %420 = vmatprep.subr.mxu0 %v411_v4  ;;  %629 = vmatprep.subr.mxu1 %v413_v5  ;;  %v409_v9 = vld [vmem:[%s8898_s1 + $0x1b8] sm:$0xff]  ;;  %v406_v10 = vld [vmem:[%s8898_s1 + $0x1a0] sm:$0xff]  ;;  %v408_v11 = vld [vmem:[%s8898_s1 + $0x1b0] sm:$0xff]  ;;  %s4247_s25 = sshll.u32 %s5506_s13, 4  ;;  %s5434_s22 = smov [#allocation2]  }
  0x17   : > { %421 = vmatpush1.msra.mxu0 %v410_v6  ;;  %630 = vmatpush1.msra.mxu1 %v412_v7  ;;  %v403_v12 = vld [vmem:[%s8898_s1 + $0x188] sm:$0xff]  ;;  %v405_v13 = vld [vmem:[%s8898_s1 + $0x198] sm:$0xff]  ;;  %v402_v14 = vld [vmem:[%s8898_s1 + $0x180] sm:$0xff]  ;;  %s5322_s23 = smul.u32 192, %s5675_s29  ;;  %s8861_s16 = scalar_lea.hbm %s8906_s9, %s4247_s25 }
  0x18   : > { %422 = vmatprep.subr.mxu0 %v407_v8  ;;  %631 = vmatprep.subr.mxu1 %v409_v9  ;;  %v404_v15 = vld [vmem:[%s8898_s1 + $0x190] sm:$0xff]  ;;  %v399_v16 = vld [vmem:[%s8898_s1 + $0x168] sm:$0xff]  ;;  %v401_v17 = vld [vmem:[%s8898_s1 + $0x178] sm:$0xff]  ;;  %s5374_s13 = sshll.u32 %s5434_s22, 4  ;;  %s5375_s13 = int_to_ptr.vmem [resolvable:$false] %s5374_s13 }
  0x19   : > { %423 = vmatpush1.msra.mxu0 %v406_v10  ;;  %632 = vmatpush1.msra.mxu1 %v408_v11  ;;  %v398_v18 = vld [vmem:[%s8898_s1 + $0x160] sm:$0xff]  ;;  %v400_v19 = vld [vmem:[%s8898_s1 + $0x170] sm:$0xff]  ;;  %v395_v20 = vld [vmem:[%s8898_s1 + $0x148] sm:$0xff]  ;;  %s5729_s17 = scalar_lea.vmem %s8897_s0, %s5322_s23  ;;  %s5376_s24 = scalar_lea.vmem %s5375_s13, 32 }
  0x1a   : > { %424 = vmatprep.subr.mxu0 %v403_v12  ;;  %633 = vmatprep.subr.mxu1 %v405_v13  ;;  %v397_v21 = vld [vmem:[%s8898_s1 + $0x158] sm:$0xff]  ;;  %v394_v22 = vld [vmem:[%s8898_s1 + $0x140] sm:$0xff]  ;;  %v396_v23 = vld [vmem:[%s8898_s1 + $0x150] sm:$0xff] }
  0x1b   : > { %425 = vmatpush1.msra.mxu0 %v402_v14  ;;  %634 = vmatpush1.msra.mxu1 %v404_v15  ;;  %v391_v24 = vld [vmem:[%s8898_s1 + $0x128] sm:$0xff]  ;;  %v393_v25 = vld [vmem:[%s8898_s1 + $0x138] sm:$0xff]  ;;  %v390_v26 = vld [vmem:[%s8898_s1 + $0x120] sm:$0xff] }
  0x1c   : > { %426 = vmatprep.subr.mxu0 %v399_v16  ;;  %635 = vmatprep.subr.mxu1 %v401_v17  ;;  %v392_v27 = vld [vmem:[%s8898_s1 + $0x130] sm:$0xff]  ;;  %v387_v28 = vld [vmem:[%s8898_s1 + $0x108] sm:$0xff]  ;;  %v389_v29 = vld [vmem:[%s8898_s1 + $0x118] sm:$0xff] }
  0x1d   : > { %427 = vmatpush1.msra.mxu0 %v398_v18  ;;  %636 = vmatpush1.msra.mxu1 %v400_v19  ;;  %v386_v30 = vld [vmem:[%s8898_s1 + $0x100] sm:$0xff]  ;;  %v388_v31 = vld [vmem:[%s8898_s1 + $0x110] sm:$0xff]  ;;  %v383_v32 = vld [vmem:[%s8898_s1 + $0xe8] sm:$0xff] }
  0x1e   : > { %428 = vmatprep.subr.mxu0 %v395_v20  ;;  %637 = vmatprep.subr.mxu1 %v397_v21  ;;  %v385_v33 = vld [vmem:[%s8898_s1 + $0xf8] sm:$0xff]  ;;  %v382_v34 = vld [vmem:[%s8898_s1 + $0xe0] sm:$0xff]  ;;  %v384_v35 = vld [vmem:[%s8898_s1 + $0xf0] sm:$0xff] }
  0x1f   : > { %429 = vmatpush1.msra.mxu0 %v394_v22  ;;  %638 = vmatpush1.msra.mxu1 %v396_v23  ;;  %v379_v36 = vld [vmem:[%s8898_s1 + $0xc8] sm:$0xff]  ;;  %v381_v37 = vld [vmem:[%s8898_s1 + $0xd8] sm:$0xff]  ;;  %v378_v38 = vld [vmem:[%s8898_s1 + $0xc0] sm:$0xff] }
  0x20   : > { %430 = vmatprep.subr.mxu0 %v391_v24  ;;  %639 = vmatprep.subr.mxu1 %v393_v25  ;;  %v380_v39 = vld [vmem:[%s8898_s1 + $0xd0] sm:$0xff]  ;;  %v375_v40 = vld [vmem:[%s8898_s1 + $0xa8] sm:$0xff]  ;;  %v377_v41 = vld [vmem:[%s8898_s1 + $0xb8] sm:$0xff] }
  0x21   : > { %431 = vmatpush1.msra.mxu0 %v390_v26  ;;  %640 = vmatpush1.msra.mxu1 %v392_v27  ;;  %v374_v42 = vld [vmem:[%s8898_s1 + $0xa0] sm:$0xff]  ;;  %v376_v43 = vld [vmem:[%s8898_s1 + $0xb0] sm:$0xff]  ;;  %v371_v44 = vld [vmem:[%s8898_s1 + $0x88] sm:$0xff] }
  0x22   : > { %432 = vmatprep.subr.mxu0 %v387_v28  ;;  %641 = vmatprep.subr.mxu1 %v389_v29  ;;  %v373_v45 = vld [vmem:[%s8898_s1 + $0x98] sm:$0xff]  ;;  %v370_v46 = vld [vmem:[%s8898_s1 + $0x80] sm:$0xff]  ;;  %v372_v47 = vld [vmem:[%s8898_s1 + $0x90] sm:$0xff] }
  0x23   : > { %433 = vmatpush1.msra.mxu0 %v386_v30  ;;  %642 = vmatpush1.msra.mxu1 %v388_v31  ;;  %v367_v48 = vld [vmem:[%s8898_s1 + $0x68] sm:$0xff]  ;;  %v369_v49 = vld [vmem:[%s8898_s1 + $0x78] sm:$0xff]  ;;  %v366_v50 = vld [vmem:[%s8898_s1 + $0x60] sm:$0xff] }
  0x24   : > { %434 = vmatprep.subr.mxu0 %v383_v32  ;;  %643 = vmatprep.subr.mxu1 %v385_v33  ;;  %v368_v51 = vld [vmem:[%s8898_s1 + $0x70] sm:$0xff]  ;;  %v363_v52 = vld [vmem:[%s8898_s1 + $0x48] sm:$0xff]  ;;  %v365_v53 = vld [vmem:[%s8898_s1 + $0x58] sm:$0xff] }
  0x25   : > { %435 = vmatpush1.msra.mxu0 %v382_v34  ;;  %644 = vmatpush1.msra.mxu1 %v384_v35  ;;  %v362_v54 = vld [vmem:[%s8898_s1 + $0x40] sm:$0xff]  ;;  %v364_v55 = vld [vmem:[%s8898_s1 + $0x50] sm:$0xff]  ;;  %v359_v56 = vld [vmem:[%s8898_s1 + $0x28] sm:$0xff] }
  0x26   : > { %436 = vmatprep.subr.mxu0 %v379_v36  ;;  %645 = vmatprep.subr.mxu1 %v381_v37  ;;  %v361_v57 = vld [vmem:[%s8898_s1 + $0x38] sm:$0xff]  ;;  %v358_v58 = vld [vmem:[%s8898_s1 + $0x20] sm:$0xff]  ;;  %v360_v59 = vld [vmem:[%s8898_s1 + $0x30] sm:$0xff] }
  0x27   : > { %437 = vmatpush1.msra.mxu0 %v378_v38  ;;  %646 = vmatpush1.msra.mxu1 %v380_v39  ;;  %v355_v60 = vld [vmem:[%s8898_s1 + $0x8] sm:$0xff]  ;;  %v357_v61 = vld [vmem:[%s8898_s1 + $0x18] sm:$0xff]  ;;  %v354_v62 = vld [vmem:[%s8898_s1] sm:$0xff] }
  0x28   : > { %438 = vmatprep.subr.mxu0 %v375_v40  ;;  %647 = vmatprep.subr.mxu1 %v377_v41  ;;  %v356_v63 = vld [vmem:[%s8898_s1 + $0x10] sm:$0xff]  ;;  %v330_v0 = vld [vmem:[%s5729_s17] sm:$0xff]  ;;  %v1342_v2 = vld [vmem:[%s8900_s3 + $0xf8] sm:$0xff] }
  0x29   : > { %439 = vmatpush1.msra.mxu0 %v374_v42  ;;  %648 = vmatpush1.msra.mxu1 %v376_v43  ;;  %v1374_v3 = vld [vmem:[%s8900_s3 + $0x1f8] sm:$0xff]  ;;  %v331_v6 = vld [vmem:[%s5729_s17 + $0x8] sm:$0xff]  ;;  %v1341_v7 = vld [vmem:[%s8900_s3 + $0xf0] sm:$0xff] }
  0x2a   : > { %440 = vmatprep.subr.mxu0 %v371_v44  ;;  %649 = vmatprep.subr.mxu1 %v373_v45  ;;  %v1326_v4 = vld [vmem:[%s8900_s3 + $0x78] sm:$0xff]  ;;  %v1373_v8 = vld [vmem:[%s8900_s3 + $0x1f0] sm:$0xff]  ;;  %v1340_v12 = vld [vmem:[%s8900_s3 + $0xe8] sm:$0xff] }
  0x2b   : > { %441 = vmatpush1.msra.mxu0 %v370_v46  ;;  %650 = vmatpush1.msra.mxu1 %v372_v47  ;;  %v1358_v5 = vld [vmem:[%s8900_s3 + $0x178] sm:$0xff]  ;;  %v1325_v9 = vld [vmem:[%s8900_s3 + $0x70] sm:$0xff]  ;;  %v1372_v13 = vld [vmem:[%s8900_s3 + $0x1e8] sm:$0xff] }
  0x2c   : > { %442 = vmatprep.subr.mxu0 %v367_v48  ;;  %651 = vmatprep.subr.mxu1 %v369_v49  ;;  %v1357_v10 = vld [vmem:[%s8900_s3 + $0x170] sm:$0xff]  ;;  %v1324_v14 = vld [vmem:[%s8900_s3 + $0x68] sm:$0xff]  ;;  %v333_v16 = vld [vmem:[%s5729_s17 + $0x18] sm:$0xff] }
  0x2d   : > { %443 = vmatpush1.msra.mxu0 %v366_v50  ;;  %652 = vmatpush1.msra.mxu1 %v368_v51  ;;  %v332_v11 = vld [vmem:[%s5729_s17 + $0x10] sm:$0xff]  ;;  %v1356_v15 = vld [vmem:[%s8900_s3 + $0x168] sm:$0xff]  ;;  %v1339_v17 = vld [vmem:[%s8900_s3 + $0xe0] sm:$0xff] }
  0x2e   : > { %444 = vmatprep.subr.mxu0 %v363_v52  ;;  %653 = vmatprep.subr.mxu1 %v365_v53  ;;  %v1371_v18 = vld [vmem:[%s8900_s3 + $0x1e0] sm:$0xff]  ;;  %v1338_v22 = vld [vmem:[%s8900_s3 + $0xd8] sm:$0xff]  ;;  %v335_v26 = vld [vmem:[%s5729_s17 + $0x28] sm:$0xff] }
  0x2f   : > { %445 = vmatpush1.msra.mxu0 %v362_v54  ;;  %654 = vmatpush1.msra.mxu1 %v364_v55  ;;  %v1323_v19 = vld [vmem:[%s8900_s3 + $0x60] sm:$0xff]  ;;  %v1370_v23 = vld [vmem:[%s8900_s3 + $0x1d8] sm:$0xff]  ;;  %v1337_v27 = vld [vmem:[%s8900_s3 + $0xd0] sm:$0xff] }
  0x30   : > { %446 = vmatprep.subr.mxu0 %v359_v56  ;;  %655 = vmatprep.subr.mxu1 %v361_v57  ;;  %v1355_v20 = vld [vmem:[%s8900_s3 + $0x160] sm:$0xff]  ;;  %v1322_v24 = vld [vmem:[%s8900_s3 + $0x58] sm:$0xff]  ;;  %v1369_v28 = vld [vmem:[%s8900_s3 + $0x1d0] sm:$0xff] }
  0x31   : > { %447 = vmatpush1.msra.mxu0 %v358_v58  ;;  %656 = vmatpush1.msra.mxu1 %v360_v59  ;;  %v334_v21 = vld [vmem:[%s5729_s17 + $0x20] sm:$0xff]  ;;  %v1354_v25 = vld [vmem:[%s8900_s3 + $0x158] sm:$0xff]  ;;  %v1321_v29 = vld [vmem:[%s8900_s3 + $0x50] sm:$0xff] }
  0x32   : > { %448 = vmatprep.subr.mxu0 %v355_v60  ;;  %657 = vmatprep.subr.mxu1 %v357_v61  ;;  %v1353_v30 = vld [vmem:[%s8900_s3 + $0x150] sm:$0xff]  ;;  %v1336_v32 = vld [vmem:[%s8900_s3 + $0xc8] sm:$0xff]  ;;  %v337_v35 = vld [vmem:[%s5729_s17 + $0x38] sm:$0xff] }
  0x33   : > { %449 = vmatpush1.msra.mxu0 %v354_v62  ;;  %482 = vmatprep.mubr.f32.mxu0 %v8907_v1  ;;  %v336_v31 = vld [vmem:[%s5729_s17 + $0x30] sm:$0xff]  ;;  %v1368_v33 = vld [vmem:[%s8900_s3 + $0x1c8] sm:$0xff]  ;;  %v1335_v36 = vld [vmem:[%s8900_s3 + $0xc0] sm:$0xff] }
  0x34   : > { %658 = vmatpush1.msra.mxu1 %v356_v63  ;;  %691 = vmatprep.mubr.f32.mxu1 %v8907_v1  ;;  %v1320_v34 = vld [vmem:[%s8900_s3 + $0x48] sm:$0xff]  ;;  %v1319_v37 = vld [vmem:[%s8900_s3 + $0x40] sm:$0xff]  ;;  %v1334_v39 = vld [vmem:[%s8900_s3 + $0xb8] sm:$0xff] }
  0x35   : > { %483 = vmatmul.mubr.f32.vlgmr.msra.gmra.mxu0 %v330_v0  ;;  %692 = vmatmul.mubr.f32.vlgmr.msra.gmra.mxu1 %v330_v0  ;;  %v338_v38 = vld [vmem:[%s5729_s17 + $0x40] sm:$0xff]  ;;  %v1318_v40 = vld [vmem:[%s8900_s3 + $0x38] sm:$0xff]  ;;  %v339_v41 = vld [vmem:[%s5729_s17 + $0x48] sm:$0xff] }
  0x36   : > { %488 = vmatprep.mubr.f32.mxu0 %v8907_v1  ;;  %697 = vmatprep.mubr.f32.mxu1 %v8907_v1  ;;  %v340_v42 = vld [vmem:[%s5729_s17 + $0x50] sm:$0xff]  ;;  %v341_v43 = vld [vmem:[%s5729_s17 + $0x58] sm:$0xff]  ;;  %v342_v44 = vld [vmem:[%s5729_s17 + $0x60] sm:$0xff] }
  0x37   : > { %4250 = vmatprep.subr.mxu0 %v1342_v2  ;;  %4306 = vmatprep.subr.mxu1 %v1374_v3  ;;  %v343_v45 = vld [vmem:[%s5729_s17 + $0x68] sm:$0xff]  ;;  %v344_v46 = vld [vmem:[%s5729_s17 + $0x70] sm:$0xff]  ;;  %v345_v47 = vld [vmem:[%s5729_s17 + $0x78] sm:$0xff] }
  0x38   : > { %4251 = vmatpush3.msra.mxu0 %v1326_v4  ;;  %4307 = vmatpush3.msra.mxu1 %v1358_v5  ;;  %v346_v48 = vld [vmem:[%s5729_s17 + $0x80] sm:$0xff]  ;;  %v1352_v49 = vld [vmem:[%s8900_s3 + $0x148] sm:$0xff]  ;;  %v1366_v53 = vld [vmem:[%s8900_s3 + $0x1b8] sm:$0xff] }
  0x39   : > { %489 = vmatmul.mubr.f32.gmra.mxu0 %v331_v6  ;;  %698 = vmatmul.mubr.f32.gmra.mxu1 %v331_v6  ;;  %v1367_v50 = vld [vmem:[%s8900_s3 + $0x1c0] sm:$0xff]  ;;  %v347_v51 = vld [vmem:[%s5729_s17 + $0x88] sm:$0xff]  ;;  %v1333_v54 = vld [vmem:[%s8900_s3 + $0xb0] sm:$0xff] }
  0x3a   : > { %494 = vmatprep.mubr.f32.mxu0 %v8907_v1  ;;  %703 = vmatprep.mubr.f32.mxu1 %v8907_v1  ;;  %v1351_v52 = vld [vmem:[%s8900_s3 + $0x140] sm:$0xff]  ;;  %v348_v55 = vld [vmem:[%s5729_s17 + $0x90] sm:$0xff]  ;;  %v1350_v57 = vld [vmem:[%s8900_s3 + $0x138] sm:$0xff] }
  0x3b   : > { %4252 = vmatprep.subr.mxu0 %v1341_v7  ;;  %4308 = vmatprep.subr.mxu1 %v1373_v8  ;;  %v1317_v56 = vld [vmem:[%s8900_s3 + $0x30] sm:$0xff]  ;;  %v1332_v58 = vld [vmem:[%s8900_s3 + $0xa8] sm:$0xff]  ;;  %v349_v61 = vld [vmem:[%s5729_s17 + $0x98] sm:$0xff] }
  0x3c   : > { %4253 = vmatpush3.msra.mxu0 %v1325_v9  ;;  %4309 = vmatpush3.msra.mxu1 %v1357_v10  ;;  %v1365_v59 = vld [vmem:[%s8900_s3 + $0x1b0] sm:$0xff]  ;;  %v1316_v60 = vld [vmem:[%s8900_s3 + $0x28] sm:$0xff]  ;;  %v1331_v63 = vld [vmem:[%s8900_s3 + $0xa0] sm:$0xff] }
  0x3d   : > { %495 = vmatmul.mubr.f32.gmra.mxu0 %v332_v11  ;;  %704 = vmatmul.mubr.f32.gmra.mxu1 %v332_v11  ;;  %v1349_v62 = vld [vmem:[%s8900_s3 + $0x130] sm:$0xff]  ;;  %v1364_v0 = vld [vmem:[%s8900_s3 + $0x1a8] sm:$0xff]  ;;  %v1315_v2 = vld [vmem:[%s8900_s3 + $0x20] sm:$0xff] }
  0x3e   : > { %500 = vmatprep.mubr.f32.mxu0 %v8907_v1  ;;  %709 = vmatprep.mubr.f32.mxu1 %v8907_v1  ;;  %v350_v3 = vld [vmem:[%s5729_s17 + $0xa0] sm:$0xff]  ;;  %v1348_v4 = vld [vmem:[%s8900_s3 + $0x128] sm:$0xff]  ;;  %v1330_v5 = vld [vmem:[%s8900_s3 + $0x98] sm:$0xff] }
  0x3f   : > { %4254 = vmatprep.subr.mxu0 %v1340_v12  ;;  %4310 = vmatprep.subr.mxu1 %v1372_v13  ;;  %v1363_v6 = vld [vmem:[%s8900_s3 + $0x1a0] sm:$0xff]  ;;  %v1314_v7 = vld [vmem:[%s8900_s3 + $0x18] sm:$0xff]  ;;  %v351_v8 = vld [vmem:[%s5729_s17 + $0xa8] sm:$0xff] }
  0x40   : > { %4255 = vmatpush3.msra.mxu0 %v1324_v14  ;;  %4311 = vmatpush3.msra.mxu1 %v1356_v15  ;;  %v1347_v9 = vld [vmem:[%s8900_s3 + $0x120] sm:$0xff]  ;;  %v1329_v10 = vld [vmem:[%s8900_s3 + $0x90] sm:$0xff]  ;;  %v1362_v11 = vld [vmem:[%s8900_s3 + $0x198] sm:$0xff] }
  0x41   : > { %501 = vmatmul.mubr.f32.gmra.mxu0 %v333_v16  ;;  %710 = vmatmul.mubr.f32.gmra.mxu1 %v333_v16  ;;  %v1313_v12 = vld [vmem:[%s8900_s3 + $0x10] sm:$0xff]  ;;  %v1346_v14 = vld [vmem:[%s8900_s3 + $0x118] sm:$0xff] }
  0x42   : > { %506 = vmatprep.mubr.f32.mxu0 %v8907_v1  ;;  %715 = vmatprep.mubr.f32.mxu1 %v8907_v1  ;;  %v352_v13 = vld [vmem:[%s5729_s17 + $0xb0] sm:$0xff] }
  0x43   : > { %4256 = vmatprep.subr.mxu0 %v1339_v17  ;;  %4312 = vmatprep.subr.mxu1 %v1371_v18  ;;  %v1361_v15 = vld [vmem:[%s8900_s3 + $0x190] sm:$0xff]  ;;  %v1328_v17 = vld [vmem:[%s8900_s3 + $0x88] sm:$0xff]  ;;  %v353_v18 = vld [vmem:[%s5729_s17 + $0xb8] sm:$0xff]  ;;  %s323_s17 = sand.u32 1, %s5422_s10  }
  0x44   : > { %4257 = vmatpush3.msra.mxu0 %v1323_v19  ;;  %4313 = vmatpush3.msra.mxu1 %v1355_v20  ;;  %v1345_v16 = vld [vmem:[%s8900_s3 + $0x110] sm:$0xff]  ;;  %v1360_v19 = vld [vmem:[%s8900_s3 + $0x188] sm:$0xff]  ;;  %s324_s26 = scalar_lea.vmem [#allocation2], %s323_s17  ;;  %s4166_s29 = scalar_lea.sflag [#allocation3], %s323_s17 }
  0x45   : > { %507 = vmatmul.mubr.f32.gmra.mxu0 %v334_v21  ;;  %716 = vmatmul.mubr.f32.gmra.mxu1 %v334_v21  ;;  %v1312_v20 = vld [vmem:[%s8900_s3 + $0x8] sm:$0xff]  ;;  %s4178_s27 = sshll.u32 %s324_s26, 4  ;;  %s4179_s27 = int_to_ptr.vmem [resolvable:$true] %s4178_s27 }
  0x46   : > { %512 = vmatprep.mubr.f32.mxu0 %v8907_v1  ;;  %721 = vmatprep.mubr.f32.mxu1 %v8907_v1  ;;  %v1344_v21 = vld [vmem:[%s8900_s3 + $0x108] sm:$0xff]  ;;  %s5370_s21 = scalar_lea.vmem %s4179_s27, 16  ;;  %p5377_p0 = scmp.lt.s32.totalorder %s4179_s27, %s5375_s13 }
  0x47   : > { %4258 = vmatprep.subr.mxu0 %v1338_v22  ;;  %4314 = vmatprep.subr.mxu1 %v1370_v23  ;;  %v1327_v22 = vld [vmem:[%s8900_s3 + $0x80] sm:$0xff]  ;;  %p5371_p11 = scmp.ne.s32.totalorder %s4179_s27, %s5370_s21  ;;  %p5378_p1 = scmp.lt.s32.totalorder %s5376_s24, %s5370_s21 }
  0x48   : > { %4259 = vmatpush3.msra.mxu0 %v1322_v24  ;;  %4315 = vmatpush3.msra.mxu1 %v1354_v25  ;;  %v1359_v23 = vld [vmem:[%s8900_s3 + $0x180] sm:$0xff] }
  0x49   : > { %513 = vmatmul.mubr.f32.gmra.mxu0 %v335_v26  ;;  %722 = vmatmul.mubr.f32.gmra.mxu1 %v335_v26  ;;  %v1311_v24 = vld [vmem:[%s8900_s3] sm:$0xff]  ;;  %v1406_v26 = vld [vmem:[%s8900_s3 + $0x2f8] sm:$0xff]  ;;  %p5372_p12 = pnand %p5371_p11, %p5523_p5  ;;  %p5379_p2 = por %p5378_p1, %p5377_p0 }
  0x4a   : > { %518 = vmatprep.mubr.f32.mxu0 %v8907_v1  ;;  %727 = vmatprep.mubr.f32.mxu1 %v8907_v1  ;;  %v1343_v25 = vld [vmem:[%s8900_s3 + $0x100] sm:$0xff] }
  0x4b   : > { %4260 = vmatprep.subr.mxu0 %v1337_v27  ;;  %4316 = vmatprep.subr.mxu1 %v1369_v28  ;;  %v1438_v27 = vld [vmem:[%s8900_s3 + $0x3f8] sm:$0xff]  ;;  %p5373_p13 = pneg %p5372_p12 }
  0x4c   : > { %4261 = vmatpush3.msra.mxu0 %v1321_v29  ;;  %4317 = vmatpush3.msra.mxu1 %v1353_v30 }
  0x4d   : > { %519 = vmatmul.mubr.f32.gmra.mxu0 %v336_v31  ;;  %728 = vmatmul.mubr.f32.gmra.mxu1 %v336_v31  ;;  %p5380_p3 = pnand %p5379_p2, %p5373_p13 }
  0x4e   : > { %524 = vmatprep.mubr.f32.mxu0 %v8907_v1  ;;  %733 = vmatprep.mubr.f32.mxu1 %v8907_v1 }
  0x4f   : > { %4262 = vmatprep.subr.mxu0 %v1336_v32  ;;  %4318 = vmatprep.subr.mxu1 %v1368_v33 }
  0x50   : > { %4263 = vmatpush3.msra.mxu0 %v1320_v34  ;;  %4319 = vmatpush3.msra.mxu1 %v1352_v49  ;;  %v6010_v34 = vld [vmem:[%s8899_s2] ss:$0 sm:$0xff] }
  0x51   : > { %525 = vmatmul.mubr.f32.gmra.mxu0 %v337_v35  ;;  %734 = vmatmul.mubr.f32.gmra.mxu1 %v337_v35 }
  0x52   : > { %530 = vmatprep.mubr.f32.mxu0 %v8907_v1  ;;  %739 = vmatprep.mubr.f32.mxu1 %v8907_v1 }
  0x53   : > { %4264 = vmatprep.subr.mxu0 %v1335_v36  ;;  %4320 = vmatprep.subr.mxu1 %v1367_v50 }
  0x54   : > { %4265 = vmatpush3.msra.mxu0 %v1319_v37  ;;  %4321 = vmatpush3.msra.mxu1 %v1351_v52 }
  0x55   : > { %531 = vmatmul.mubr.f32.gmra.mxu0 %v338_v38  ;;  %740 = vmatmul.mubr.f32.gmra.mxu1 %v338_v38 }
  0x56   : > { %536 = vmatprep.mubr.f32.mxu0 %v8907_v1  ;;  %745 = vmatprep.mubr.f32.mxu1 %v8907_v1 }
  0x57   : > { %4266 = vmatprep.subr.mxu0 %v1334_v39  ;;  %4322 = vmatprep.subr.mxu1 %v1366_v53 }
  0x58   : > { %4267 = vmatpush3.msra.mxu0 %v1318_v40  ;;  %4323 = vmatpush3.msra.mxu1 %v1350_v57 }
  0x59   : > { %537 = vmatmul.mubr.f32.gmra.mxu0 %v339_v41  ;;  %746 = vmatmul.mubr.f32.gmra.mxu1 %v339_v41 }
  0x5a   : > { %542 = vmatprep.mubr.f32.mxu0 %v8907_v1  ;;  %751 = vmatprep.mubr.f32.mxu1 %v8907_v1 }
  0x5b   : > { %4268 = vmatprep.subr.mxu0 %v1333_v54  ;;  %4324 = vmatprep.subr.mxu1 %v1365_v59 }
  0x5c   : > { %4269 = vmatpush3.msra.mxu0 %v1317_v56  ;;  %4325 = vmatpush3.msra.mxu1 %v1349_v62 }
  0x5d   : > { %543 = vmatmul.mubr.f32.gmra.mxu0 %v340_v42  ;;  %752 = vmatmul.mubr.f32.gmra.mxu1 %v340_v42 }
  0x5e   : > { %548 = vmatprep.mubr.f32.mxu0 %v8907_v1  ;;  %757 = vmatprep.mubr.f32.mxu1 %v8907_v1 }
  0x5f   : > { %4270 = vmatprep.subr.mxu0 %v1332_v58  ;;  %4326 = vmatprep.subr.mxu1 %v1364_v0 }
  0x60   : > { %4271 = vmatpush3.msra.mxu0 %v1316_v60  ;;  %4327 = vmatpush3.msra.mxu1 %v1348_v4 }
  0x61   : > { %549 = vmatmul.mubr.f32.gmra.mxu0 %v341_v43  ;;  %758 = vmatmul.mubr.f32.gmra.mxu1 %v341_v43 }
  0x62   : > { %554 = vmatprep.mubr.f32.mxu0 %v8907_v1  ;;  %763 = vmatprep.mubr.f32.mxu1 %v8907_v1 }
  0x63   : > { %4272 = vmatprep.subr.mxu0 %v1331_v63  ;;  %4328 = vmatprep.subr.mxu1 %v1363_v6 }
  0x64   : > { %4273 = vmatpush3.msra.mxu0 %v1315_v2  ;;  %4329 = vmatpush3.msra.mxu1 %v1347_v9 }
  0x65   : > { %555 = vmatmul.mubr.f32.gmra.mxu0 %v342_v44  ;;  %764 = vmatmul.mubr.f32.gmra.mxu1 %v342_v44 }
  0x66   : > { %560 = vmatprep.mubr.f32.mxu0 %v8907_v1  ;;  %769 = vmatprep.mubr.f32.mxu1 %v8907_v1 }
  0x67   : > { %4274 = vmatprep.subr.mxu0 %v1330_v5  ;;  %4330 = vmatprep.subr.mxu1 %v1362_v11 }
  0x68   : > { %4275 = vmatpush3.msra.mxu0 %v1314_v7  ;;  %4331 = vmatpush3.msra.mxu1 %v1346_v14  ;;  %v1405_v14 = vld [vmem:[%s8900_s3 + $0x2f0] sm:$0xff] }
  0x69   : > { %561 = vmatmul.mubr.f32.gmra.mxu0 %v343_v45  ;;  %770 = vmatmul.mubr.f32.gmra.mxu1 %v343_v45 }
  0x6a   : > { %566 = vmatprep.mubr.f32.mxu0 %v8907_v1  ;;  %775 = vmatprep.mubr.f32.mxu1 %v8907_v1 }
  0x6b   : > { %4276 = vmatprep.subr.mxu0 %v1329_v10  ;;  %4332 = vmatprep.subr.mxu1 %v1361_v15  ;;  %v1422_v15 = vld [vmem:[%s8900_s3 + $0x378] sm:$0xff] }
  0x6c   : > { %4277 = vmatpush3.msra.mxu0 %v1313_v12  ;;  %4333 = vmatpush3.msra.mxu1 %v1345_v16 }
  0x6d   : > { %567 = vmatmul.mubr.f32.gmra.mxu0 %v344_v46  ;;  %776 = vmatmul.mubr.f32.gmra.mxu1 %v344_v46 }
  0x6e   : > { %572 = vmatprep.mubr.f32.mxu0 %v8907_v1  ;;  %781 = vmatprep.mubr.f32.mxu1 %v8907_v1 }
  0x6f   : > { %4278 = vmatprep.subr.mxu0 %v1328_v17  ;;  %4334 = vmatprep.subr.mxu1 %v1360_v19  ;;  %v1389_v19 = vld [vmem:[%s8900_s3 + $0x270] sm:$0xff] }
  0x70   : > { %4279 = vmatpush3.msra.mxu0 %v1312_v20  ;;  %4335 = vmatpush3.msra.mxu1 %v1344_v21  ;;  %v1437_v20 = vld [vmem:[%s8900_s3 + $0x3f0] sm:$0xff] }
  0x71   : > { %573 = vmatmul.mubr.f32.gmra.mxu0 %v345_v47  ;;  %782 = vmatmul.mubr.f32.gmra.mxu1 %v345_v47 }
  0x72   : > { %578 = vmatprep.mubr.f32.mxu0 %v8907_v1  ;;  %787 = vmatprep.mubr.f32.mxu1 %v8907_v1 }
  0x73   : > { %4280 = vmatprep.subr.mxu0 %v1327_v22  ;;  %4336 = vmatprep.subr.mxu1 %v1359_v23  ;;  %v1404_v23 = vld [vmem:[%s8900_s3 + $0x2e8] sm:$0xff] }
  0x74   : > { %4281 = vmatpush3.msra.mxu0 %v1311_v24  ;;  %4337 = vmatpush3.msra.mxu1 %v1343_v25  ;;  %v1421_v24 = vld [vmem:[%s8900_s3 + $0x370] sm:$0xff] }
  0x75   : > { %579 = vmatmul.mubr.f32.gmra.mxu0 %v346_v48  ;;  %788 = vmatmul.mubr.f32.gmra.mxu1 %v346_v48 }
  0x76   : > { %584 = vmatprep.mubr.f32.mxu0 %v8907_v1  ;;  %793 = vmatprep.mubr.f32.mxu1 %v8907_v1 }
  0x77   : > { %4362 = vmatprep.subr.mxu0 %v1406_v26  ;;  %4418 = vmatprep.subr.mxu1 %v1438_v27  ;;  %v1388_v27 = vld [vmem:[%s8900_s3 + $0x268] sm:$0xff] }
  0x79   : > { %585 = vmatmul.mubr.f32.gmra.mxu0 %v347_v51  ;;  %794 = vmatmul.mubr.f32.gmra.mxu1 %v347_v51 }
  0x7a   : > { %590 = vmatprep.mubr.f32.mxu0 %v8907_v1  ;;  %799 = vmatprep.mubr.f32.mxu1 %v8907_v1 }
  0x7d   : > { %591 = vmatmul.mubr.f32.gmra.mxu0 %v348_v55  ;;  %800 = vmatmul.mubr.f32.gmra.mxu1 %v348_v55 }
  0x7e   : > { %596 = vmatprep.mubr.f32.mxu0 %v8907_v1  ;;  %805 = vmatprep.mubr.f32.mxu1 %v8907_v1 }
  0x81   : > { %597 = vmatmul.mubr.f32.gmra.mxu0 %v349_v61  ;;  %806 = vmatmul.mubr.f32.gmra.mxu1 %v349_v61 }
  0x82   : > { %602 = vmatprep.mubr.f32.mxu0 %v8907_v1  ;;  %811 = vmatprep.mubr.f32.mxu1 %v8907_v1 }
  0x85   : > { %603 = vmatmul.mubr.f32.gmra.mxu0 %v350_v3  ;;  %812 = vmatmul.mubr.f32.gmra.mxu1 %v350_v3 }
  0x86   : > { %608 = vmatprep.mubr.f32.mxu0 %v8907_v1  ;;  %817 = vmatprep.mubr.f32.mxu1 %v8907_v1 }
  0x89   : > { %609 = vmatmul.mubr.f32.gmra.mxu0 %v351_v8  ;;  %818 = vmatmul.mubr.f32.gmra.mxu1 %v351_v8  ;;  %v1390_v8 = vld [vmem:[%s8900_s3 + $0x278] sm:$0xff] }
  0x8a   : > { %614 = vmatprep.mubr.f32.mxu0 %v8907_v1  ;;  %823 = vmatprep.mubr.f32.mxu1 %v8907_v1 }
  0x8d   : > { %615 = vmatmul.mubr.f32.gmra.mxu0 %v352_v13  ;;  %824 = vmatmul.mubr.f32.gmra.mxu1 %v352_v13 }
  0x8e   : > { %620 = vmatprep.mubr.f32.mxu0 %v8907_v1  ;;  %829 = vmatprep.mubr.f32.mxu1 %v8907_v1 }
  0x91   : > { %621 = vmatmul.mubr.f32.gmra.mxu0 %v353_v18  ;;  %830 = vmatmul.mubr.f32.gmra.mxu1 %v353_v18 }
  0xf5   : > { %v484_v28 = vpop.f32.mrf.mxu0  ;;  %v693_v29 = vpop.f32.mrf.mxu1 }
  0xf7   : > { %v486_v30 = vpop.f32.mrf.mxu0  ;;  %v695_v31 = vpop.f32.mrf.mxu1 }
  0xf8   : > { %v836_v32 = vmax.f32 %v484_v28, %v486_v30  ;;  %v860_v33 = vmax.f32 %v693_v29, %v695_v31  ;;  %v1436_v28 = vld [vmem:[%s8900_s3 + $0x3e8] sm:$0xff] }
  0xf9   : > { %v490_v35 = vpop.f32.mrf.mxu0  ;;  %v699_v36 = vpop.f32.mrf.mxu1 }
  0xfa   : > { %v884_v37 = vmax.f32 %v836_v32, %v860_v33  ;;  %v1403_v32 = vld [vmem:[%s8900_s3 + $0x2e0] sm:$0xff]  ;;  %v1420_v33 = vld [vmem:[%s8900_s3 + $0x368] sm:$0xff] }
  0xfb   : > { %v492_v38 = vpop.f32.mrf.mxu0  ;;  %v701_v39 = vpop.f32.mrf.mxu1 }
  0xfc   : > { %v915_v40 = vadd.f32 %v6010_v34, %v884_v37  ;;  %v837_v41 = vmax.f32 %v490_v35, %v492_v38  ;;  %v861_v42 = vmax.f32 %v699_v36, %v701_v39  ;;  %v1387_v39 = vld [vmem:[%s8900_s3 + $0x260] sm:$0xff] }
  0xfd   : > { %v496_v43 = vpop.f32.mrf.mxu0  ;;  %v705_v44 = vpop.f32.mrf.mxu1 }
  0xfe   : > { %v885_v45 = vmax.f32 %v837_v41, %v861_v42  ;;  %v6013_v46 = vmax.f32 %v915_v40, 0.0 }
  0xff   : > { %v498_v47 = vpop.f32.mrf.mxu0  ;;  %v707_v48 = vpop.f32.mrf.mxu1 }
 0x100   : > { %v916_v49 = vadd.f32 %v6010_v34, %v885_v45  ;;  %v838_v50 = vmax.f32 %v496_v43, %v498_v47  ;;  %v862_v51 = vmax.f32 %v705_v44, %v707_v48  ;;  %v966_v58 = vrot.slane %v6013_v46, 1 }
 0x101   : > { %v502_v52 = vpop.f32.mrf.mxu0  ;;  %v711_v53 = vpop.f32.mrf.mxu1  ;;  %v976_v2 = vrot.slane %v6013_v46, 3  ;;  %v971_v4 = vrot.slane %v6013_v46, 2 }
 0x102   : > { %v6016_v54 = vmax.f32 %v916_v49, 0.0  ;;  %v886_v55 = vmax.f32 %v838_v50, %v862_v51  ;;  %v1435_v49 = vld [vmem:[%s8900_s3 + $0x3e0] sm:$0xff] }
 0x103   : > { %v504_v56 = vpop.f32.mrf.mxu0  ;;  %v713_v57 = vpop.f32.mrf.mxu1 }
 0x104   : > { %v917_v59 = vadd.f32 %v6010_v34, %v886_v55  ;;  %v839_v60 = vmax.f32 %v502_v52, %v504_v56  ;;  %v863_v61 = vmax.f32 %v711_v53, %v713_v57  ;;  %v967_v62 = vrot.slane %v6016_v54, 1  ;;  %v1402_v56 = vld [vmem:[%s8900_s3 + $0x2d8] sm:$0xff]  ;;  %v1419_v57 = vld [vmem:[%s8900_s3 + $0x360] sm:$0xff] }
 0x105   : > { %v508_v63 = vpop.f32.mrf.mxu0  ;;  %v717_v0 = vpop.f32.mrf.mxu1  ;;  %v977_v3 = vrot.slane %v6016_v54, 3  ;;  %v972_v5 = vrot.slane %v6016_v54, 2 }
 0x106   : > { %v887_v6 = vmax.f32 %v839_v60, %v863_v61  ;;  %v968_v7 = vsel %vm965_vm0, %v966_v58, %v967_v62  ;;  %v6029_v9 = vmax.f32 %v917_v59, 0.0  ;;  %v1386_v61 = vld [vmem:[%s8900_s3 + $0x258] sm:$0xff] }
 0x107   : > { %v510_v10 = vpop.f32.mrf.mxu0  ;;  %v719_v11 = vpop.f32.mrf.mxu1  ;;  %1775 = vmatprep.mubr.f32.mxu0 %v968_v7  ;;  %v978_v12 = vsel %vm975_vm1, %v976_v2, %v977_v3  ;;  %v973_v13 = vsel %vm970_vm2, %v971_v4, %v972_v5  ;;  %v1434_v62 = vld [vmem:[%s8900_s3 + $0x3d8] sm:$0xff]  ;;  %v1401_v2 = vld [vmem:[%s8900_s3 + $0x2d0] sm:$0xff] }
 0x108   : > { %v918_v16 = vadd.f32 %v6010_v34, %v887_v6  ;;  %v840_v17 = vmax.f32 %v508_v63, %v510_v10  ;;  %v864_v18 = vmax.f32 %v717_v0, %v719_v11  ;;  %1880 = vmatprep.mubr.f32.mxu1 %v978_v12  ;;  %1776 = vmatmul.mubr.f32.vlgmr.msra.gmra.mxu0 %v6013_v46  ;;  %v987_v31 = vrot.slane %v6029_v9, 1  ;;  %v1418_v3 = vld [vmem:[%s8900_s3 + $0x358] sm:$0xff]  ;;  %v1385_v6 = vld [vmem:[%s8900_s3 + $0x250] sm:$0xff]  ;;  %v1400_v12 = vld [vmem:[%s8900_s3 + $0x2c8] sm:$0xff] }
 0x109   : > { %1881 = vmatmul.mubr.f32.vlgmr.msra.gmra.mxu1 %v973_v13  ;;  %v514_v21 = vpop.f32.mrf.mxu0  ;;  %v723_v22 = vpop.f32.mrf.mxu1  ;;  %4363 = vmatpush3.msra.mxu0 %v1390_v8  ;;  %v995_v42 = vrot.slane %v6029_v9, 3  ;;  %v991_v44 = vrot.slane %v6029_v9, 2  ;;  %v1433_v7 = vld [vmem:[%s8900_s3 + $0x3d0] sm:$0xff] }
 0x10a   : > { %v6053_v25 = vmax.f32 %v918_v16, 0.0  ;;  %v888_v26 = vmax.f32 %v840_v17, %v864_v18  ;;  %4364 = vmatprep.subr.mxu0 %v1405_v14  ;;  %4419 = vmatpush3.msra.mxu1 %v1422_v15  ;;  %v1417_v13 = vld [vmem:[%s8900_s3 + $0x350] sm:$0xff]  ;;  %v1384_v18 = vld [vmem:[%s8900_s3 + $0x248] sm:$0xff] }
 0x10b   : > { %v516_v29 = vpop.f32.mrf.mxu0  ;;  %v725_v30 = vpop.f32.mrf.mxu1  ;;  %4365 = vmatpush3.msra.mxu0 %v1389_v19  ;;  %4420 = vmatprep.subr.mxu1 %v1437_v20 }
 0x10c   : > { %v919_v35 = vadd.f32 %v6010_v34, %v888_v26  ;;  %v841_v36 = vmax.f32 %v514_v21, %v516_v29  ;;  %v865_v37 = vmax.f32 %v723_v22, %v725_v30  ;;  %v988_v38 = vrot.slane %v6053_v25, 1  ;;  %4366 = vmatprep.subr.mxu0 %v1404_v23  ;;  %4421 = vmatpush3.msra.mxu1 %v1421_v24 }
 0x10d   : > { %v520_v40 = vpop.f32.mrf.mxu0  ;;  %v729_v41 = vpop.f32.mrf.mxu1  ;;  %v996_v43 = vrot.slane %v6053_v25, 3  ;;  %v992_v45 = vrot.slane %v6053_v25, 2  ;;  %4367 = vmatpush3.msra.mxu0 %v1388_v27  ;;  %4422 = vmatprep.subr.mxu1 %v1436_v28  ;;  %v1432_v28 = vld [vmem:[%s8900_s3 + $0x3c8] sm:$0xff] }
 0x10e   : > { %v889_v47 = vmax.f32 %v841_v36, %v865_v37  ;;  %v6078_v48 = vsel %vm965_vm0, %v987_v31, %v988_v38  ;;  %4368 = vmatprep.subr.mxu0 %v1403_v32  ;;  %4423 = vmatpush3.msra.mxu1 %v1420_v33  ;;  %v6083_v50 = vmax.f32 %v919_v35, 0.0  ;;  %v1399_v35 = vld [vmem:[%s8900_s3 + $0x2c0] sm:$0xff]  ;;  %v1416_v36 = vld [vmem:[%s8900_s3 + $0x348] sm:$0xff] }
 0x10f   : > { %v522_v51 = vpop.f32.mrf.mxu0  ;;  %v731_v52 = vpop.f32.mrf.mxu1  ;;  %1780 = vmatprep.mubr.f32.mxu0 %v6078_v48  ;;  %v6087_v53 = vsel %vm975_vm1, %v995_v42, %v996_v43  ;;  %v6090_v55 = vsel %vm970_vm2, %v991_v44, %v992_v45  ;;  %4369 = vmatpush3.msra.mxu0 %v1387_v39  ;;  %v1398_v44 = vld [vmem:[%s8900_s3 + $0x2b8] sm:$0xff]  ;;  %v1415_v45 = vld [vmem:[%s8900_s3 + $0x340] sm:$0xff] }
 0x110   : > { %v920_v58 = vadd.f32 %v6010_v34, %v889_v47  ;;  %v842_v59 = vmax.f32 %v520_v40, %v522_v51  ;;  %v866_v60 = vmax.f32 %v729_v41, %v731_v52  ;;  %1885 = vmatprep.mubr.f32.mxu1 %v6087_v53  ;;  %1781 = vmatmul.mubr.f32.gmra.mxu0 %v6029_v9  ;;  %v1005_v11 = vrot.slane %v6083_v50, 1  ;;  %v1383_v40 = vld [vmem:[%s8900_s3 + $0x240] sm:$0xff]  ;;  %v1382_v51 = vld [vmem:[%s8900_s3 + $0x238] sm:$0xff] }
 0x111   : > { %1886 = vmatmul.mubr.f32.gmra.mxu1 %v6090_v55  ;;  %v526_v63 = vpop.f32.mrf.mxu0  ;;  %v735_v0 = vpop.f32.mrf.mxu1  ;;  %4424 = vmatprep.subr.mxu1 %v1435_v49  ;;  %v1013_v21 = vrot.slane %v6083_v50, 3  ;;  %v1009_v23 = vrot.slane %v6083_v50, 2  ;;  %v1431_v41 = vld [vmem:[%s8900_s3 + $0x3c0] sm:$0xff]  ;;  %v1430_v52 = vld [vmem:[%s8900_s3 + $0x3b8] sm:$0xff] }
 0x112   : > { %v6114_v4 = vmax.f32 %v920_v58, 0.0  ;;  %v890_v5 = vmax.f32 %v842_v59, %v866_v60  ;;  %4370 = vmatprep.subr.mxu0 %v1402_v56  ;;  %4425 = vmatpush3.msra.mxu1 %v1419_v57  ;;  %v1397_v59 = vld [vmem:[%s8900_s3 + $0x2b0] sm:$0xff]  ;;  %v1414_v60 = vld [vmem:[%s8900_s3 + $0x338] sm:$0xff] }
 0x113   : > { %v528_v8 = vpop.f32.mrf.mxu0  ;;  %v737_v10 = vpop.f32.mrf.mxu1  ;;  %4371 = vmatpush3.msra.mxu0 %v1386_v61  ;;  %4426 = vmatprep.subr.mxu1 %v1434_v62 }
 0x114   : > { %v921_v14 = vadd.f32 %v6010_v34, %v890_v5  ;;  %v843_v15 = vmax.f32 %v526_v63, %v528_v8  ;;  %v867_v16 = vmax.f32 %v735_v0, %v737_v10  ;;  %v1006_v17 = vrot.slane %v6114_v4, 1  ;;  %4372 = vmatprep.subr.mxu0 %v1401_v2  ;;  %4427 = vmatpush3.msra.mxu1 %v1418_v3  ;;  %v1381_v2 = vld [vmem:[%s8900_s3 + $0x230] sm:$0xff] }
 0x115   : > { %v532_v19 = vpop.f32.mrf.mxu0  ;;  %v741_v20 = vpop.f32.mrf.mxu1  ;;  %v1014_v22 = vrot.slane %v6114_v4, 3  ;;  %v1010_v24 = vrot.slane %v6114_v4, 2  ;;  %4373 = vmatpush3.msra.mxu0 %v1385_v6  ;;  %4428 = vmatprep.subr.mxu1 %v1433_v7 }
 0x116   : > { %v891_v26 = vmax.f32 %v843_v15, %v867_v16  ;;  %v6139_v27 = vsel %vm965_vm0, %v1005_v11, %v1006_v17  ;;  %4374 = vmatprep.subr.mxu0 %v1400_v12  ;;  %4429 = vmatpush3.msra.mxu1 %v1417_v13  ;;  %v6144_v29 = vmax.f32 %v921_v14, 0.0  ;;  %v1429_v13 = vld [vmem:[%s8900_s3 + $0x3b0] sm:$0xff] }
 0x117   : > { %v534_v30 = vpop.f32.mrf.mxu0  ;;  %v743_v31 = vpop.f32.mrf.mxu1  ;;  %1785 = vmatprep.mubr.f32.mxu0 %v6139_v27  ;;  %v6148_v32 = vsel %vm975_vm1, %v1013_v21, %v1014_v22  ;;  %v6151_v33 = vsel %vm970_vm2, %v1009_v23, %v1010_v24  ;;  %4375 = vmatpush3.msra.mxu0 %v1384_v18  ;;  %v1380_v24 = vld [vmem:[%s8900_s3 + $0x228] sm:$0xff] }
 0x118   : > { %v922_v37 = vadd.f32 %v6010_v34, %v891_v26  ;;  %v844_v38 = vmax.f32 %v532_v19, %v534_v30  ;;  %v868_v39 = vmax.f32 %v741_v20, %v743_v31  ;;  %1890 = vmatprep.mubr.f32.mxu1 %v6148_v32  ;;  %1786 = vmatmul.mubr.f32.gmra.mxu0 %v6083_v50  ;;  %v1023_v58 = vrot.slane %v6144_v29, 1  ;;  %v1396_v19 = vld [vmem:[%s8900_s3 + $0x2a8] sm:$0xff]  ;;  %v1413_v20 = vld [vmem:[%s8900_s3 + $0x330] sm:$0xff]  ;;  %v1395_v31 = vld [vmem:[%s8900_s3 + $0x2a0] sm:$0xff] }
 0x119   : > { %1891 = vmatmul.mubr.f32.gmra.mxu1 %v6151_v33  ;;  %v538_v42 = vpop.f32.mrf.mxu0  ;;  %v747_v43 = vpop.f32.mrf.mxu1  ;;  %4430 = vmatprep.subr.mxu1 %v1432_v28  ;;  %v1029_v6 = vrot.slane %v6144_v29, 3  ;;  %v1026_v8 = vrot.slane %v6144_v29, 2  ;;  %v1428_v26 = vld [vmem:[%s8900_s3 + $0x3a8] sm:$0xff] }
 0x11a   : > { %v6175_v47 = vmax.f32 %v922_v37, 0.0  ;;  %v892_v49 = vmax.f32 %v844_v38, %v868_v39  ;;  %4376 = vmatprep.subr.mxu0 %v1399_v35  ;;  %4431 = vmatpush3.msra.mxu1 %v1416_v36  ;;  %v1412_v35 = vld [vmem:[%s8900_s3 + $0x328] sm:$0xff]  ;;  %v1379_v38 = vld [vmem:[%s8900_s3 + $0x220] sm:$0xff] }
 0x11b   : > { %v540_v56 = vpop.f32.mrf.mxu0  ;;  %v749_v57 = vpop.f32.mrf.mxu1  ;;  %4377 = vmatpush3.msra.mxu0 %v1383_v40  ;;  %4432 = vmatprep.subr.mxu1 %v1431_v41  ;;  %v1427_v39 = vld [vmem:[%s8900_s3 + $0x3a0] sm:$0xff] }
 0x11c   : > { %v923_v61 = vadd.f32 %v6010_v34, %v892_v49  ;;  %v845_v62 = vmax.f32 %v538_v42, %v540_v56  ;;  %v869_v63 = vmax.f32 %v747_v43, %v749_v57  ;;  %v1024_v0 = vrot.slane %v6175_v47, 1  ;;  %4378 = vmatprep.subr.mxu0 %v1398_v44  ;;  %4433 = vmatpush3.msra.mxu1 %v1415_v45  ;;  %v1394_v43 = vld [vmem:[%s8900_s3 + $0x298] sm:$0xff]  ;;  %v1411_v44 = vld [vmem:[%s8900_s3 + $0x320] sm:$0xff] }
 0x11d   : > { %v544_v3 = vpop.f32.mrf.mxu0  ;;  %v753_v5 = vpop.f32.mrf.mxu1  ;;  %v8927_v7 = vrot.slane %v6175_v47, 3  ;;  %v8926_v10 = vrot.slane %v6175_v47, 2  ;;  %4379 = vmatpush3.msra.mxu0 %v1382_v51  ;;  %4434 = vmatprep.subr.mxu1 %v1430_v52  ;;  %v1378_v56 = vld [vmem:[%s8900_s3 + $0x218] sm:$0xff] }
 0x11e   : > { %v893_v11 = vmax.f32 %v845_v62, %v869_v63  ;;  %v6202_v12 = vsel %vm965_vm0, %v1023_v58, %v1024_v0  ;;  %4380 = vmatprep.subr.mxu0 %v1397_v59  ;;  %4435 = vmatpush3.msra.mxu1 %v1414_v60  ;;  %v6207_v14 = vmax.f32 %v923_v61, 0.0 }
 0x11f   : > { %v546_v15 = vpop.f32.mrf.mxu0  ;;  %v755_v16 = vpop.f32.mrf.mxu1  ;;  %1790 = vmatprep.mubr.f32.mxu0 %v6202_v12  ;;  %v6213_v17 = vsel %vm975_vm1, %v1029_v6, %v8927_v7  ;;  %v6218_v18 = vsel %vm970_vm2, %v1026_v8, %v8926_v10  ;;  %4381 = vmatpush3.msra.mxu0 %v1381_v2  ;;  %v1044_v10 = vrot.slane %v6202_v12, 1  ;;  %v1045_v7 = vrot.slane %v1024_v0, 1 }
 0x120   : > { %v924_v21 = vadd.f32 %v6010_v34, %v893_v11  ;;  %v846_v22 = vmax.f32 %v544_v3, %v546_v15  ;;  %v870_v23 = vmax.f32 %v753_v5, %v755_v16  ;;  %1895 = vmatprep.mubr.f32.mxu1 %v6213_v17  ;;  %1791 = vmatmul.mubr.f32.gmra.mxu0 %v6144_v29  ;;  %v1035_v42 = vrot.slane %v6207_v14, 1  ;;  %v1426_v3 = vld [vmem:[%s8900_s3 + $0x398] sm:$0xff]  ;;  %v1393_v15 = vld [vmem:[%s8900_s3 + $0x290] sm:$0xff] }
 0x121   : > { %1896 = vmatmul.mubr.f32.gmra.mxu1 %v6218_v18  ;;  %v550_v28 = vpop.f32.mrf.mxu0  ;;  %v759_v30 = vpop.f32.mrf.mxu1  ;;  %4436 = vmatprep.subr.mxu1 %v1429_v13  ;;  %v1041_v59 = vrot.slane %v6207_v14, 3  ;;  %v1038_v61 = vrot.slane %v6207_v14, 2  ;;  %v1410_v16 = vld [vmem:[%s8900_s3 + $0x318] sm:$0xff]  ;;  %v1050_v0 = vrot.slane %v6213_v17, 1 }
 0x122   : > { %v6242_v36 = vmax.f32 %v924_v21, 0.0  ;;  %v894_v37 = vmax.f32 %v846_v22, %v870_v23  ;;  %4382 = vmatprep.subr.mxu0 %v1396_v19  ;;  %4437 = vmatpush3.msra.mxu1 %v1413_v20  ;;  %v1377_v22 = vld [vmem:[%s8900_s3 + $0x210] sm:$0xff] }
 0x123   : > { %v552_v40 = vpop.f32.mrf.mxu0  ;;  %v761_v41 = vpop.f32.mrf.mxu1  ;;  %4383 = vmatpush3.msra.mxu0 %v1380_v24  ;;  %4438 = vmatprep.subr.mxu1 %v1428_v26  ;;  %v1425_v23 = vld [vmem:[%s8900_s3 + $0x390] sm:$0xff] }
 0x124   : > { %v925_v45 = vadd.f32 %v6010_v34, %v894_v37  ;;  %v847_v49 = vmax.f32 %v550_v28, %v552_v40  ;;  %v871_v51 = vmax.f32 %v759_v30, %v761_v41  ;;  %v8925_v52 = vrot.slane %v6242_v36, 1  ;;  %4384 = vmatprep.subr.mxu0 %v1395_v31  ;;  %4439 = vmatpush3.msra.mxu1 %v1412_v35  ;;  %v1392_v28 = vld [vmem:[%s8900_s3 + $0x288] sm:$0xff]  ;;  %v1409_v30 = vld [vmem:[%s8900_s3 + $0x310] sm:$0xff] }
 0x125   : > { %v556_v57 = vpop.f32.mrf.mxu0  ;;  %v765_v58 = vpop.f32.mrf.mxu1  ;;  %v8924_v60 = vrot.slane %v6242_v36, 3  ;;  %v8922_v62 = vrot.slane %v6242_v36, 2  ;;  %4385 = vmatpush3.msra.mxu0 %v1379_v38  ;;  %4440 = vmatprep.subr.mxu1 %v1427_v39  ;;  %v1376_v37 = vld [vmem:[%s8900_s3 + $0x208] sm:$0xff] }
 0x126   : > { %v895_v63 = vmax.f32 %v847_v49, %v871_v51  ;;  %v6269_v2 = vsel %vm965_vm0, %v1035_v42, %v8925_v52  ;;  %4386 = vmatprep.subr.mxu0 %v1394_v43  ;;  %4441 = vmatpush3.msra.mxu1 %v1411_v44  ;;  %v6274_v5 = vmax.f32 %v925_v45, 0.0  ;;  %v1424_v38 = vld [vmem:[%s8900_s3 + $0x388] sm:$0xff]  ;;  %v1391_v42 = vld [vmem:[%s8900_s3 + $0x280] sm:$0xff] }
 0x127   : > { %v558_v6 = vpop.f32.mrf.mxu0  ;;  %v767_v8 = vpop.f32.mrf.mxu1  ;;  %1795 = vmatprep.mubr.f32.mxu0 %v6269_v2  ;;  %v6280_v11 = vsel %vm975_vm1, %v1041_v59, %v8924_v60  ;;  %v6285_v13 = vsel %vm970_vm2, %v1038_v61, %v8922_v62  ;;  %4387 = vmatpush3.msra.mxu0 %v1378_v56  ;;  %v1408_v43 = vld [vmem:[%s8900_s3 + $0x308] sm:$0xff]  ;;  %v1375_v56 = vld [vmem:[%s8900_s3 + $0x200] sm:$0xff]  ;;  %v1601_v60 = vld [vmem:[%s8900_s3 + $0x910] sm:$0xff] }
 0x128   : > { %v926_v19 = vadd.f32 %v6010_v34, %v895_v63  ;;  %v848_v20 = vmax.f32 %v556_v57, %v558_v6  ;;  %v872_v21 = vmax.f32 %v765_v58, %v767_v8  ;;  %1900 = vmatprep.mubr.f32.mxu1 %v6280_v11  ;;  %1796 = vmatmul.mubr.f32.gmra.mxu0 %v6207_v14  ;;  %v1082_v41 = vrot.slane %v6274_v5, 1 }
 0x129   : > { %1901 = vmatmul.mubr.f32.gmra.mxu1 %v6285_v13  ;;  %v562_v24 = vpop.f32.mrf.mxu0  ;;  %v771_v26 = vpop.f32.mrf.mxu1  ;;  %4442 = vmatprep.subr.mxu1 %v1426_v3  ;;  %v1088_v59 = vrot.slane %v6274_v5, 3  ;;  %v1085_v63 = vrot.slane %v6274_v5, 2 }
 0x12a   : > { %v6309_v31 = vmax.f32 %v926_v19, 0.0  ;;  %v896_v35 = vmax.f32 %v848_v20, %v872_v21  ;;  %4388 = vmatprep.subr.mxu0 %v1393_v15  ;;  %4443 = vmatpush3.msra.mxu1 %v1410_v16  ;;  %v1423_v15 = vld [vmem:[%s8900_s3 + $0x380] sm:$0xff] }
 0x12b   : > { %v564_v39 = vpop.f32.mrf.mxu0  ;;  %v773_v40 = vpop.f32.mrf.mxu1  ;;  %4389 = vmatpush3.msra.mxu0 %v1377_v22  ;;  %4444 = vmatprep.subr.mxu1 %v1425_v23  ;;  %v1407_v23 = vld [vmem:[%s8900_s3 + $0x300] sm:$0xff] }
 0x12c   : > { %v927_v44 = vadd.f32 %v6010_v34, %v896_v35  ;;  %v849_v45 = vmax.f32 %v562_v24, %v564_v39  ;;  %v873_v49 = vmax.f32 %v771_v26, %v773_v40  ;;  %v8921_v51 = vrot.slane %v6309_v31, 1  ;;  %4390 = vmatprep.subr.mxu0 %v1392_v28  ;;  %4445 = vmatpush3.msra.mxu1 %v1409_v30  ;;  %v1470_v24 = vld [vmem:[%s8900_s3 + $0x4f8] sm:$0xff] }
 0x12d   : > { %v568_v57 = vpop.f32.mrf.mxu0  ;;  %v777_v58 = vpop.f32.mrf.mxu1  ;;  %v8920_v61 = vrot.slane %v6309_v31, 3  ;;  %v8919_v3 = vrot.slane %v6309_v31, 2  ;;  %4391 = vmatpush3.msra.mxu0 %v1376_v37  ;;  %4446 = vmatprep.subr.mxu1 %v1424_v38  ;;  %v1502_v35 = vld [vmem:[%s8900_s3 + $0x5f8] sm:$0xff] }
 0x12e   : > { %v897_v6 = vmax.f32 %v849_v45, %v873_v49  ;;  %v6336_v8 = vsel %vm965_vm0, %v1082_v41, %v8921_v51  ;;  %4392 = vmatprep.subr.mxu0 %v1391_v42  ;;  %4447 = vmatpush3.msra.mxu1 %v1408_v43  ;;  %v6341_v16 = vmax.f32 %v927_v44, 0.0 }
 0x12f   : > { %v570_v19 = vpop.f32.mrf.mxu0  ;;  %v779_v20 = vpop.f32.mrf.mxu1  ;;  %1800 = vmatprep.mubr.f32.mxu0 %v6336_v8  ;;  %v6347_v21 = vsel %vm975_vm1, %v1088_v59, %v8920_v61  ;;  %v6352_v22 = vsel %vm970_vm2, %v1085_v63, %v8919_v3  ;;  %4393 = vmatpush3.msra.mxu0 %v1375_v56  ;;  %v1570_v3 = vld [vmem:[%s8900_s3 + $0x818] sm:$0xff] }
 0x130   : > { %v928_v26 = vadd.f32 %v6010_v34, %v897_v6  ;;  %v850_v28 = vmax.f32 %v568_v57, %v570_v19  ;;  %v874_v30 = vmax.f32 %v777_v58, %v779_v20  ;;  %1905 = vmatprep.mubr.f32.mxu1 %v6347_v21  ;;  %1801 = vmatmul.mubr.f32.gmra.mxu0 %v6274_v5  ;;  %v1116_v43 = vrot.slane %v6341_v16, 1 }
 0x131   : > { %1906 = vmatmul.mubr.f32.gmra.mxu1 %v6352_v22  ;;  %v574_v37 = vpop.f32.mrf.mxu0  ;;  %v783_v38 = vpop.f32.mrf.mxu1  ;;  %4448 = vmatprep.subr.mxu1 %v1423_v15  ;;  %v1122_v57 = vrot.slane %v6341_v16, 3  ;;  %v1119_v59 = vrot.slane %v6341_v16, 2 }
 0x132   : > { %v6367_v39 = vmax.f32 %v928_v26, 0.0  ;;  %v898_v40 = vmax.f32 %v850_v28, %v874_v30  ;;  %4449 = vmatpush3.msra.mxu1 %v1407_v23  ;;  %4474 = vmatprep.subr.mxu0 %v1470_v24 }
 0x133   : > { %v576_v41 = vpop.f32.mrf.mxu0  ;;  %v785_v42 = vpop.f32.mrf.mxu1  ;;  %4530 = vmatprep.subr.mxu1 %v1502_v35 }
 0x134   : > { %v929_v44 = vadd.f32 %v6010_v34, %v898_v40  ;;  %v851_v45 = vmax.f32 %v574_v37, %v576_v41  ;;  %v875_v49 = vmax.f32 %v783_v38, %v785_v42  ;;  %v8916_v56 = vrot.slane %v6367_v39, 1 }
 0x135   : > { %v8915_v58 = vrot.slane %v6367_v39, 3  ;;  %v8914_v63 = vrot.slane %v6367_v39, 2 }
 0x136   : > { %v899_v6 = vmax.f32 %v851_v45, %v875_v49  ;;  %v6379_v15 = vsel %vm965_vm0, %v1116_v43, %v8916_v56  ;;  %v6381_v19 = vmax.f32 %v929_v44, 0.0  ;;  %v982_v44 = vrot.slane %v6016_v54, 4  ;;  %v1454_v49 = vld [vmem:[%s8900_s3 + $0x478] sm:$0xff]  ;;  %v1469_v54 = vld [vmem:[%s8900_s3 + $0x4f0] sm:$0xff] }
 0x137   : > { %1805 = vmatprep.mubr.f32.mxu0 %v6379_v15  ;;  %v6387_v20 = vsel %vm975_vm1, %v1122_v57, %v8915_v58  ;;  %v6392_v23 = vsel %vm970_vm2, %v1119_v59, %v8914_v63  ;;  %v981_v45 = vrot.slane %v6013_v46, 4  ;;  %v1486_v59 = vld [vmem:[%s8900_s3 + $0x578] sm:$0xff]  ;;  %v1453_v46 = vld [vmem:[%s8900_s3 + $0x470] sm:$0xff] }
 0x138   : > { %v930_v24 = vadd.f32 %v6010_v34, %v899_v6  ;;  %1910 = vmatprep.mubr.f32.mxu1 %v6387_v20  ;;  %1806 = vmatmul.mubr.f32.gmra.mxu0 %v6341_v16  ;;  %v1150_v28 = vrot.slane %v6381_v19, 1  ;;  %v1156_v30 = vrot.slane %v6381_v19, 3  ;;  %v1153_v38 = vrot.slane %v6381_v19, 2  ;;  %v1501_v6 = vld [vmem:[%s8900_s3 + $0x5f0] sm:$0xff] }
 0x139   : > { %1911 = vmatmul.mubr.f32.gmra.mxu1 %v6392_v23  ;;  %v983_v57 = vsel %vm980_vm3, %v981_v45, %v982_v44  ;;  %v1500_v45 = vld [vmem:[%s8900_s3 + $0x5e8] sm:$0xff] }
 0x13a   : > { %v6398_v26 = vmax.f32 %v930_v24, 0.0  ;;  %v1485_v24 = vld [vmem:[%s8900_s3 + $0x570] sm:$0xff] }
 0x13c   : > { %v8911_v35 = vrot.slane %v6398_v26, 1  ;;  %v8910_v37 = vrot.slane %v6398_v26, 3  ;;  %v8909_v40 = vrot.slane %v6398_v26, 2 }
 0x13e   : > { %v6409_v41 = vsel %vm965_vm0, %v1150_v28, %v8911_v35  ;;  %v6414_v42 = vsel %vm975_vm1, %v1156_v30, %v8910_v37  ;;  %v6419_v43 = vsel %vm970_vm2, %v1153_v38, %v8909_v40  ;;  %v6456_v28 = vpop.f32.mrf.mxu0  ;;  %v6458_v30 = vpop.f32.mrf.mxu1  ;;  %v1452_v38 = vld [vmem:[%s8900_s3 + $0x468] sm:$0xff] }
 0x13f   : > { %1810 = vmatprep.mubr.f32.mxu0 %v6409_v41  ;;  %1915 = vmatprep.mubr.f32.mxu1 %v6414_v42  ;;  %v1448_v40 = vld [vmem:[%s8900_s3 + $0x448] sm:$0xff] }
 0x140   : > { %1811 = vmatmul.mubr.f32.gmra.mxu0 %v6381_v19  ;;  %1916 = vmatmul.mubr.f32.gmra.mxu1 %v6419_v43  ;;  %v1496_v35 = vld [vmem:[%s8900_s3 + $0x5c8] sm:$0xff] }
 0x141   : > { %1985 = vmatprep.mubr.f32.mxu0 %v6029_v9  ;;  %2090 = vmatprep.mubr.f32.mxu1 %v6090_v55  ;;  %v1000_v55 = vrot.slane %v6053_v25, 4  ;;  %v999_v25 = vrot.slane %v6029_v9, 4  ;;  %v1467_v9 = vld [vmem:[%s8900_s3 + $0x4e0] sm:$0xff] }
 0x143   : > { %v6464_v44 = vsel %vm980_vm3, %v999_v25, %v1000_v55  ;;  %v1499_v55 = vld [vmem:[%s8900_s3 + $0x5e0] sm:$0xff] }
 0x144   : > { %1986 = vmatmul.mubr.f32.vlgmr.msra.gmra.mxu0 %v983_v57  ;;  %2091 = vmatmul.mubr.f32.vlgmr.msra.gmra.mxu1 %v6078_v48  ;;  %v1468_v48 = vld [vmem:[%s8900_s3 + $0x4e8] sm:$0xff]  ;;  %v1451_v57 = vld [vmem:[%s8900_s3 + $0x460] sm:$0xff] }
 0x145   : > { %4475 = vmatpush3.msra.mxu0 %v1454_v49  ;;  %1990 = vmatprep.mubr.f32.mxu0 %v6083_v50  ;;  %v1484_v49 = vld [vmem:[%s8900_s3 + $0x568] sm:$0xff] }
 0x146   : > { %2095 = vmatprep.mubr.f32.mxu1 %v6151_v33  ;;  %4476 = vmatprep.subr.mxu0 %v1469_v54  ;;  %v1018_v54 = vrot.slane %v6114_v4, 4  ;;  %v1483_v4 = vld [vmem:[%s8900_s3 + $0x560] sm:$0xff] }
 0x147   : > { %4531 = vmatpush3.msra.mxu1 %v1486_v59  ;;  %4477 = vmatpush3.msra.mxu0 %v1453_v46  ;;  %v6481_v59 = vpop.f32.mrf.mxu0  ;;  %v6483_v46 = vpop.f32.mrf.mxu1 }
 0x148   : > { %4532 = vmatprep.subr.mxu1 %v1501_v6  ;;  %4478 = vmatprep.subr.mxu0 %v1468_v48  ;;  %v1466_v6 = vld [vmem:[%s8900_s3 + $0x4d8] sm:$0xff]  ;;  %v1017_v48 = vrot.slane %v6083_v50, 4  ;;  %v852_v37 = vmax.f32 %v6456_v28, %v6481_v59  ;;  %v1480_v59 = vld [vmem:[%s8900_s3 + $0x548] sm:$0xff] }
 0x149   : > { %4533 = vmatpush3.msra.mxu1 %v1485_v24  ;;  %1991 = vmatmul.mubr.f32.gmra.mxu0 %v6464_v44  ;;  %v1450_v24 = vld [vmem:[%s8900_s3 + $0x458] sm:$0xff] }
 0x14a   : > { %2096 = vmatmul.mubr.f32.gmra.mxu1 %v6139_v27  ;;  %4479 = vmatpush3.msra.mxu0 %v1452_v38  ;;  %v6501_v25 = vsel %vm980_vm3, %v1017_v48, %v1018_v54  ;;  %v1498_v38 = vld [vmem:[%s8900_s3 + $0x5d8] sm:$0xff]  ;;  %v1449_v54 = vld [vmem:[%s8900_s3 + $0x450] sm:$0xff] }
 0x14b   : > { %4534 = vmatprep.subr.mxu1 %v1500_v45  ;;  %1995 = vmatprep.mubr.f32.mxu0 %v6144_v29  ;;  %v586_v45 = vpop.f32.mrf.mxu0  ;;  %v1481_v48 = vld [vmem:[%s8900_s3 + $0x550] sm:$0xff] }
 0x14c   : > { %2100 = vmatprep.mubr.f32.mxu1 %v6218_v18  ;;  %4480 = vmatprep.subr.mxu0 %v1467_v9  ;;  %v795_v9 = vpop.f32.mrf.mxu1 }
 0x14d   : > { %4535 = vmatpush3.msra.mxu1 %v1484_v49  ;;  %4481 = vmatpush3.msra.mxu0 %v1451_v57  ;;  %v1465_v49 = vld [vmem:[%s8900_s3 + $0x4d0] sm:$0xff]  ;;  %v1482_v57 = vld [vmem:[%s8900_s3 + $0x558] sm:$0xff] }
 0x14e   : > { %4536 = vmatprep.subr.mxu1 %v1499_v55  ;;  %4482 = vmatprep.subr.mxu0 %v1466_v6  ;;  %v1076_v55 = vrot.slane %v6175_v47, 4  ;;  %v1497_v6 = vld [vmem:[%s8900_s3 + $0x5d0] sm:$0xff]  ;;  %v797_v1 = vpop.f32.mrf.mxu1 }
 0x14f   : > { %4537 = vmatpush3.msra.mxu1 %v1483_v4  ;;  %1996 = vmatmul.mubr.f32.gmra.mxu0 %v6501_v25  ;;  %v1464_v4 = vld [vmem:[%s8900_s3 + $0x4c8] sm:$0xff]  ;;  %v877_v28 = vmax.f32 %v795_v9, %v797_v1  ;;  %v1495_v1 = vld [vmem:[%s8900_s3 + $0x5c0] sm:$0xff]  ;;  %v1109_v9 = vrot.slane %v6207_v14, 4 }
 0x150   : > { %2101 = vmatmul.mubr.f32.gmra.mxu1 %v6202_v12  ;;  %4483 = vmatpush3.msra.mxu0 %v1450_v24  ;;  %v1075_v24 = vrot.slane %v6144_v29, 4 }
 0x151   : > { %4538 = vmatprep.subr.mxu1 %v1498_v38  ;;  %2000 = vmatprep.mubr.f32.mxu0 %v6207_v14  ;;  %v588_v38 = vpop.f32.mrf.mxu0 }
 0x152   : > { %2105 = vmatprep.mubr.f32.mxu1 %v6285_v13  ;;  %4484 = vmatprep.subr.mxu0 %v1465_v49  ;;  %v6536_v49 = vsel %vm980_vm3, %v1075_v24, %v1076_v55  ;;  %v1494_v24 = vld [vmem:[%s8900_s3 + $0x5b8] sm:$0xff] }
 0x153   : > { %4539 = vmatpush3.msra.mxu1 %v1482_v57  ;;  %4485 = vmatpush3.msra.mxu0 %v1449_v54  ;;  %v876_v57 = vmax.f32 %v6458_v30, %v6483_v46  ;;  %v1463_v54 = vld [vmem:[%s8900_s3 + $0x4c0] sm:$0xff]  ;;  %v1110_v46 = vrot.slane %v6242_v36, 4 }
 0x154   : > { %4540 = vmatprep.subr.mxu1 %v1497_v6  ;;  %4486 = vmatprep.subr.mxu0 %v1464_v4  ;;  %v853_v6 = vmax.f32 %v586_v45, %v588_v38  ;;  %v1447_v30 = vld [vmem:[%s8900_s3 + $0x440] sm:$0xff]  ;;  %v1446_v4 = vld [vmem:[%s8900_s3 + $0x438] sm:$0xff] }
 0x155   : > { %4541 = vmatpush3.msra.mxu1 %v1481_v48  ;;  %2001 = vmatmul.mubr.f32.gmra.mxu0 %v6536_v49  ;;  %v1479_v45 = vld [vmem:[%s8900_s3 + $0x540] sm:$0xff]  ;;  %v6571_v48 = vsel %vm980_vm3, %v1109_v9, %v1110_v46  ;;  %v1478_v38 = vld [vmem:[%s8900_s3 + $0x538] sm:$0xff]  ;;  %v1477_v46 = vld [vmem:[%s8900_s3 + $0x530] sm:$0xff] }
 0x156   : > { %2106 = vmatmul.mubr.f32.gmra.mxu1 %v6269_v2  ;;  %4487 = vmatpush3.msra.mxu0 %v1448_v40  ;;  %v1462_v40 = vld [vmem:[%s8900_s3 + $0x4b8] sm:$0xff]  ;;  %v901_v55 = vmax.f32 %v853_v6, %v877_v28 }
 0x157   : > { %4542 = vmatprep.subr.mxu1 %v1496_v35  ;;  %2005 = vmatprep.mubr.f32.mxu0 %v6274_v5  ;;  %v900_v35 = vmax.f32 %v852_v37, %v876_v57  ;;  %v1461_v37 = vld [vmem:[%s8900_s3 + $0x4b0] sm:$0xff] }
 0x158   : > { %2110 = vmatprep.mubr.f32.mxu1 %v6352_v22  ;;  %4488 = vmatprep.subr.mxu0 %v1463_v54  ;;  %v1445_v57 = vld [vmem:[%s8900_s3 + $0x430] sm:$0xff]  ;;  %v1144_v54 = vrot.slane %v6309_v31, 4  ;;  %v932_v28 = vadd.f32 %v6010_v34, %v901_v55  ;;  %v1459_v55 = vld [vmem:[%s8900_s3 + $0x4a0] sm:$0xff] }
 0x159   : > { %4543 = vmatpush3.msra.mxu1 %v1480_v59  ;;  %4489 = vmatpush3.msra.mxu0 %v1447_v30  ;;  %v931_v6 = vadd.f32 %v6010_v34, %v900_v35  ;;  %v1493_v59 = vld [vmem:[%s8900_s3 + $0x5b0] sm:$0xff]  ;;  %v1460_v30 = vld [vmem:[%s8900_s3 + $0x4a8] sm:$0xff]  ;;  %v1143_v34 = vrot.slane %v6274_v5, 4 }
 0x15a   : > { %4544 = vmatprep.subr.mxu1 %v1495_v1  ;;  %4490 = vmatprep.subr.mxu0 %v1462_v40  ;;  %v1444_v1 = vld [vmem:[%s8900_s3 + $0x428] sm:$0xff]  ;;  %v6613_v35 = vmax.f32 %v932_v28, 0.0  ;;  %v1442_v28 = vld [vmem:[%s8900_s3 + $0x418] sm:$0xff] }
 0x15b   : > { %4545 = vmatpush3.msra.mxu1 %v1479_v45  ;;  %2006 = vmatmul.mubr.f32.gmra.mxu0 %v6571_v48  ;;  %v6606_v40 = vsel %vm980_vm3, %v1143_v34, %v1144_v54  ;;  %v1492_v45 = vld [vmem:[%s8900_s3 + $0x5a8] sm:$0xff]  ;;  %v6611_v9 = vmax.f32 %v931_v6, 0.0  ;;  %v1475_v54 = vld [vmem:[%s8900_s3 + $0x520] sm:$0xff]  ;;  %v1177_v6 = vrot.slane %v6341_v16, 4  ;;  %v1490_v34 = vld [vmem:[%s8900_s3 + $0x598] sm:$0xff] }
 0x15c   : > { %2111 = vmatmul.mubr.f32.gmra.mxu1 %v6336_v8  ;;  %4491 = vmatpush3.msra.mxu0 %v1446_v4  ;;  %v1476_v4 = vld [vmem:[%s8900_s3 + $0x528] sm:$0xff] }
 0x15d   : > { %4546 = vmatprep.subr.mxu1 %v1494_v24  ;;  %2010 = vmatprep.mubr.f32.mxu0 %v6341_v16  ;;  %8939 = vst [vmem:[#allocation5_spill] sm:$0xff] %v6611_v9  ;;  %v1443_v24 = vld [vmem:[%s8900_s3 + $0x420] sm:$0xff] }
 0x15e   : > { %2115 = vmatprep.mubr.f32.mxu1 %v6392_v23  ;;  %4492 = vmatprep.subr.mxu0 %v1461_v37  ;;  %v1178_v37 = vrot.slane %v6367_v39, 4 }
 0x15f   : > { %4547 = vmatpush3.msra.mxu1 %v1478_v38  ;;  %4493 = vmatpush3.msra.mxu0 %v1445_v57  ;;  %v1491_v38 = vld [vmem:[%s8900_s3 + $0x5a0] sm:$0xff]  ;;  %v1458_v57 = vld [vmem:[%s8900_s3 + $0x498] sm:$0xff] }
 0x160   : > { %4548 = vmatprep.subr.mxu1 %v1493_v59  ;;  %4494 = vmatprep.subr.mxu0 %v1460_v30  ;;  %v1187_v59 = vrot.slane %v6611_v9, 2  ;;  %v8912_v30 = vrot.slane %v6613_v35, 2 }
 0x161   : > { %4549 = vmatpush3.msra.mxu1 %v1477_v46  ;;  %2011 = vmatmul.mubr.f32.gmra.mxu0 %v6606_v40  ;;  %v6645_v46 = vsel %vm980_vm3, %v1177_v6, %v1178_v37  ;;  %v1489_v37 = vld [vmem:[%s8900_s3 + $0x590] sm:$0xff] }
 0x162   : > { %2116 = vmatmul.mubr.f32.gmra.mxu1 %v6379_v15  ;;  %4495 = vmatpush3.msra.mxu0 %v1444_v1  ;;  %v1457_v1 = vld [vmem:[%s8900_s3 + $0x490] sm:$0xff] }
 0x163   : > { %4550 = vmatprep.subr.mxu1 %v1492_v45  ;;  %2015 = vmatprep.mubr.f32.mxu0 %v6381_v19  ;;  %v1474_v45 = vld [vmem:[%s8900_s3 + $0x518] sm:$0xff]  ;;  %v1473_v6 = vld [vmem:[%s8900_s3 + $0x510] sm:$0xff] }
 0x164   : > { %2120 = vmatprep.mubr.f32.mxu1 %v6419_v43  ;;  %4496 = vmatprep.subr.mxu0 %v1459_v55  ;;  %v1184_v55 = vrot.slane %v6611_v9, 1 }
 0x165   : > { %4551 = vmatpush3.msra.mxu1 %v1476_v4  ;;  %4497 = vmatpush3.msra.mxu0 %v1443_v24  ;;  %v8913_v4 = vrot.slane %v6613_v35, 1  ;;  %v1441_v24 = vld [vmem:[%s8900_s3 + $0x410] sm:$0xff] }
 0x166   : > { %4552 = vmatprep.subr.mxu1 %v1491_v38  ;;  %4498 = vmatprep.subr.mxu0 %v1458_v57  ;;  %v1212_v38 = vrot.slane %v6398_v26, 4  ;;  %v6671_v57 = vsel %vm970_vm2, %v1187_v59, %v8912_v30  ;;  %v1440_v59 = vld [vmem:[%s8900_s3 + $0x408] sm:$0xff] }
 0x167   : > { %4553 = vmatpush3.msra.mxu1 %v1475_v54  ;;  %2016 = vmatmul.mubr.f32.gmra.mxu0 %v6645_v46  ;;  %v1456_v54 = vld [vmem:[%s8900_s3 + $0x488] sm:$0xff] }
 0x168   : > { %2121 = vmatmul.mubr.f32.gmra.mxu1 %v6409_v41  ;;  %4499 = vmatpush3.msra.mxu0 %v1442_v28  ;;  %v1211_v28 = vrot.slane %v6381_v19, 4 }
 0x169   : > { %4554 = vmatprep.subr.mxu1 %v1490_v34  ;;  %2020 = vmatprep.mubr.f32.mxu0 %v6611_v9  ;;  %v6683_v34 = vsel %vm965_vm0, %v1184_v55, %v8913_v4  ;;  %v1472_v55 = vld [vmem:[%s8900_s3 + $0x508] sm:$0xff] }
 0x16a   : > { %4500 = vmatprep.subr.mxu0 %v1457_v1  ;;  %4555 = vmatpush3.msra.mxu1 %v1474_v45  ;;  %v6690_v1 = vsel %vm980_vm3, %v1211_v28, %v1212_v38  ;;  %v1488_v45 = vld [vmem:[%s8900_s3 + $0x588] sm:$0xff]  ;;  %v1487_v38 = vld [vmem:[%s8900_s3 + $0x580] sm:$0xff]  ;;  %v1518_v28 = vld [vmem:[%s8900_s3 + $0x678] sm:$0xff] }
 0x16b   : > { %4501 = vmatpush3.msra.mxu0 %v1441_v24  ;;  %4556 = vmatprep.subr.mxu1 %v1489_v37  ;;  %v1455_v24 = vld [vmem:[%s8900_s3 + $0x480] sm:$0xff] }
 0x16c   : > { %2125 = vmatprep.mubr.f32.mxu1 %v6671_v57  ;;  %4502 = vmatprep.subr.mxu0 %v1456_v54  ;;  %v1439_v37 = vld [vmem:[%s8900_s3 + $0x400] sm:$0xff]  ;;  %v1534_v54 = vld [vmem:[%s8900_s3 + $0x6f8] sm:$0xff] }
 0x16d   : > { %4557 = vmatpush3.msra.mxu1 %v1473_v6  ;;  %2021 = vmatmul.mubr.f32.gmra.mxu0 %v6690_v1  ;;  %v1471_v6 = vld [vmem:[%s8900_s3 + $0x500] sm:$0xff] }
 0x16e   : > { %2126 = vmatmul.mubr.f32.gmra.mxu1 %v6683_v34  ;;  %4503 = vmatpush3.msra.mxu0 %v1440_v59  ;;  %v1566_v59 = vld [vmem:[%s8900_s3 + $0x7f8] sm:$0xff] }
 0x16f   : > { %4558 = vmatprep.subr.mxu1 %v1488_v45  ;;  %4504 = vmatprep.subr.mxu0 %v1455_v24  ;;  %v1517_v45 = vld [vmem:[%s8900_s3 + $0x670] sm:$0xff] }
 0x170   : > { %2195 = vmatprep.mubr.f32.mxu0 %v6464_v44  ;;  %4559 = vmatpush3.msra.mxu1 %v1472_v55  ;;  %v1533_v44 = vld [vmem:[%s8900_s3 + $0x6f0] sm:$0xff]  ;;  %v6745_v55 = vpop.f32.mrf.mxu0 }
 0x171   : > { %2300 = vmatprep.mubr.f32.mxu1 %v6139_v27  ;;  %4505 = vmatpush3.msra.mxu0 %v1439_v37  ;;  %v1550_v27 = vld [vmem:[%s8900_s3 + $0x778] sm:$0xff]  ;;  %v1549_v24 = vld [vmem:[%s8900_s3 + $0x770] sm:$0xff]  ;;  %v6747_v37 = vpop.f32.mrf.mxu1 }
 0x172   : > { %4560 = vmatprep.subr.mxu1 %v1487_v38  ;;  %4586 = vmatprep.subr.mxu0 %v1534_v54  ;;  %v1516_v38 = vld [vmem:[%s8900_s3 + $0x668] sm:$0xff] }
 0x173   : > { %4561 = vmatpush3.msra.mxu1 %v1471_v6  ;;  %2196 = vmatmul.mubr.f32.vlgmr.msra.gmra.mxu0 %v6087_v53  ;;  %v1565_v53 = vld [vmem:[%s8900_s3 + $0x7f0] sm:$0xff]  ;;  %v1564_v54 = vld [vmem:[%s8900_s3 + $0x7e8] sm:$0xff]  ;;  %v1531_v6 = vld [vmem:[%s8900_s3 + $0x6e0] sm:$0xff] }
 0x174   : > { %2301 = vmatmul.mubr.f32.vlgmr.msra.gmra.mxu1 %v6083_v50  ;;  %4587 = vmatpush3.msra.mxu0 %v1518_v28  ;;  %v1532_v50 = vld [vmem:[%s8900_s3 + $0x6e8] sm:$0xff] }
 0x175   : > { %4642 = vmatprep.subr.mxu1 %v1566_v59  ;;  %2200 = vmatprep.mubr.f32.mxu0 %v6501_v25  ;;  %v1548_v28 = vld [vmem:[%s8900_s3 + $0x768] sm:$0xff]  ;;  %v1515_v59 = vld [vmem:[%s8900_s3 + $0x660] sm:$0xff] }
 0x176   : > { %2305 = vmatprep.mubr.f32.mxu1 %v6202_v12  ;;  %4588 = vmatprep.subr.mxu0 %v1533_v44  ;;  %v594_v44 = vpop.f32.mrf.mxu0 }
 0x177   : > { %4643 = vmatpush3.msra.mxu1 %v1550_v27  ;;  %4589 = vmatpush3.msra.mxu0 %v1517_v45  ;;  %v803_v27 = vpop.f32.mrf.mxu1  ;;  %v1563_v45 = vld [vmem:[%s8900_s3 + $0x7e0] sm:$0xff]  ;;  %v854_v63 = vmax.f32 %v6745_v55, %v594_v44  ;;  %v1544_v55 = vld [vmem:[%s8900_s3 + $0x748] sm:$0xff] }
 0x178   : > { %4644 = vmatprep.subr.mxu1 %v1565_v53  ;;  %4590 = vmatprep.subr.mxu0 %v1532_v50  ;;  %v1530_v53 = vld [vmem:[%s8900_s3 + $0x6d8] sm:$0xff]  ;;  %v1547_v50 = vld [vmem:[%s8900_s3 + $0x760] sm:$0xff]  ;;  %v878_v58 = vmax.f32 %v6747_v37, %v803_v27 }
 0x179   : > { %4645 = vmatpush3.msra.mxu1 %v1549_v24  ;;  %2201 = vmatmul.mubr.f32.gmra.mxu0 %v6148_v32  ;;  %v1514_v24 = vld [vmem:[%s8900_s3 + $0x658] sm:$0xff]  ;;  %v807_v30 = vpop.f32.mrf.mxu1  ;;  %v1511_v37 = vld [vmem:[%s8900_s3 + $0x640] sm:$0xff] }
 0x17a   : > { %2306 = vmatmul.mubr.f32.gmra.mxu1 %v6144_v29  ;;  %4591 = vmatpush3.msra.mxu0 %v1516_v38  ;;  %v1562_v38 = vld [vmem:[%s8900_s3 + $0x7d8] sm:$0xff]  ;;  %v1559_v44 = vld [vmem:[%s8900_s3 + $0x7c0] sm:$0xff]  ;;  %v902_v27 = vmax.f32 %v854_v63, %v878_v58  ;;  %v1525_v58 = vld [vmem:[%s8900_s3 + $0x6b0] sm:$0xff] }
 0x17b   : > { %4646 = vmatprep.subr.mxu1 %v1564_v54  ;;  %2205 = vmatprep.mubr.f32.mxu0 %v6536_v49  ;;  %v598_v54 = vpop.f32.mrf.mxu0  ;;  %v809_v4 = vpop.f32.mrf.mxu1  ;;  %v1509_v63 = vld [vmem:[%s8900_s3 + $0x630] sm:$0xff] }
 0x17c   : > { %2310 = vmatprep.mubr.f32.mxu1 %v6269_v2  ;;  %4592 = vmatprep.subr.mxu0 %v1531_v6  ;;  %v1529_v6 = vld [vmem:[%s8900_s3 + $0x6d0] sm:$0xff]  ;;  %v879_v56 = vmax.f32 %v807_v30, %v809_v4  ;;  %v1526_v30 = vld [vmem:[%s8900_s3 + $0x6b8] sm:$0xff]  ;;  %v1543_v4 = vld [vmem:[%s8900_s3 + $0x740] sm:$0xff] }
 0x17d   : > { %4647 = vmatpush3.msra.mxu1 %v1548_v28  ;;  %4593 = vmatpush3.msra.mxu0 %v1515_v59  ;;  %v1546_v28 = vld [vmem:[%s8900_s3 + $0x758] sm:$0xff]  ;;  %v1513_v59 = vld [vmem:[%s8900_s3 + $0x650] sm:$0xff] }
 0x17e   : > { %4648 = vmatprep.subr.mxu1 %v1563_v45  ;;  %4594 = vmatprep.subr.mxu0 %v1530_v53  ;;  %v1561_v45 = vld [vmem:[%s8900_s3 + $0x7d0] sm:$0xff]  ;;  %v1528_v53 = vld [vmem:[%s8900_s3 + $0x6c8] sm:$0xff] }
 0x17f   : > { %4649 = vmatpush3.msra.mxu1 %v1547_v50  ;;  %2206 = vmatmul.mubr.f32.gmra.mxu0 %v6213_v17  ;;  %v1545_v50 = vld [vmem:[%s8900_s3 + $0x750] sm:$0xff] }
 0x180   : > { %2311 = vmatmul.mubr.f32.gmra.mxu1 %v6207_v14  ;;  %4595 = vmatpush3.msra.mxu0 %v1514_v24  ;;  %v600_v24 = vpop.f32.mrf.mxu0 }
 0x181   : > { %4650 = vmatprep.subr.mxu1 %v1562_v38  ;;  %2210 = vmatprep.mubr.f32.mxu0 %v6571_v48  ;;  %v1512_v38 = vld [vmem:[%s8900_s3 + $0x648] sm:$0xff] }
 0x182   : > { %2315 = vmatprep.mubr.f32.mxu1 %v6336_v8  ;;  %4596 = vmatprep.subr.mxu0 %v1529_v6  ;;  %v1560_v6 = vld [vmem:[%s8900_s3 + $0x7c8] sm:$0xff] }
 0x183   : > { %4651 = vmatpush3.msra.mxu1 %v1546_v28  ;;  %4597 = vmatpush3.msra.mxu0 %v1513_v59  ;;  %v1527_v28 = vld [vmem:[%s8900_s3 + $0x6c0] sm:$0xff]  ;;  %v855_v59 = vmax.f32 %v598_v54, %v600_v24 }
 0x184   : > { %4652 = vmatprep.subr.mxu1 %v1561_v45  ;;  %4598 = vmatprep.subr.mxu0 %v1528_v53  ;;  %v1510_v45 = vld [vmem:[%s8900_s3 + $0x638] sm:$0xff] }
 0x185   : > { %4653 = vmatpush3.msra.mxu1 %v1545_v50  ;;  %2211 = vmatmul.mubr.f32.gmra.mxu0 %v6280_v11  ;;  %v903_v54 = vmax.f32 %v855_v59, %v879_v56  ;;  %v1558_v53 = vld [vmem:[%s8900_s3 + $0x7b8] sm:$0xff]  ;;  %v6855_v50 = vld [vmem:[%s8899_s2] ss:$0 sm:$0xff]  ;;  %v1541_v59 = vld [vmem:[%s8900_s3 + $0x730] sm:$0xff] }
 0x186   : > { %2316 = vmatmul.mubr.f32.gmra.mxu1 %v6274_v5  ;;  %4599 = vmatpush3.msra.mxu0 %v1512_v38  ;;  %v1542_v56 = vld [vmem:[%s8900_s3 + $0x738] sm:$0xff]  ;;  %v933_v24 = vadd.f32 %v6855_v50, %v902_v27  ;;  %v1540_v27 = vld [vmem:[%s8900_s3 + $0x728] sm:$0xff] }
 0x187   : > { %4654 = vmatprep.subr.mxu1 %v1560_v6  ;;  %2215 = vmatprep.mubr.f32.mxu0 %v6606_v40  ;;  %v934_v38 = vadd.f32 %v6855_v50, %v903_v54  ;;  %v1557_v6 = vld [vmem:[%s8900_s3 + $0x7b0] sm:$0xff]  ;;  %v1507_v54 = vld [vmem:[%s8900_s3 + $0x620] sm:$0xff] }
 0x188   : > { %2320 = vmatprep.mubr.f32.mxu1 %v6379_v15  ;;  %4600 = vmatprep.subr.mxu0 %v1527_v28  ;;  %v1524_v28 = vld [vmem:[%s8900_s3 + $0x6a8] sm:$0xff] }
 0x189   : > { %4655 = vmatpush3.msra.mxu1 %v1544_v55  ;;  %4601 = vmatpush3.msra.mxu0 %v1511_v37  ;;  %v1508_v55 = vld [vmem:[%s8900_s3 + $0x628] sm:$0xff] }
 0x18a   : > { %4656 = vmatprep.subr.mxu1 %v1559_v44  ;;  %4602 = vmatprep.subr.mxu0 %v1526_v30  ;;  %v1556_v37 = vld [vmem:[%s8900_s3 + $0x7a8] sm:$0xff]  ;;  %v6876_v44 = vmax.f32 %v933_v24, 0.0  ;;  %v6878_v30 = vmax.f32 %v934_v38, 0.0  ;;  %v1506_v24 = vld [vmem:[%s8900_s3 + $0x618] sm:$0xff] }
 0x18b   : > { %4657 = vmatpush3.msra.mxu1 %v1543_v4  ;;  %2216 = vmatmul.mubr.f32.gmra.mxu0 %v6347_v21  ;;  %v1523_v4 = vld [vmem:[%s8900_s3 + $0x6a0] sm:$0xff] }
 0x18c   : > { %2321 = vmatmul.mubr.f32.gmra.mxu1 %v6341_v16  ;;  %4603 = vmatpush3.msra.mxu0 %v1510_v45  ;;  %8940 = vst [vmem:[#allocation6_spill] sm:$0xff] %v6876_v44  ;;  %v1555_v45 = vld [vmem:[%s8900_s3 + $0x7a0] sm:$0xff]  ;;  %v1218_v38 = vrot.slane %v6876_v44, 1  ;;  %v1221_v51 = vrot.slane %v6876_v44, 2 }
 0x18d   : > { %4658 = vmatprep.subr.mxu1 %v1558_v53  ;;  %2220 = vmatprep.mubr.f32.mxu0 %v6645_v46  ;;  %v1522_v53 = vld [vmem:[%s8900_s3 + $0x698] sm:$0xff] }
 0x18e   : > { %2325 = vmatprep.mubr.f32.mxu1 %v6409_v41  ;;  %4604 = vmatprep.subr.mxu0 %v1525_v58  ;;  %v1539_v58 = vld [vmem:[%s8900_s3 + $0x720] sm:$0xff] }
 0x18f   : > { %4659 = vmatpush3.msra.mxu1 %v1542_v56  ;;  %4605 = vmatpush3.msra.mxu0 %v1509_v63  ;;  %v1245_v56 = vrot.slane %v6611_v9, 4  ;;  %v1246_v63 = vrot.slane %v6613_v35, 4 }
 0x190   : > { %4660 = vmatprep.subr.mxu1 %v1557_v6  ;;  %4606 = vmatprep.subr.mxu0 %v1524_v28  ;;  %v8917_v6 = vrot.slane %v6878_v30, 1  ;;  %v1554_v28 = vld [vmem:[%s8900_s3 + $0x798] sm:$0xff] }
 0x191   : > { %4661 = vmatpush3.msra.mxu1 %v1541_v59  ;;  %2221 = vmatmul.mubr.f32.gmra.mxu0 %v6387_v20  ;;  %v1521_v59 = vld [vmem:[%s8900_s3 + $0x690] sm:$0xff] }
 0x192   : > { %2326 = vmatmul.mubr.f32.gmra.mxu1 %v6381_v19  ;;  %4607 = vmatpush3.msra.mxu0 %v1508_v55  ;;  %v1538_v55 = vld [vmem:[%s8900_s3 + $0x718] sm:$0xff] }
 0x193   : > { %4662 = vmatprep.subr.mxu1 %v1556_v37  ;;  %2225 = vmatprep.mubr.f32.mxu0 %v6690_v1  ;;  %v6921_v37 = vsel %vm980_vm3, %v1245_v56, %v1246_v63  ;;  %v1537_v56 = vld [vmem:[%s8900_s3 + $0x710] sm:$0xff]  ;;  %v1504_v63 = vld [vmem:[%s8900_s3 + $0x608] sm:$0xff] }
 0x194   : > { %2330 = vmatprep.mubr.f32.mxu1 %v6683_v34  ;;  %4608 = vmatprep.subr.mxu0 %v1523_v4  ;;  %v1505_v4 = vld [vmem:[%s8900_s3 + $0x610] sm:$0xff] }
 0x195   : > { %4663 = vmatpush3.msra.mxu1 %v1540_v27  ;;  %4609 = vmatpush3.msra.mxu0 %v1507_v54  ;;  %v1553_v27 = vld [vmem:[%s8900_s3 + $0x790] sm:$0xff]  ;;  %v1190_v54 = vrot.slane %v6611_v9, 3 }
 0x196   : > { %4664 = vmatprep.subr.mxu1 %v1555_v45  ;;  %4610 = vmatprep.subr.mxu0 %v1522_v53  ;;  %v8918_v45 = vrot.slane %v6613_v35, 3  ;;  %v6935_v53 = vsel %vm965_vm0, %v1218_v38, %v8917_v6  ;;  %v1552_v38 = vld [vmem:[%s8900_s3 + $0x788] sm:$0xff] }
 0x197   : > { %4665 = vmatpush3.msra.mxu1 %v1539_v58  ;;  %2226 = vmatmul.mubr.f32.gmra.mxu0 %v6414_v42  ;;  %v1520_v58 = vld [vmem:[%s8900_s3 + $0x688] sm:$0xff] }
 0x198   : > { %2331 = vmatmul.mubr.f32.gmra.mxu1 %v6611_v9  ;;  %4611 = vmatpush3.msra.mxu0 %v1506_v24  ;;  %v6950_v24 = vsel %vm975_vm1, %v1190_v54, %v8918_v45  ;;  %v1535_v54 = vld [vmem:[%s8900_s3 + $0x700] sm:$0xff] }
 0x199   : > { %4666 = vmatprep.subr.mxu1 %v1554_v28  ;;  %2230 = vmatprep.mubr.f32.mxu0 %v6921_v37  ;;  %v1519_v28 = vld [vmem:[%s8900_s3 + $0x680] sm:$0xff] }
 0x19a   : > { %4612 = vmatprep.subr.mxu0 %v1521_v59  ;;  %4667 = vmatpush3.msra.mxu1 %v1538_v55  ;;  %v1536_v59 = vld [vmem:[%s8900_s3 + $0x708] sm:$0xff]  ;;  %v1503_v55 = vld [vmem:[%s8900_s3 + $0x600] sm:$0xff] }
 0x19b   : > { %4613 = vmatpush3.msra.mxu0 %v1505_v4  ;;  %4668 = vmatprep.subr.mxu1 %v1553_v27  ;;  %v1551_v4 = vld [vmem:[%s8900_s3 + $0x780] sm:$0xff]  ;;  %v1598_v27 = vld [vmem:[%s8900_s3 + $0x8f8] sm:$0xff] }
 0x19c   : > { %2335 = vmatprep.mubr.f32.mxu1 %v6935_v53  ;;  %4614 = vmatprep.subr.mxu0 %v1520_v58  ;;  %v1582_v58 = vld [vmem:[%s8900_s3 + $0x878] sm:$0xff] }
 0x19d   : > { %4669 = vmatpush3.msra.mxu1 %v1537_v56  ;;  %2231 = vmatmul.mubr.f32.gmra.mxu0 %v6950_v24  ;;  %v1630_v56 = vld [vmem:[%s8900_s3 + $0x9f8] sm:$0xff] }
 0x19e   : > { %2336 = vmatmul.mubr.f32.gmra.mxu1 %v6876_v44  ;;  %4615 = vmatpush3.msra.mxu0 %v1504_v63  ;;  %v1581_v63 = vld [vmem:[%s8900_s3 + $0x870] sm:$0xff] }
 0x19f   : > { %4670 = vmatprep.subr.mxu1 %v1552_v38  ;;  %4616 = vmatprep.subr.mxu0 %v1519_v28  ;;  %v1613_v38 = vld [vmem:[%s8900_s3 + $0x970] sm:$0xff]  ;;  %v1580_v28 = vld [vmem:[%s8900_s3 + $0x868] sm:$0xff] }
 0x1a0   : > { %2405 = vmatprep.mubr.f32.mxu0 %v6148_v32  ;;  %4671 = vmatpush3.msra.mxu1 %v1536_v59  ;;  %v1597_v32 = vld [vmem:[%s8900_s3 + $0x8f0] sm:$0xff]  ;;  %v1628_v59 = vld [vmem:[%s8900_s3 + $0x9e8] sm:$0xff] }
 0x1a1   : > { %2510 = vmatprep.mubr.f32.mxu1 %v6144_v29  ;;  %4617 = vmatpush3.msra.mxu0 %v1503_v55  ;;  %v1614_v29 = vld [vmem:[%s8900_s3 + $0x978] sm:$0xff]  ;;  %v1595_v55 = vld [vmem:[%s8900_s3 + $0x8e0] sm:$0xff] }
 0x1a2   : > { %4672 = vmatprep.subr.mxu1 %v1551_v4  ;;  %4698 = vmatprep.subr.mxu0 %v1598_v27  ;;  %v1612_v4 = vld [vmem:[%s8900_s3 + $0x968] sm:$0xff]  ;;  %v1579_v27 = vld [vmem:[%s8900_s3 + $0x860] sm:$0xff] }
 0x1a3   : > { %4673 = vmatpush3.msra.mxu1 %v1535_v54  ;;  %2406 = vmatmul.mubr.f32.vlgmr.msra.gmra.mxu0 %v6151_v33  ;;  %v1629_v33 = vld [vmem:[%s8900_s3 + $0x9f0] sm:$0xff]  ;;  %v1627_v54 = vld [vmem:[%s8900_s3 + $0x9e0] sm:$0xff] }
 0x1a4   : > { %2511 = vmatmul.mubr.f32.vlgmr.msra.gmra.mxu1 %v6501_v25  ;;  %4699 = vmatpush3.msra.mxu0 %v1582_v58  ;;  %v1596_v25 = vld [vmem:[%s8900_s3 + $0x8e8] sm:$0xff]  ;;  %v1611_v58 = vld [vmem:[%s8900_s3 + $0x960] sm:$0xff] }
 0x1a5   : > { %4754 = vmatprep.subr.mxu1 %v1630_v56  ;;  %2410 = vmatprep.mubr.f32.mxu0 %v6213_v17  ;;  %v7033_v56 = vpop.f32.mrf.mxu0 }
 0x1a6   : > { %2515 = vmatprep.mubr.f32.mxu1 %v6207_v14  ;;  %4700 = vmatprep.subr.mxu0 %v1597_v32  ;;  %v1578_v32 = vld [vmem:[%s8900_s3 + $0x858] sm:$0xff] }
 0x1a7   : > { %4755 = vmatpush3.msra.mxu1 %v1614_v29  ;;  %4701 = vmatpush3.msra.mxu0 %v1581_v63  ;;  %v7038_v29 = vpop.f32.mrf.mxu1  ;;  %v1626_v63 = vld [vmem:[%s8900_s3 + $0x9d8] sm:$0xff] }
 0x1a8   : > { %4756 = vmatprep.subr.mxu1 %v1629_v33  ;;  %4702 = vmatprep.subr.mxu0 %v1596_v25  ;;  %v1593_v33 = vld [vmem:[%s8900_s3 + $0x8d0] sm:$0xff]  ;;  %v1610_v25 = vld [vmem:[%s8900_s3 + $0x958] sm:$0xff] }
 0x1a9   : > { %4757 = vmatpush3.msra.mxu1 %v1613_v38  ;;  %2411 = vmatmul.mubr.f32.gmra.mxu0 %v6218_v18  ;;  %v1577_v38 = vld [vmem:[%s8900_s3 + $0x850] sm:$0xff] }
 0x1aa   : > { %2516 = vmatmul.mubr.f32.gmra.mxu1 %v6536_v49  ;;  %4703 = vmatpush3.msra.mxu0 %v1580_v28  ;;  %v1594_v49 = vld [vmem:[%s8900_s3 + $0x8d8] sm:$0xff]  ;;  %v7054_v28 = vpop.f32.mrf.mxu0 }
 0x1ab   : > { %4758 = vmatprep.subr.mxu1 %v1628_v59  ;;  %2415 = vmatprep.mubr.f32.mxu0 %v6280_v11  ;;  %v1625_v59 = vld [vmem:[%s8900_s3 + $0x9d0] sm:$0xff] }
 0x1ac   : > { %2520 = vmatprep.mubr.f32.mxu1 %v6274_v5  ;;  %4704 = vmatprep.subr.mxu0 %v1595_v55  ;;  %v815_v55 = vpop.f32.mrf.mxu1 }
 0x1ad   : > { %4759 = vmatpush3.msra.mxu1 %v1612_v4  ;;  %4705 = vmatpush3.msra.mxu0 %v1579_v27  ;;  %v1609_v4 = vld [vmem:[%s8900_s3 + $0x950] sm:$0xff]  ;;  %v7067_v27 = vpop.f32.mrf.mxu0 }
 0x1ae   : > { %4760 = vmatprep.subr.mxu1 %v1627_v54  ;;  %4706 = vmatprep.subr.mxu0 %v1594_v49  ;;  %v1576_v54 = vld [vmem:[%s8900_s3 + $0x848] sm:$0xff]  ;;  %v7072_v49 = vpop.f32.mrf.mxu1 }
 0x1af   : > { %4761 = vmatpush3.msra.mxu1 %v1611_v58  ;;  %2416 = vmatmul.mubr.f32.gmra.mxu0 %v6285_v13  ;;  %v1624_v58 = vld [vmem:[%s8900_s3 + $0x9c8] sm:$0xff] }
 0x1b0   : > { %2521 = vmatmul.mubr.f32.gmra.mxu1 %v6571_v48  ;;  %4707 = vmatpush3.msra.mxu0 %v1578_v32  ;;  %v1592_v48 = vld [vmem:[%s8900_s3 + $0x8c8] sm:$0xff]  ;;  %v1591_v32 = vld [vmem:[%s8900_s3 + $0x8c0] sm:$0xff] }
 0x1b1   : > { %4762 = vmatprep.subr.mxu1 %v1626_v63  ;;  %2420 = vmatprep.mubr.f32.mxu0 %v6347_v21  ;;  %v1608_v63 = vld [vmem:[%s8900_s3 + $0x948] sm:$0xff] }
 0x1b2   : > { %2525 = vmatprep.mubr.f32.mxu1 %v6341_v16  ;;  %4708 = vmatprep.subr.mxu0 %v1593_v33  ;;  %v1575_v33 = vld [vmem:[%s8900_s3 + $0x840] sm:$0xff] }
 0x1b3   : > { %4763 = vmatpush3.msra.mxu1 %v1610_v25  ;;  %4709 = vmatpush3.msra.mxu0 %v1577_v38  ;;  %v7088_v25 = vpop.f32.mrf.mxu0  ;;  %v1623_v38 = vld [vmem:[%s8900_s3 + $0x9c0] sm:$0xff] }
 0x1b4   : > { %4764 = vmatprep.subr.mxu1 %v1625_v59  ;;  %4710 = vmatprep.subr.mxu0 %v1592_v48  ;;  %v7097_v59 = vpop.f32.mrf.mxu1  ;;  %v1607_v48 = vld [vmem:[%s8900_s3 + $0x940] sm:$0xff] }
 0x1b5   : > { %4765 = vmatpush3.msra.mxu1 %v1609_v4  ;;  %2421 = vmatmul.mubr.f32.gmra.mxu0 %v6352_v22  ;;  %v7103_v4 = vpop.f32.mrf.mxu0 }
 0x1b6   : > { %2526 = vmatmul.mubr.f32.gmra.mxu1 %v6606_v40  ;;  %4711 = vmatpush3.msra.mxu0 %v1576_v54  ;;  %v1590_v40 = vld [vmem:[%s8900_s3 + $0x8b8] sm:$0xff] }
 0x1b7   : > { %4766 = vmatprep.subr.mxu1 %v1624_v58  ;;  %2425 = vmatprep.mubr.f32.mxu0 %v6387_v20  ;;  %v1574_v54 = vld [vmem:[%s8900_s3 + $0x838] sm:$0xff]  ;;  %v7108_v58 = vpop.f32.mrf.mxu1  ;;  %v7127_v6 = vpop.f32.mrf.mxu0 }
 0x1b8   : > { %2530 = vmatprep.mubr.f32.mxu1 %v6381_v19  ;;  %4712 = vmatprep.subr.mxu0 %v1591_v32  ;;  %v1622_v32 = vld [vmem:[%s8900_s3 + $0x9b8] sm:$0xff] }
 0x1b9   : > { %4767 = vmatpush3.msra.mxu1 %v1608_v63  ;;  %4713 = vmatpush3.msra.mxu0 %v1575_v33  ;;  %v1589_v63 = vld [vmem:[%s8900_s3 + $0x8b0] sm:$0xff]  ;;  %v1606_v33 = vld [vmem:[%s8900_s3 + $0x938] sm:$0xff]  ;;  %v7148_v45 = vpop.f32.mrf.mxu0 }
 0x1ba   : > { %4768 = vmatprep.subr.mxu1 %v1623_v38  ;;  %4714 = vmatprep.subr.mxu0 %v1590_v40  ;;  %v856_v38 = vmax.f32 %v7033_v56, %v7054_v28  ;;  %v880_v40 = vmax.f32 %v7038_v29, %v815_v55  ;;  %v7136_v56 = vpop.f32.mrf.mxu1  ;;  %v1605_v29 = vld [vmem:[%s8900_s3 + $0x930] sm:$0xff]  ;;  %v1572_v28 = vld [vmem:[%s8900_s3 + $0x828] sm:$0xff] }
 0x1bb   : > { %4769 = vmatpush3.msra.mxu1 %v1607_v48  ;;  %2426 = vmatmul.mubr.f32.gmra.mxu0 %v6392_v23  ;;  %v1573_v48 = vld [vmem:[%s8900_s3 + $0x830] sm:$0xff] }
 0x1bc   : > { %2531 = vmatmul.mubr.f32.gmra.mxu1 %v6645_v46  ;;  %4715 = vmatpush3.msra.mxu0 %v1574_v54  ;;  %v1621_v46 = vld [vmem:[%s8900_s3 + $0x9b0] sm:$0xff]  ;;  %v1588_v54 = vld [vmem:[%s8900_s3 + $0x8a8] sm:$0xff]  ;;  %v904_v55 = vmax.f32 %v856_v38, %v880_v40  ;;  %v1571_v40 = vld [vmem:[%s8900_s3 + $0x820] sm:$0xff] }
 0x1bd   : > { %4770 = vmatprep.subr.mxu1 %v1622_v32  ;;  %2430 = vmatprep.mubr.f32.mxu0 %v6414_v42  ;;  %v1620_v32 = vld [vmem:[%s8900_s3 + $0x9a8] sm:$0xff] }
 0x1be   : > { %2535 = vmatprep.mubr.f32.mxu1 %v6611_v9  ;;  %4716 = vmatprep.subr.mxu0 %v1589_v63  ;;  %v1587_v63 = vld [vmem:[%s8900_s3 + $0x8a0] sm:$0xff]  ;;  %v1604_v38 = vld [vmem:[%s8900_s3 + $0x928] sm:$0xff] }
 0x1bf   : > { %4771 = vmatpush3.msra.mxu1 %v1606_v33  ;;  %4717 = vmatpush3.msra.mxu0 %v1573_v48  ;;  %v7154_v33 = vpop.f32.mrf.mxu1  ;;  %v1619_v48 = vld [vmem:[%s8900_s3 + $0x9a0] sm:$0xff] }
 0x1c0   : > { %4772 = vmatprep.subr.mxu1 %v1621_v46  ;;  %4718 = vmatprep.subr.mxu0 %v1588_v54  ;;  %v935_v46 = vadd.f32 %v6855_v50, %v904_v55  ;;  %v1603_v54 = vld [vmem:[%s8900_s3 + $0x920] sm:$0xff] }
 0x1c1   : > { %4773 = vmatpush3.msra.mxu1 %v1605_v29  ;;  %2431 = vmatmul.mubr.f32.gmra.mxu0 %v6419_v43  ;;  %v1224_v29 = vrot.slane %v6876_v44, 3  ;;  %v7182_v55 = vpop.f32.mrf.mxu1 }
 0x1c2   : > { %2536 = vmatmul.mubr.f32.gmra.mxu1 %v6690_v1  ;;  %4719 = vmatpush3.msra.mxu0 %v1572_v28  ;;  %v1586_v1 = vld [vmem:[%s8900_s3 + $0x898] sm:$0xff]  ;;  %v8923_v28 = vrot.slane %v6878_v30, 3  ;;  %v7194_v61 = vmax.f32 %v935_v46, 0.0 }
 0x1c3   : > { %4774 = vmatprep.subr.mxu1 %v1620_v32  ;;  %2435 = vmatprep.mubr.f32.mxu0 %v6950_v24  ;;  %v7177_v32 = vpop.f32.mrf.mxu0 }
 0x1c4   : > { %2540 = vmatprep.mubr.f32.mxu1 %v6876_v44  ;;  %4720 = vmatprep.subr.mxu0 %v1587_v63  ;;  %v1618_v63 = vld [vmem:[%s8900_s3 + $0x998] sm:$0xff] }
 0x1c5   : > { %4775 = vmatpush3.msra.mxu1 %v1604_v38  ;;  %4721 = vmatpush3.msra.mxu0 %v1571_v40  ;;  %v1585_v38 = vld [vmem:[%s8900_s3 + $0x890] sm:$0xff]  ;;  %v1602_v40 = vld [vmem:[%s8900_s3 + $0x918] sm:$0xff] }
 0x1c6   : > { %4776 = vmatprep.subr.mxu1 %v1619_v48  ;;  %4722 = vmatprep.subr.mxu0 %v1586_v1  ;;  %v7200_v48 = vsel %vm975_vm1, %v1224_v29, %v8923_v28  ;;  %v1569_v1 = vld [vmem:[%s8900_s3 + $0x810] sm:$0xff]  ;;  %v1280_v29 = vrot.slane %v6878_v30, 4 }
 0x1c7   : > { %4777 = vmatpush3.msra.mxu1 %v1603_v54  ;;  %2436 = vmatmul.mubr.f32.gmra.mxu0 %v6671_v57  ;;  %v1617_v54 = vld [vmem:[%s8900_s3 + $0x990] sm:$0xff] }
 0x1c8   : > { %2541 = vmatmul.mubr.f32.gmra.mxu1 %v6921_v37  ;;  %4723 = vmatpush3.msra.mxu0 %v1570_v3  ;;  %v4282_v62 = vpop.f32.mrf.mxu0  ;;  %v1584_v3 = vld [vmem:[%s8900_s3 + $0x888] sm:$0xff]  ;;  %v1279_v37 = vrot.slane %v6876_v44, 4 }
 0x1c9   : > { %4778 = vmatprep.subr.mxu1 %v1618_v63  ;;  %2440 = vmatprep.mubr.f32.mxu0 %v7200_v48  ;;  %v4338_v28 = vpop.f32.mrf.mxu1  ;;  %v1568_v63 = vld [vmem:[%s8900_s3 + $0x808] sm:$0xff] }
 0x1ca   : > { %4724 = vmatprep.subr.mxu0 %v1585_v38  ;;  %4779 = vmatpush3.msra.mxu1 %v1602_v40  ;;  %v4283_v52 = vpop.f32.mrf.mxu0  ;;  %v8941_v38 = vrot.slane %v6878_v30, 2 }
 0x1cb   : > { %4725 = vmatpush3.msra.mxu0 %v1569_v1  ;;  %4780 = vmatprep.subr.mxu1 %v1617_v54  ;;  %v4284_v46 = vadd.f32 %v4283_v52, %v4282_v62  ;;  %v4339_v44 = vpop.f32.mrf.mxu1  ;;  %v1616_v1 = vld [vmem:[%s8900_s3 + $0x988] sm:$0xff]  ;;  %v1583_v54 = vld [vmem:[%s8900_s3 + $0x880] sm:$0xff]  ;;  %v8942_v52 = vrot.slane %v6175_v47, 3 }
 0x1cc   : > { %2545 = vmatprep.mubr.f32.mxu1 %v7194_v61  ;;  %4726 = vmatprep.subr.mxu0 %v1584_v3  ;;  %v7229_v40 = vsel %vm970_vm2, %v1221_v51, %v8941_v38  ;;  %v4340_v9 = vadd.f32 %v4339_v44, %v4338_v28  ;;  %v1281_v51 = vsel %vm980_vm3, %v1279_v37, %v1280_v29  ;;  %v1600_v3 = vld [vmem:[%s8900_s3 + $0x908] sm:$0xff]  ;;  %v1567_v38 = vld [vmem:[%s8900_s3 + $0x800] sm:$0xff]  ;;  %v1662_v29 = vld [vmem:[%s8900_s3 + $0xaf8] sm:$0xff] }
 0x1cd   : > { %v1051_v62 = vrot.slane %v8942_v52, 1  ;;  %4781 = vmatpush3.msra.mxu1 %v1601_v60  ;;  %2441 = vmatmul.mubr.f32.gmra.mxu0 %v7229_v40  ;;  %v1047_v52 = vrot.slane %v6218_v18, 1  ;;  %v8943_v60 = vrot.slane %v6175_v47, 2  ;;  %v1046_v28 = vsel %vm965_vm0, %v1044_v10, %v1045_v7  ;;  %v1615_v37 = vld [vmem:[%s8900_s3 + $0x980] sm:$0xff] }
 0x1ce   : > { %2546 = vmatmul.mubr.f32.gmra.mxu1 %v1281_v51  ;;  %4727 = vmatpush3.msra.mxu0 %v1568_v63  ;;  %v7248_v17 = vadd.f32 %v4340_v9, %v4284_v46  ;;  %v1599_v47 = vld [vmem:[%s8900_s3 + $0x900] sm:$0xff]  ;;  %v1055_v18 = vrot.slane %v6269_v2, 1  ;;  %v8944_v7 = vrot.slane %v6242_v36, 1  ;;  %v1646_v63 = vld [vmem:[%s8900_s3 + $0xa78] sm:$0xff] }
 0x1cf   : > { %v1048_v44 = vrot.slane %v8943_v60, 1  ;;  %4782 = vmatprep.subr.mxu1 %v1616_v1  ;;  %4728 = vmatprep.subr.mxu0 %v1583_v54  ;;  %v1052_v9 = vsel %vm965_vm0, %v1050_v0, %v1051_v62  ;;  %v1061_v1 = vrot.slane %v6280_v11, 1  ;;  %v8945_v54 = vrot.slane %v6242_v36, 3  ;;  %v1694_v51 = vld [vmem:[%s8900_s3 + $0xbf8] sm:$0xff]  ;;  %v1661_v11 = vld [vmem:[%s8900_s3 + $0xaf0] sm:$0xff] }
 0x1d0   : > { %2615 = vmatprep.mubr.f32.mxu0 %v1046_v28  ;;  %4783 = vmatpush3.msra.mxu1 %v1600_v3  ;;  %v1056_v10 = vrot.slane %v8944_v7, 1  ;;  %v4285_v46 = vpop.f32.mrf.mxu0  ;;  %v8946_v7 = vrot.slane %v6242_v36, 2  ;;  %v1644_v36 = vld [vmem:[%s8900_s3 + $0xa68] sm:$0xff] }
 0x1d1   : > { %2720 = vmatprep.mubr.f32.mxu1 %v1052_v9  ;;  %4729 = vmatpush3.msra.mxu0 %v1567_v38  ;;  %v1062_v0 = vrot.slane %v8945_v54, 1  ;;  %v4341_v62 = vpop.f32.mrf.mxu1  ;;  %v1049_v38 = vsel %vm965_vm0, %v1047_v52, %v1048_v44  ;;  %v1058_v44 = vrot.slane %v6285_v13, 1  ;;  %v1677_v13 = vld [vmem:[%s8900_s3 + $0xb70] sm:$0xff] }
 0x1d2   : > { %4784 = vmatprep.subr.mxu1 %v1615_v37  ;;  %4810 = vmatprep.subr.mxu0 %v1662_v29  ;;  %v4286_v3 = vpop.f32.mrf.mxu0  ;;  %v7282_v37 = vsel %vm965_vm0, %v1055_v18, %v1056_v10  ;;  %v1678_v29 = vld [vmem:[%s8900_s3 + $0xb78] sm:$0xff]  ;;  %v1660_v18 = vld [vmem:[%s8900_s3 + $0xae8] sm:$0xff]  ;;  %v1059_v10 = vrot.slane %v8946_v7, 1 }
 0x1d3   : > { %4785 = vmatpush3.msra.mxu1 %v1599_v47  ;;  %2616 = vmatmul.mubr.f32.vlgmr.msra.gmra.mxu0 %v6202_v12  ;;  %v4287_v60 = vadd.f32 %v4286_v3, %v4285_v46  ;;  %v4342_v28 = vpop.f32.mrf.mxu1  ;;  %v1645_v12 = vld [vmem:[%s8900_s3 + $0xa70] sm:$0xff]  ;;  %v7293_v9 = vsel %vm965_vm0, %v1061_v1, %v1062_v0  ;;  %v1093_v46 = vrot.slane %v6336_v8, 1  ;;  %v1099_v0 = vrot.slane %v6347_v21, 1  ;;  %v1692_v3 = vld [vmem:[%s8900_s3 + $0xbe8] sm:$0xff]  ;;  %v1659_v21 = vld [vmem:[%s8900_s3 + $0xae0] sm:$0xff] }
 0x1d4   : > { %2721 = vmatmul.mubr.f32.vlgmr.msra.gmra.mxu1 %v1049_v38  ;;  %4811 = vmatpush3.msra.mxu0 %v1646_v63  ;;  %v4343_v52 = vadd.f32 %v4342_v28, %v4341_v62  ;;  %v1693_v47 = vld [vmem:[%s8900_s3 + $0xbf0] sm:$0xff]  ;;  %v8947_v63 = vrot.slane %v6309_v31, 1  ;;  %v8948_v62 = vrot.slane %v6309_v31, 3  ;;  %v1658_v7 = vld [vmem:[%s8900_s3 + $0xad8] sm:$0xff] }
 0x1d5   : > { %4866 = vmatprep.subr.mxu1 %v1694_v51  ;;  %2620 = vmatprep.mubr.f32.mxu0 %v7282_v37 }
 0x1d6   : > { %2725 = vmatprep.mubr.f32.mxu1 %v7293_v9  ;;  %4812 = vmatprep.subr.mxu0 %v1661_v11  ;;  %v1094_v1 = vrot.slane %v8947_v63, 1  ;;  %v7310_v54 = vadd.f32 %v4343_v52, %v4287_v60  ;;  %v1100_v51 = vrot.slane %v8948_v62, 1  ;;  %v7323_v11 = vsel %vm965_vm0, %v1058_v44, %v1059_v10 }
 0x1d7   : > { %4867 = vmatpush3.msra.mxu1 %v1678_v29  ;;  %4813 = vmatpush3.msra.mxu0 %v1645_v12  ;;  %v1676_v29 = vld [vmem:[%s8900_s3 + $0xb68] sm:$0xff]  ;;  %v1643_v12 = vld [vmem:[%s8900_s3 + $0xa60] sm:$0xff]  ;;  %v1096_v44 = vrot.slane %v6352_v22, 1  ;;  %v8949_v10 = vrot.slane %v6309_v31, 2  ;;  %v857_v31 = vmax.f32 %v7067_v27, %v7088_v25 }
 0x1d8   : > { %4868 = vmatprep.subr.mxu1 %v1693_v47  ;;  %4814 = vmatprep.subr.mxu0 %v1660_v18  ;;  %v4288_v38 = vpop.f32.mrf.mxu0  ;;  %v7330_v28 = vsel %vm965_vm0, %v1093_v46, %v1094_v1  ;;  %v7341_v47 = vsel %vm965_vm0, %v1099_v0, %v1100_v51  ;;  %v1691_v18 = vld [vmem:[%s8900_s3 + $0xbe0] sm:$0xff]  ;;  %v1127_v1 = vrot.slane %v6379_v15, 1  ;;  %v881_v51 = vmax.f32 %v7072_v49, %v7097_v59  ;;  %v1674_v59 = vld [vmem:[%s8900_s3 + $0xb58] sm:$0xff] }
 0x1d9   : > { %4869 = vmatpush3.msra.mxu1 %v1677_v13  ;;  %2621 = vmatmul.mubr.f32.gmra.mxu0 %v6269_v2  ;;  %v4344_v60 = vpop.f32.mrf.mxu1  ;;  %v1097_v13 = vrot.slane %v8949_v10, 1  ;;  %v1675_v22 = vld [vmem:[%s8900_s3 + $0xb60] sm:$0xff]  ;;  %v1689_v10 = vld [vmem:[%s8900_s3 + $0xbd0] sm:$0xff] }
 0x1da   : > { %2726 = vmatmul.mubr.f32.gmra.mxu1 %v7323_v11  ;;  %4815 = vmatpush3.msra.mxu0 %v1644_v36  ;;  %v4289_v52 = vpop.f32.mrf.mxu0  ;;  %v8950_v36 = vrot.slane %v6367_v39, 1 }
 0x1db   : > { %4870 = vmatprep.subr.mxu1 %v1692_v3  ;;  %2625 = vmatprep.mubr.f32.mxu0 %v7330_v28  ;;  %v4290_v46 = vadd.f32 %v4289_v52, %v4288_v38  ;;  %v4345_v63 = vpop.f32.mrf.mxu1  ;;  %v1642_v3 = vld [vmem:[%s8900_s3 + $0xa58] sm:$0xff]  ;;  %v1133_v38 = vrot.slane %v6387_v20, 1  ;;  %v7375_v49 = vsel %vm965_vm0, %v1096_v44, %v1097_v13  ;;  %v1657_v20 = vld [vmem:[%s8900_s3 + $0xad0] sm:$0xff]  ;;  %v1130_v44 = vrot.slane %v6392_v23, 1  ;;  %v1656_v13 = vld [vmem:[%s8900_s3 + $0xac8] sm:$0xff] }
 0x1dc   : > { %2730 = vmatprep.mubr.f32.mxu1 %v7341_v47  ;;  %4816 = vmatprep.subr.mxu0 %v1659_v21  ;;  %v1128_v0 = vrot.slane %v8950_v36, 1  ;;  %v4346_v62 = vadd.f32 %v4345_v63, %v4344_v60  ;;  %v8951_v21 = vrot.slane %v6367_v39, 3  ;;  %v1690_v60 = vld [vmem:[%s8900_s3 + $0xbd8] sm:$0xff]  ;;  %v1673_v23 = vld [vmem:[%s8900_s3 + $0xb50] sm:$0xff]  ;;  %v8953_v36 = vrot.slane %v6398_v26, 1 }
 0x1dd   : > { %4871 = vmatpush3.msra.mxu1 %v1676_v29  ;;  %4817 = vmatpush3.msra.mxu0 %v1643_v12  ;;  %v1641_v29 = vld [vmem:[%s8900_s3 + $0xa50] sm:$0xff] }
 0x1de   : > { %v1134_v52 = vrot.slane %v8951_v21, 1  ;;  %4872 = vmatprep.subr.mxu1 %v1691_v18  ;;  %4818 = vmatprep.subr.mxu0 %v1658_v7  ;;  %v7371_v27 = vadd.f32 %v4346_v62, %v4290_v46  ;;  %v7382_v25 = vsel %vm965_vm0, %v1127_v1, %v1128_v0  ;;  %v905_v18 = vmax.f32 %v857_v31, %v881_v51 }
 0x1df   : > { %4873 = vmatpush3.msra.mxu1 %v1675_v22  ;;  %2626 = vmatmul.mubr.f32.gmra.mxu0 %v6336_v8  ;;  %v8952_v46 = vrot.slane %v6367_v39, 2  ;;  %v1161_v1 = vrot.slane %v6409_v41, 1  ;;  %v1162_v0 = vrot.slane %v8953_v36, 1  ;;  %v1640_v39 = vld [vmem:[%s8900_s3 + $0xa48] sm:$0xff]  ;;  %v1167_v31 = vrot.slane %v6414_v42, 1  ;;  %v1655_v42 = vld [vmem:[%s8900_s3 + $0xac0] sm:$0xff] }
 0x1e0   : > { %2731 = vmatmul.mubr.f32.gmra.mxu1 %v7375_v49  ;;  %4819 = vmatpush3.msra.mxu0 %v1642_v3  ;;  %v4291_v12 = vpop.f32.mrf.mxu0  ;;  %v7393_v7 = vsel %vm965_vm0, %v1133_v38, %v1134_v52  ;;  %v8954_v51 = vrot.slane %v6398_v26, 3  ;;  %v1688_v52 = vld [vmem:[%s8900_s3 + $0xbc8] sm:$0xff] }
 0x1e1   : > { %4874 = vmatprep.subr.mxu1 %v1690_v60  ;;  %2630 = vmatprep.mubr.f32.mxu0 %v7382_v25  ;;  %v1131_v63 = vrot.slane %v8952_v46, 1  ;;  %v4347_v22 = vpop.f32.mrf.mxu1  ;;  %v1654_v46 = vld [vmem:[%s8900_s3 + $0xab8] sm:$0xff] }
 0x1e2   : > { %2735 = vmatprep.mubr.f32.mxu1 %v7393_v7  ;;  %4820 = vmatprep.subr.mxu0 %v1657_v20  ;;  %v4292_v62 = vpop.f32.mrf.mxu0  ;;  %v1168_v3 = vrot.slane %v8954_v51, 1  ;;  %v936_v20 = vadd.f32 %v6855_v50, %v905_v18  ;;  %v1672_v50 = vld [vmem:[%s8900_s3 + $0xb48] sm:$0xff]  ;;  %v1164_v18 = vrot.slane %v6419_v43, 1  ;;  %v1671_v43 = vld [vmem:[%s8900_s3 + $0xb40] sm:$0xff] }
 0x1e3   : > { %4875 = vmatpush3.msra.mxu1 %v1674_v59  ;;  %4821 = vmatpush3.msra.mxu0 %v1641_v29  ;;  %v4293_v38 = vadd.f32 %v4292_v62, %v4291_v12  ;;  %v4348_v21 = vpop.f32.mrf.mxu1  ;;  %v7422_v59 = vsel %vm965_vm0, %v1130_v44, %v1131_v63  ;;  %v7429_v29 = vsel %vm965_vm0, %v1161_v1, %v1162_v0  ;;  %v1639_v12 = vld [vmem:[%s8900_s3 + $0xa40] sm:$0xff]  ;;  %v8955_v63 = vrot.slane %v6398_v26, 2  ;;  %v1638_v26 = vld [vmem:[%s8900_s3 + $0xa38] sm:$0xff] }
 0x1e4   : > { %4876 = vmatprep.subr.mxu1 %v1689_v10  ;;  %4822 = vmatprep.subr.mxu0 %v1656_v13  ;;  %v4349_v60 = vadd.f32 %v4348_v21, %v4347_v22  ;;  %v7442_v10 = vsel %vm965_vm0, %v1167_v31, %v1168_v3  ;;  %v1687_v13 = vld [vmem:[%s8900_s3 + $0xbc0] sm:$0xff]  ;;  %v8956_v1 = vrot.slane %v6613_v35, 1  ;;  %v1201_v62 = vrot.slane %v6950_v24, 1 }
 0x1e5   : > { %4877 = vmatpush3.msra.mxu1 %v1673_v23  ;;  %2631 = vmatmul.mubr.f32.gmra.mxu0 %v6379_v15  ;;  %v1165_v22 = vrot.slane %v8955_v63, 1  ;;  %v1195_v23 = vrot.slane %v6683_v34, 1  ;;  %v8957_v31 = vrot.slane %v6613_v35, 3 }
 0x1e6   : > { %2736 = vmatmul.mubr.f32.gmra.mxu1 %v7422_v59  ;;  %4823 = vmatpush3.msra.mxu0 %v1640_v39  ;;  %v7437_v44 = vadd.f32 %v4349_v60, %v4293_v38  ;;  %v1196_v36 = vrot.slane %v8956_v1, 1  ;;  %v7460_v39 = vmax.f32 %v936_v20, 0.0  ;;  %v1686_v38 = vld [vmem:[%s8900_s3 + $0xbb8] sm:$0xff] }
 0x1e7   : > { %4878 = vmatprep.subr.mxu1 %v1688_v52  ;;  %2635 = vmatprep.mubr.f32.mxu0 %v7429_v29  ;;  %v1202_v51 = vrot.slane %v8957_v31, 1  ;;  %v7472_v24 = vsel %vm965_vm0, %v1164_v18, %v1165_v22  ;;  %v1653_v52 = vld [vmem:[%s8900_s3 + $0xab0] sm:$0xff] }
 0x1e8   : > { %2740 = vmatprep.mubr.f32.mxu1 %v7442_v10  ;;  %4824 = vmatprep.subr.mxu0 %v1655_v42  ;;  %v4294_v0 = vpop.f32.mrf.mxu0  ;;  %v1198_v42 = vrot.slane %v6671_v57, 1  ;;  %v1637_v18 = vld [vmem:[%s8900_s3 + $0xa30] sm:$0xff]  ;;  %v1259_v31 = vrot.slane %v7460_v39, 3 }
 0x1e9   : > { %4879 = vmatpush3.msra.mxu1 %v1672_v50  ;;  %4825 = vmatpush3.msra.mxu0 %v1639_v12  ;;  %v4350_v3 = vpop.f32.mrf.mxu1  ;;  %v7480_v50 = vsel %vm965_vm0, %v1195_v23, %v1196_v36  ;;  %v1670_v12 = vld [vmem:[%s8900_s3 + $0xb38] sm:$0xff]  ;;  %v7492_v57 = vsel %vm965_vm0, %v1201_v62, %v1202_v51  ;;  %v1685_v22 = vld [vmem:[%s8900_s3 + $0xbb0] sm:$0xff]  ;;  %v8960_v23 = vrot.slane %v6878_v30, 1  ;;  %v1253_v36 = vrot.slane %v7460_v39, 1 }
 0x1ea   : > { %4880 = vmatprep.subr.mxu1 %v1687_v13  ;;  %4826 = vmatprep.subr.mxu0 %v1654_v46  ;;  %v4295_v21 = vpop.f32.mrf.mxu0  ;;  %v8958_v13 = vrot.slane %v6613_v35, 2  ;;  %8959 = vst [vmem:[#allocation7_spill] sm:$0xff] %v7492_v57  ;;  %v1252_v35 = vrot.slane %v7194_v61, 1  ;;  %v1229_v62 = vrot.slane %v6935_v53, 1 }
 0x1eb   : > { %4881 = vmatpush3.msra.mxu1 %v1671_v43  ;;  %2636 = vmatmul.mubr.f32.gmra.mxu0 %v6409_v41  ;;  %v4296_v60 = vadd.f32 %v4295_v21, %v4294_v0  ;;  %v4351_v20 = vpop.f32.mrf.mxu1  ;;  %v1652_v43 = vld [vmem:[%s8900_s3 + $0xaa8] sm:$0xff]  ;;  %v1230_v1 = vrot.slane %v8960_v23, 1  ;;  %v1669_v0 = vld [vmem:[%s8900_s3 + $0xb30] sm:$0xff]  ;;  %v8961_v21 = vrot.slane %v6878_v30, 3  ;;  %v1255_v23 = vrot.slane %v7194_v61, 2 }
 0x1ec   : > { %2741 = vmatmul.mubr.f32.gmra.mxu1 %v7472_v24  ;;  %4827 = vmatpush3.msra.mxu0 %v1638_v26  ;;  %v1199_v46 = vrot.slane %v8958_v13, 1  ;;  %v4352_v63 = vadd.f32 %v4351_v20, %v4350_v3  ;;  %v1258_v26 = vrot.slane %v7194_v61, 3  ;;  %v1235_v3 = vrot.slane %v7200_v48, 1  ;;  %v1684_v20 = vld [vmem:[%s8900_s3 + $0xba8] sm:$0xff] }
 0x1ed   : > { %4882 = vmatprep.subr.mxu1 %v1686_v38  ;;  %2640 = vmatprep.mubr.f32.mxu0 %v7480_v50  ;;  %v1636_v38 = vld [vmem:[%s8900_s3 + $0xa28] sm:$0xff] }
 0x1ee   : > { %2745 = vmatprep.mubr.f32.mxu1 %v7492_v57  ;;  %4828 = vmatprep.subr.mxu0 %v1653_v52  ;;  %v7511_v51 = vadd.f32 %v4352_v63, %v4296_v60  ;;  %v1236_v52 = vrot.slane %v8961_v21, 1  ;;  %v7524_v48 = vsel %vm965_vm0, %v1198_v42, %v1199_v46  ;;  %v1651_v60 = vld [vmem:[%s8900_s3 + $0xaa0] sm:$0xff]  ;;  %v1256_v63 = vrot.slane %v7460_v39, 2  ;;  %v1668_v42 = vld [vmem:[%s8900_s3 + $0xb28] sm:$0xff] }
 0x1ef   : > { %4883 = vmatpush3.msra.mxu1 %v1670_v12  ;;  %4829 = vmatpush3.msra.mxu0 %v1637_v18  ;;  %v7530_v12 = vsel %vm965_vm0, %v1252_v35, %v1253_v36  ;;  %v1635_v46 = vld [vmem:[%s8900_s3 + $0xa20] sm:$0xff]  ;;  %v1232_v39 = vrot.slane %v7229_v40, 1 }
 0x1f0   : > { %4884 = vmatprep.subr.mxu1 %v1685_v22  ;;  %4830 = vmatprep.subr.mxu0 %v1652_v43  ;;  %v4297_v13 = vpop.f32.mrf.mxu0  ;;  %v7535_v22 = vsel %vm965_vm0, %v1229_v62, %v1230_v1  ;;  %v1260_v43 = vsel %vm975_vm1, %v1258_v26, %v1259_v31  ;;  %v7548_v1 = vsel %vm965_vm0, %v1235_v3, %v1236_v52  ;;  %v1650_v62 = vld [vmem:[%s8900_s3 + $0xa98] sm:$0xff]  ;;  %v8963_v26 = vrot.slane %v6878_v30, 2  ;;  %v1667_v40 = vld [vmem:[%s8900_s3 + $0xb20] sm:$0xff] }
 0x1f1   : > { %4885 = vmatpush3.msra.mxu1 %v1669_v0  ;;  %2641 = vmatmul.mubr.f32.gmra.mxu0 %v6683_v34  ;;  %v4353_v18 = vpop.f32.mrf.mxu1  ;;  %8962 = vst [vmem:[#allocation8_spill] sm:$0xff] %v7548_v1  ;;  %v1683_v0 = vld [vmem:[%s8900_s3 + $0xba0] sm:$0xff]  ;;  %v1263_v3 = vrot.slane %v7530_v12, 1  ;;  %v1264_v52 = vrot.slane %v1253_v36, 1  ;;  %v1634_v30 = vld [vmem:[%s8900_s3 + $0xa18] sm:$0xff]  ;;  %v1649_v36 = vld [vmem:[%s8900_s3 + $0xa90] sm:$0xff] }
 0x1f2   : > { %2746 = vmatmul.mubr.f32.gmra.mxu1 %v7524_v48  ;;  %4831 = vmatpush3.msra.mxu0 %v1636_v38  ;;  %v4298_v35 = vpop.f32.mrf.mxu0  ;;  %v1233_v38 = vrot.slane %v8963_v26, 1  ;;  %v1269_v26 = vrot.slane %v1260_v43, 1 }
 0x1f3   : > { %4886 = vmatprep.subr.mxu1 %v1684_v20  ;;  %2645 = vmatprep.mubr.f32.mxu0 %v7535_v22  ;;  %v4299_v21 = vadd.f32 %v4298_v35, %v4297_v13  ;;  %v4354_v57 = vpop.f32.mrf.mxu1  ;;  %v1270_v13 = vrot.slane %v1259_v31, 1  ;;  %v1257_v35 = vsel %vm970_vm2, %v1255_v23, %v1256_v63  ;;  %v7581_v31 = vsel %vm965_vm0, %v1263_v3, %v1264_v52  ;;  %v1681_v23 = vld [vmem:[%s8900_s3 + $0xb90] sm:$0xff]  ;;  %v1632_v3 = vld [vmem:[%s8900_s3 + $0xa08] sm:$0xff] }
 0x1f4   : > { %2750 = vmatprep.mubr.f32.mxu1 %v7548_v1  ;;  %4832 = vmatprep.subr.mxu0 %v1651_v60  ;;  %v4355_v20 = vadd.f32 %v4354_v57, %v4353_v18  ;;  %v1682_v60 = vld [vmem:[%s8900_s3 + $0xb98] sm:$0xff]  ;;  %v7574_v57 = vsel %vm965_vm0, %v1232_v39, %v1233_v38  ;;  %v1648_v39 = vld [vmem:[%s8900_s3 + $0xa88] sm:$0xff] }
 0x1f5   : > { %4887 = vmatpush3.msra.mxu1 %v1668_v42  ;;  %4833 = vmatpush3.msra.mxu0 %v1635_v46  ;;  %v1666_v18 = vld [vmem:[%s8900_s3 + $0xb18] sm:$0xff]  ;;  %v1633_v42 = vld [vmem:[%s8900_s3 + $0xa10] sm:$0xff]  ;;  %v7591_v43 = vsel %vm965_vm0, %v1269_v26, %v1270_v13 }
 0x1f6   : > { %4888 = vmatprep.subr.mxu1 %v1683_v0  ;;  %4834 = vmatprep.subr.mxu0 %v1650_v62  ;;  %v7570_v1 = vadd.f32 %v4355_v20, %v4299_v21  ;;  %v1266_v0 = vrot.slane %v1257_v35, 1  ;;  %v1267_v62 = vrot.slane %v1256_v63, 1  ;;  %v1665_v21 = vld [vmem:[%s8900_s3 + $0xb10] sm:$0xff]  ;;  %v1680_v63 = vld [vmem:[%s8900_s3 + $0xb88] sm:$0xff]  ;;  %v1631_v35 = vld [vmem:[%s8900_s3 + $0xa00] sm:$0xff] }
 0x1f7   : > { %4889 = vmatpush3.msra.mxu1 %v1667_v40  ;;  %2646 = vmatmul.mubr.f32.gmra.mxu0 %v6935_v53 }
 0x1f8   : > { %2751 = vmatmul.mubr.f32.gmra.mxu1 %v7574_v57  ;;  %4835 = vmatpush3.msra.mxu0 %v1634_v30  ;;  %v4300_v46 = vpop.f32.mrf.mxu0  ;;  %v1647_v30 = vld [vmem:[%s8900_s3 + $0xa80] sm:$0xff]  ;;  %v7614_v13 = vsel %vm965_vm0, %v1266_v0, %v1267_v62 }
 0x1f9   : > { %4890 = vmatprep.subr.mxu1 %v1682_v60  ;;  %2650 = vmatprep.mubr.f32.mxu0 %v7581_v31  ;;  %v4356_v38 = vpop.f32.mrf.mxu1  ;;  %v1664_v60 = vld [vmem:[%s8900_s3 + $0xb08] sm:$0xff] }
 0x1fa   : > { %2755 = vmatprep.mubr.f32.mxu1 %v7591_v43  ;;  %4836 = vmatprep.subr.mxu0 %v1649_v36  ;;  %v4301_v40 = vpop.f32.mrf.mxu0 }
 0x1fb   : > { %4891 = vmatpush3.msra.mxu1 %v1666_v18  ;;  %4837 = vmatpush3.msra.mxu0 %v1633_v42  ;;  %v4302_v52 = vadd.f32 %v4301_v40, %v4300_v46  ;;  %v4357_v20 = vpop.f32.mrf.mxu1  ;;  %v1679_v18 = vld [vmem:[%s8900_s3 + $0xb80] sm:$0xff]  ;;  %v1710_v42 = vld [vmem:[%s8900_s3 + $0xc78] sm:$0xff]  ;;  %v858_v40 = vmax.f32 %v7103_v4, %v7127_v6  ;;  %v1708_v6 = vld [vmem:[%s8900_s3 + $0xc68] sm:$0xff] }
 0x1fc   : > { %4892 = vmatprep.subr.mxu1 %v1681_v23  ;;  %4838 = vmatprep.subr.mxu0 %v1648_v39  ;;  %v4358_v26 = vadd.f32 %v4357_v20, %v4356_v38  ;;  %v1663_v46 = vld [vmem:[%s8900_s3 + $0xb00] sm:$0xff]  ;;  %v883_v20 = vmax.f32 %v7154_v33, %v7182_v55 }
 0x1fd   : > { %4893 = vmatpush3.msra.mxu1 %v1665_v21  ;;  %2651 = vmatmul.mubr.f32.gmra.mxu0 %v7530_v12 }
 0x1fe   : > { %2756 = vmatmul.mubr.f32.gmra.mxu1 %v7614_v13  ;;  %4839 = vmatpush3.msra.mxu0 %v1632_v3  ;;  %v7623_v36 = vadd.f32 %v4358_v26, %v4302_v52 }
 0x1ff   : > { %4894 = vmatprep.subr.mxu1 %v1680_v63  ;;  %4840 = vmatprep.subr.mxu0 %v1647_v30 }
 0x200   : > { %2825 = vmatprep.mubr.f32.mxu0 %v6269_v2  ;;  %4895 = vmatpush3.msra.mxu1 %v1664_v60  ;;  %v4303_v23 = vpop.f32.mrf.mxu0  ;;  %v4359_v39 = vpop.f32.mrf.mxu1  ;;  %v1709_v2 = vld [vmem:[%s8900_s3 + $0xc70] sm:$0xff] }
 0x201   : > { %2930 = vmatprep.mubr.f32.mxu1 %v7323_v11  ;;  %4841 = vmatpush3.msra.mxu0 %v1631_v35  ;;  %v882_v11 = vmax.f32 %v7108_v58, %v7136_v56 }
 0x202   : > { %4896 = vmatprep.subr.mxu1 %v1679_v18  ;;  %5243 = vmatprep.subr.mxu0 %v1710_v42  ;;  %v4304_v0 = vpop.f32.mrf.mxu0  ;;  %v4360_v62 = vpop.f32.mrf.mxu1 }
 0x203   : > { %4897 = vmatpush3.msra.mxu1 %v1663_v46  ;;  %2826 = vmatmul.mubr.f32.vlgmr.msra.gmra.mxu0 %v6207_v14  ;;  %v4305_v38 = vadd.f32 %v4304_v0, %v4303_v23  ;;  %v4361_v21 = vadd.f32 %v4360_v62, %v4359_v39  ;;  %v859_v14 = vmax.f32 %v7148_v45, %v7177_v32  ;;  %v1707_v45 = vld [vmem:[%s8900_s3 + $0xc60] sm:$0xff]  ;;  %v1704_v46 = vld [vmem:[%s8900_s3 + $0xc48] sm:$0xff] }
 0x204   : > { %2931 = vmatmul.mubr.f32.vlgmr.msra.gmra.mxu1 %v7282_v37  ;;  %5244 = vmatpush3.msra.mxu0 %v1710_v42  ;;  %v4394_v3 = vpop.f32.mrf.mxu0  ;;  %v4450_v52 = vpop.f32.mrf.mxu1  ;;  %v906_v33 = vmax.f32 %v858_v40, %v882_v11 }
 0x205   : > { %2830 = vmatprep.mubr.f32.mxu0 %v6336_v8  ;;  %2935 = vmatprep.mubr.f32.mxu1 %v7375_v49  ;;  %v7654_v4 = vadd.f32 %v4361_v21, %v4305_v38  ;;  %v907_v32 = vmax.f32 %v859_v14, %v883_v20  ;;  %v1702_v38 = vld [vmem:[%s8900_s3 + $0xc38] sm:$0xff]  ;;  %v1700_v20 = vld [vmem:[%s8900_s3 + $0xc28] sm:$0xff] }
 0x206   : > { %5245 = vmatprep.subr.mxu0 %v1709_v2  ;;  %v4395_v58 = vpop.f32.mrf.mxu0  ;;  %v4451_v56 = vpop.f32.mrf.mxu1 }
 0x207   : > { %5246 = vmatpush3.msra.mxu0 %v1709_v2  ;;  %v4396_v37 = vadd.f32 %v4395_v58, %v4394_v3  ;;  %v4452_v8 = vadd.f32 %v4451_v56, %v4450_v52 }
 0x208   : > { %5247 = vmatprep.subr.mxu0 %v1708_v6  ;;  %2831 = vmatmul.mubr.f32.gmra.mxu0 %v6274_v5  ;;  %v1706_v5 = vld [vmem:[%s8900_s3 + $0xc58] sm:$0xff] }
 0x209   : > { %2936 = vmatmul.mubr.f32.gmra.mxu1 %v7330_v28  ;;  %5248 = vmatpush3.msra.mxu0 %v1708_v6  ;;  %v1988_v55 = vadd.f32 %v4396_v37, %v7248_v17  ;;  %v4397_v49 = vpop.f32.mrf.mxu0  ;;  %v5369_v17 = vld [vmem:[%s8899_s2] ss:$0 sm:$0xff] }
 0x20a   : > { %2835 = vmatprep.mubr.f32.mxu0 %v6379_v15  ;;  %2940 = vmatprep.mubr.f32.mxu1 %v7422_v59  ;;  %v4453_v63 = vpop.f32.mrf.mxu1  ;;  %v937_v35 = vadd.f32 %v5369_v17, %v906_v33  ;;  %v938_v15 = vadd.f32 %v5369_v17, %v907_v32  ;;  %v1705_v59 = vld [vmem:[%s8900_s3 + $0xc50] sm:$0xff] }
 0x20b   : > { %5249 = vmatprep.subr.mxu0 %v1707_v45  ;;  %v7667_v30 = vadd.f32 %v4452_v8, %v1988_v55  ;;  %v4398_v26 = vpop.f32.mrf.mxu0 }
 0x20c   : > { %5250 = vmatpush3.msra.mxu0 %v1707_v45  ;;  %v4399_v60 = vadd.f32 %v4398_v26, %v4397_v49  ;;  %v4454_v28 = vpop.f32.mrf.mxu1  ;;  %v7685_v0 = vmax.f32 %v937_v35, 0.0  ;;  %v7687_v62 = vmax.f32 %v938_v15, 0.0  ;;  %v1698_v49 = vld [vmem:[%s8900_s3 + $0xc18] sm:$0xff] }
 0x20d   : > { %5251 = vmatprep.subr.mxu0 %v1706_v5  ;;  %2836 = vmatmul.mubr.f32.gmra.mxu0 %v6341_v16  ;;  %v4455_v18 = vadd.f32 %v4454_v28, %v4453_v63 }
 0x20e   : > { %2941 = vmatmul.mubr.f32.gmra.mxu1 %v7382_v25  ;;  %5252 = vmatpush3.msra.mxu0 %v1706_v5  ;;  %v1993_v42 = vadd.f32 %v4399_v60, %v7310_v54  ;;  %v1289_v21 = vrot.slane %v7685_v0, 2  ;;  %v1290_v40 = vrot.slane %v7687_v62, 2  ;;  %v1287_v37 = vrot.slane %v7687_v62, 1 }
 0x20f   : > { %2840 = vmatprep.mubr.f32.mxu0 %v6409_v41  ;;  %2945 = vmatprep.mubr.f32.mxu1 %v7472_v24  ;;  %v4400_v23 = vpop.f32.mrf.mxu0  ;;  %v1703_v41 = vld [vmem:[%s8900_s3 + $0xc40] sm:$0xff] }
 0x210   : > { %5253 = vmatprep.subr.mxu0 %v1705_v59  ;;  %v7683_v16 = vadd.f32 %v4455_v18, %v1993_v42  ;;  %v4456_v39 = vpop.f32.mrf.mxu1  ;;  %v1291_v6 = vsel %vm970_vm2, %v1289_v21, %v1290_v40  ;;  %v1301_v33 = vrot.slane %v1290_v40, 1  ;;  %v1298_v35 = vrot.slane %v1287_v37, 1 }
 0x211   : > { %5254 = vmatpush3.msra.mxu0 %v1705_v59  ;;  %v4401_v25 = vpop.f32.mrf.mxu0  ;;  %v1300_v45 = vrot.slane %v1291_v6, 1 }
 0x212   : > { %5255 = vmatprep.subr.mxu0 %v1704_v46  ;;  %2841 = vmatmul.mubr.f32.gmra.mxu0 %v6381_v19  ;;  %v4402_v54 = vadd.f32 %v4401_v25, %v4400_v23  ;;  %v4457_v24 = vpop.f32.mrf.mxu1 }
 0x213   : > { %2946 = vmatmul.mubr.f32.gmra.mxu1 %v7429_v29  ;;  %5256 = vmatpush3.msra.mxu0 %v1704_v46  ;;  %v4458_v2 = vadd.f32 %v4457_v24, %v4456_v39  ;;  %v1302_v28 = vsel %vm965_vm0, %v1300_v45, %v1301_v33 }
 0x214   : > { %2845 = vmatprep.mubr.f32.mxu0 %v6683_v34  ;;  %2950 = vmatprep.mubr.f32.mxu1 %v7524_v48  ;;  %v1998_v19 = vadd.f32 %v4402_v54, %v7371_v27  ;;  %v8964_v34 = vld [vmem:[#allocation5_spill] sm:$0xff]  ;;  %v1701_v48 = vld [vmem:[%s8900_s3 + $0xc30] sm:$0xff] }
 0x215   : > { %5257 = vmatprep.subr.mxu0 %v1703_v41  ;;  %v4403_v11 = vpop.f32.mrf.mxu0 }
 0x216   : > { %5258 = vmatpush3.msra.mxu0 %v1703_v41  ;;  %v7702_v29 = vadd.f32 %v4458_v2, %v1998_v19  ;;  %v4459_v3 = vpop.f32.mrf.mxu1  ;;  %v1293_v2 = vrot.slane %v7687_v62, 3  ;;  %v8966_v62 = vld [vmem:[#allocation7_spill] sm:$0xff] }
 0x217   : > { %5259 = vmatprep.subr.mxu0 %v1702_v38  ;;  %2846 = vmatmul.mubr.f32.gmra.mxu0 %v8964_v34  ;;  %v4404_v52 = vpop.f32.mrf.mxu0 }
 0x218   : > { %2951 = vmatmul.mubr.f32.gmra.mxu1 %v7480_v50  ;;  %5260 = vmatpush3.msra.mxu0 %v1702_v38  ;;  %v4405_v27 = vadd.f32 %v4404_v52, %v4403_v11  ;;  %v4460_v14 = vpop.f32.mrf.mxu1  ;;  %v1286_v50 = vrot.slane %v7685_v0, 1  ;;  %v1292_v38 = vrot.slane %v7685_v0, 3 }
 0x219   : > { %2850 = vmatprep.mubr.f32.mxu0 %v6935_v53  ;;  %2955 = vmatprep.mubr.f32.mxu1 %v7574_v57  ;;  %v4461_v58 = vadd.f32 %v4460_v14, %v4459_v3  ;;  %v8965_v53 = vld [vmem:[#allocation6_spill] sm:$0xff]  ;;  %v1699_v57 = vld [vmem:[%s8900_s3 + $0xc20] sm:$0xff] }
 0x21a   : > { %5261 = vmatprep.subr.mxu0 %v1701_v48  ;;  %v2003_v56 = vadd.f32 %v4405_v27, %v7437_v44  ;;  %v1288_v26 = vsel %vm965_vm0, %v1286_v50, %v1287_v37  ;;  %v1304_v27 = vrot.slane %v1293_v2, 1 }
 0x21b   : > { %5262 = vmatpush3.msra.mxu0 %v1701_v48  ;;  %v4406_v8 = vpop.f32.mrf.mxu0  ;;  %v1297_v17 = vrot.slane %v1288_v26, 1 }
 0x21c   : > { %5263 = vmatprep.subr.mxu0 %v1700_v20  ;;  %2851 = vmatmul.mubr.f32.gmra.mxu0 %v8965_v53  ;;  %v7722_v32 = vadd.f32 %v4461_v58, %v2003_v56  ;;  %v4462_v55 = vpop.f32.mrf.mxu1 }
 0x21d   : > { %2956 = vmatmul.mubr.f32.gmra.mxu1 %v7535_v22  ;;  %5264 = vmatpush3.msra.mxu0 %v1700_v20  ;;  %v4407_v44 = vpop.f32.mrf.mxu0  ;;  %v1299_v23 = vsel %vm965_vm0, %v1297_v17, %v1298_v35 }
 0x21e   : > { %2855 = vmatprep.mubr.f32.mxu0 %v7530_v12  ;;  %2960 = vmatprep.mubr.f32.mxu1 %v7614_v13  ;;  %v4408_v5 = vadd.f32 %v4407_v44, %v4406_v8  ;;  %v4463_v63 = vpop.f32.mrf.mxu1  ;;  %v1697_v12 = vld [vmem:[%s8900_s3 + $0xc10] sm:$0xff] }
 0x21f   : > { %5265 = vmatprep.subr.mxu0 %v1699_v57  ;;  %v4464_v60 = vadd.f32 %v4463_v63, %v4462_v55 }
 0x220   : > { %5266 = vmatpush3.msra.mxu0 %v1699_v57  ;;  %v2008_v22 = vadd.f32 %v4408_v5, %v7511_v51  ;;  %v1696_v51 = vld [vmem:[%s8900_s3 + $0xc08] sm:$0xff] }
 0x221   : > { %5267 = vmatprep.subr.mxu0 %v1698_v49  ;;  %2856 = vmatmul.mubr.f32.gmra.mxu0 %v7194_v61  ;;  %v4409_v13 = vpop.f32.mrf.mxu0 }
 0x222   : > { %2961 = vmatmul.mubr.f32.gmra.mxu1 %v7581_v31  ;;  %5268 = vmatpush3.msra.mxu0 %v1698_v49  ;;  %v7738_v15 = vadd.f32 %v4464_v60, %v2008_v22  ;;  %v4465_v59 = vpop.f32.mrf.mxu1  ;;  %v1695_v31 = vld [vmem:[%s8900_s3 + $0xc00] sm:$0xff] }
 0x223   : > { %2860 = vmatprep.mubr.f32.mxu0 %v1288_v26  ;;  %2965 = vmatprep.mubr.f32.mxu1 %v1302_v28  ;;  %v4410_v61 = vpop.f32.mrf.mxu0 }
 0x224   : > { %5269 = vmatprep.subr.mxu0 %v1697_v12  ;;  %v4411_v18 = vadd.f32 %v4410_v61, %v4409_v13  ;;  %v4466_v42 = vpop.f32.mrf.mxu1 }
 0x225   : > { %5270 = vmatpush3.msra.mxu0 %v1697_v12  ;;  %v4467_v46 = vadd.f32 %v4466_v42, %v4465_v59 }
 0x226   : > { %5271 = vmatprep.subr.mxu0 %v1696_v51  ;;  %2861 = vmatmul.mubr.f32.gmra.mxu0 %v7685_v0  ;;  %v2013_v39 = vadd.f32 %v4411_v18, %v7570_v1 }
 0x227   : > { %2966 = vmatmul.mubr.f32.gmra.mxu1 %v1299_v23  ;;  %5272 = vmatpush3.msra.mxu0 %v1696_v51  ;;  %v4412_v25 = vpop.f32.mrf.mxu0 }
 0x228   : > { %5273 = vmatprep.subr.mxu0 %v1695_v31  ;;  %5275 = vmatprep.mubr.f32.mxu0 %v7293_v9  ;;  %v7750_v41 = vadd.f32 %v4467_v46, %v2013_v39  ;;  %v4468_v54 = vpop.f32.mrf.mxu1  ;;  %v1294_v9 = vsel %vm975_vm1, %v1292_v38, %v1293_v2 }
 0x229   : > { %5274 = vmatpush3.msra.mxu0 %v1695_v31  ;;  %v4413_v24 = vpop.f32.mrf.mxu0  ;;  %v1303_v52 = vrot.slane %v1294_v9, 1 }
 0x22a   : > { %5276 = vmatmul.mubr.f32.vlgmr.msra.gmra.mxu0 %v7341_v47  ;;  %v4414_v19 = vadd.f32 %v4413_v24, %v4412_v25  ;;  %v4469_v21 = vpop.f32.mrf.mxu1 }
 0x22b   : > { %5278 = vmatprep.mubr.f32.mxu0 %v7393_v7  ;;  %v4470_v1 = vadd.f32 %v4469_v21, %v4468_v54  ;;  %v8967_v7 = vld [vmem:[#allocation8_spill] sm:$0xff]  ;;  %v1305_v58 = vsel %vm965_vm0, %v1303_v52, %v1304_v27 }
 0x22c   : > { %v2018_v40 = vadd.f32 %v4414_v19, %v7623_v36  ;;  %v3255_v27 = vld [vmem:[%s8902_s5 + $0x78] sm:$0xff] }
 0x22d   : > { %v4415_v11 = vpop.f32.mrf.mxu0 }
 0x22e   : > { %5279 = vmatmul.mubr.f32.gmra.mxu0 %v7442_v10  ;;  %v7759_v3 = vadd.f32 %v4470_v1, %v2018_v40  ;;  %v4471_v34 = vpop.f32.mrf.mxu1 }
 0x22f   : > { %5281 = vmatprep.mubr.f32.mxu0 %v8966_v62  ;;  %v4416_v47 = vpop.f32.mrf.mxu0  ;;  %v3271_v62 = vld [vmem:[%s8902_s5 + $0xf8] sm:$0xff] }
 0x230   : > { %v4417_v48 = vadd.f32 %v4416_v47, %v4415_v11  ;;  %v4472_v0 = vpop.f32.mrf.mxu1  ;;  %4946 = vmatprep.subr.mxu1 %v3271_v62 }
 0x231   : > { %v4473_v14 = vadd.f32 %v4472_v0, %v4471_v34  ;;  %4947 = vmatpush3.msra.mxu1 %v3255_v27  ;;  %v3246_v27 = vld [vmem:[%s8902_s5 + $0x30] sm:$0xff] }
 0x232   : > { %5282 = vmatmul.mubr.f32.gmra.mxu0 %v8967_v7  ;;  %v2023_v36 = vadd.f32 %v4417_v48, %v7654_v4  ;;  %v3270_v7 = vld [vmem:[%s8902_s5 + $0xf0] sm:$0xff] }
 0x233   : > { %5284 = vmatprep.mubr.f32.mxu0 %v7591_v43  ;;  %v4506_v10 = vpop.f32.mrf.mxu0  ;;  %4948 = vmatprep.subr.mxu1 %v3270_v7 }
 0x234   : > { %v7765_v20 = vadd.f32 %v4473_v14, %v2023_v36  ;;  %v4562_v6 = vpop.f32.mrf.mxu1  ;;  %v3287_v14 = vld [vmem:[%s8902_s5 + $0x178] sm:$0xff] }
 0x235   : > { %v4507_v56 = vpop.f32.mrf.mxu0 }
 0x236   : > { %5285 = vmatmul.mubr.f32.gmra.mxu0 %v1305_v58  ;;  %v4508_v50 = vadd.f32 %v4507_v56, %v4506_v10  ;;  %v4563_v37 = vpop.f32.mrf.mxu1  ;;  %v3302_v10 = vld [vmem:[%s8902_s5 + $0x1f0] sm:$0xff] }
 0x237   : > { %v4564_v8 = vadd.f32 %v4563_v37, %v4562_v6  ;;  %v3286_v6 = vld [vmem:[%s8902_s5 + $0x170] sm:$0xff]  ;;  %v3301_v37 = vld [vmem:[%s8902_s5 + $0x1e8] sm:$0xff] }
 0x238   : > { %v2198_v53 = vadd.f32 %v4508_v50, %v7667_v30  ;;  %v3269_v50 = vld [vmem:[%s8902_s5 + $0xe8] sm:$0xff] }
 0x239   : > { %v4509_v57 = vpop.f32.mrf.mxu0 }
 0x23a   : > { %v7769_v45 = vadd.f32 %v4564_v8, %v2198_v53  ;;  %v4565_v33 = vpop.f32.mrf.mxu1 }
 0x23b   : > { %v4510_v4 = vpop.f32.mrf.mxu0 }
 0x23c   : > { %v4511_v55 = vadd.f32 %v4510_v4, %v4509_v57  ;;  %v4566_v43 = vpop.f32.mrf.mxu1  ;;  %v3285_v4 = vld [vmem:[%s8902_s5 + $0x168] sm:$0xff] }
 0x23d   : > { %v4567_v44 = vadd.f32 %v4566_v43, %v4565_v33  ;;  %v3253_v33 = vld [vmem:[%s8902_s5 + $0x68] sm:$0xff]  ;;  %v3268_v43 = vld [vmem:[%s8902_s5 + $0xe0] sm:$0xff] }
 0x23e   : > { %v2203_v49 = vadd.f32 %v4511_v55, %v7683_v16 }
 0x23f   : > { %v4512_v5 = vpop.f32.mrf.mxu0 }
 0x240   : > { %v7772_v63 = vadd.f32 %v4567_v44, %v2203_v49  ;;  %v4568_v26 = vpop.f32.mrf.mxu1  ;;  %v3300_v44 = vld [vmem:[%s8902_s5 + $0x1e0] sm:$0xff] }
 0x241   : > { %v4513_v60 = vpop.f32.mrf.mxu0 }
 0x242   : > { %v4514_v28 = vadd.f32 %v4513_v60, %v4512_v5  ;;  %v4569_v22 = vpop.f32.mrf.mxu1  ;;  %v3252_v5 = vld [vmem:[%s8902_s5 + $0x60] sm:$0xff]  ;;  %v3267_v60 = vld [vmem:[%s8902_s5 + $0xd8] sm:$0xff] }
 0x243   : > { %v4570_v12 = vadd.f32 %v4569_v22, %v4568_v26  ;;  %v3284_v26 = vld [vmem:[%s8902_s5 + $0x160] sm:$0xff] }
 0x244   : > { %v2208_v30 = vadd.f32 %v4514_v28, %v7702_v29 }
 0x245   : > { %v4515_v13 = vpop.f32.mrf.mxu0 }
 0x246   : > { %v7775_v17 = vadd.f32 %v4570_v12, %v2208_v30  ;;  %v4571_v35 = vpop.f32.mrf.mxu1  ;;  %v3251_v30 = vld [vmem:[%s8902_s5 + $0x58] sm:$0xff] }
 0x247   : > { %v4516_v59 = vpop.f32.mrf.mxu0 }
 0x248   : > { %v4517_v51 = vadd.f32 %v4516_v59, %v4515_v13  ;;  %v4572_v61 = vpop.f32.mrf.mxu1  ;;  %v3283_v13 = vld [vmem:[%s8902_s5 + $0x158] sm:$0xff]  ;;  %v3266_v59 = vld [vmem:[%s8902_s5 + $0xd0] sm:$0xff] }
 0x249   : > { %v4573_v18 = vadd.f32 %v4572_v61, %v4571_v35 }
 0x24a   : > { %v2213_v16 = vadd.f32 %v4517_v51, %v7722_v32  ;;  %v3298_v51 = vld [vmem:[%s8902_s5 + $0x1d0] sm:$0xff] }
 0x24b   : > { %v4518_v42 = vpop.f32.mrf.mxu0 }
 0x24c   : > { %v7778_v31 = vadd.f32 %v4573_v18, %v2213_v16  ;;  %v4574_v46 = vpop.f32.mrf.mxu1  ;;  %v3250_v16 = vld [vmem:[%s8902_s5 + $0x50] sm:$0xff] }
 0x24d   : > { %v4519_v23 = vpop.f32.mrf.mxu0 }
 0x24e   : > { %v4520_v39 = vadd.f32 %v4519_v23, %v4518_v42  ;;  %v4575_v25 = vpop.f32.mrf.mxu1  ;;  %v3282_v42 = vld [vmem:[%s8902_s5 + $0x150] sm:$0xff]  ;;  %v3297_v23 = vld [vmem:[%s8902_s5 + $0x1c8] sm:$0xff] }
 0x24f   : > { %v4576_v54 = vadd.f32 %v4575_v25, %v4574_v46  ;;  %v3265_v46 = vld [vmem:[%s8902_s5 + $0xc8] sm:$0xff] }
 0x250   : > { %v2218_v29 = vadd.f32 %v4520_v39, %v7738_v15  ;;  %v3303_v15 = vld [vmem:[%s8902_s5 + $0x1f8] sm:$0xff] }
 0x251   : > { %v4521_v24 = vpop.f32.mrf.mxu0  ;;  %4981 = vmatprep.subr.mxu0 %v3303_v15 }
 0x252   : > { %v7781_v2 = vadd.f32 %v4576_v54, %v2218_v29  ;;  %v4577_v38 = vpop.f32.mrf.mxu1  ;;  %4982 = vmatpush3.msra.mxu0 %v3287_v14  ;;  %v3249_v54 = vld [vmem:[%s8902_s5 + $0x48] sm:$0xff]  ;;  %v3278_v14 = vld [vmem:[%s8902_s5 + $0x130] sm:$0xff] }
 0x253   : > { %v4522_v19 = vpop.f32.mrf.mxu0  ;;  %4983 = vmatprep.subr.mxu0 %v3302_v10  ;;  %v3281_v29 = vld [vmem:[%s8902_s5 + $0x148] sm:$0xff] }
 0x254   : > { %v4523_v21 = vadd.f32 %v4522_v19, %v4521_v24  ;;  %v4578_v1 = vpop.f32.mrf.mxu1  ;;  %4984 = vmatpush3.msra.mxu0 %v3286_v6  ;;  %v3277_v6 = vld [vmem:[%s8902_s5 + $0x128] sm:$0xff] }
 0x255   : > { %v4579_v40 = vadd.f32 %v4578_v1, %v4577_v38  ;;  %4985 = vmatprep.subr.mxu0 %v3301_v37  ;;  %v3264_v38 = vld [vmem:[%s8902_s5 + $0xc0] sm:$0xff] }
 0x256   : > { %v2223_v32 = vadd.f32 %v4523_v21, %v7750_v41  ;;  %4986 = vmatpush3.msra.mxu0 %v3285_v4  ;;  %v3248_v1 = vld [vmem:[%s8902_s5 + $0x40] sm:$0xff]  ;;  %v3259_v4 = vld [vmem:[%s8902_s5 + $0x98] sm:$0xff] }
 0x257   : > { %v4524_v11 = vpop.f32.mrf.mxu0  ;;  %4987 = vmatprep.subr.mxu0 %v3300_v44  ;;  %v3292_v37 = vld [vmem:[%s8902_s5 + $0x1a0] sm:$0xff]  ;;  %v3243_v44 = vld [vmem:[%s8902_s5 + $0x18] sm:$0xff] }
 0x258   : > { %v7784_v9 = vadd.f32 %v4579_v40, %v2223_v32  ;;  %v4580_v34 = vpop.f32.mrf.mxu1  ;;  %4988 = vmatpush3.msra.mxu0 %v3284_v26  ;;  %v3280_v40 = vld [vmem:[%s8902_s5 + $0x140] sm:$0xff]  ;;  %v3258_v26 = vld [vmem:[%s8902_s5 + $0x90] sm:$0xff] }
 0x259   : > { %v4525_v47 = vpop.f32.mrf.mxu0 }
 0x25a   : > { %v4526_v48 = vadd.f32 %v4525_v47, %v4524_v11  ;;  %v4581_v0 = vpop.f32.mrf.mxu1  ;;  %v3263_v11 = vld [vmem:[%s8902_s5 + $0xb8] sm:$0xff] }
 0x25b   : > { %v4582_v52 = vadd.f32 %v4581_v0, %v4580_v34  ;;  %v3295_v34 = vld [vmem:[%s8902_s5 + $0x1b8] sm:$0xff]  ;;  %v3262_v0 = vld [vmem:[%s8902_s5 + $0xb0] sm:$0xff] }
 0x25c   : > { %v2228_v41 = vadd.f32 %v4526_v48, %v7759_v3  ;;  %v3254_v3 = vld [vmem:[%s8902_s5 + $0x70] sm:$0xff]  ;;  %v3247_v47 = vld [vmem:[%s8902_s5 + $0x38] sm:$0xff] }
 0x25d   : > { %v4527_v36 = vpop.f32.mrf.mxu0  ;;  %4949 = vmatpush3.msra.mxu1 %v3254_v3  ;;  %v3279_v48 = vld [vmem:[%s8902_s5 + $0x138] sm:$0xff]  ;;  %v3245_v3 = vld [vmem:[%s8902_s5 + $0x28] sm:$0xff] }
 0x25e   : > { %v7811_v58 = vadd.f32 %v4582_v52, %v2228_v41  ;;  %v4583_v56 = vpop.f32.mrf.mxu1  ;;  %4950 = vmatprep.subr.mxu1 %v3269_v50  ;;  %v3294_v52 = vld [vmem:[%s8902_s5 + $0x1b0] sm:$0xff]  ;;  %v3260_v50 = vld [vmem:[%s8902_s5 + $0xa0] sm:$0xff] }
 0x25f   : > { %v4528_v8 = vpop.f32.mrf.mxu0  ;;  %4951 = vmatpush3.msra.mxu1 %v3253_v33  ;;  %v3276_v33 = vld [vmem:[%s8902_s5 + $0x120] sm:$0xff] }
 0x260   : > { %v4529_v53 = vadd.f32 %v4528_v8, %v4527_v36  ;;  %v4584_v57 = vpop.f32.mrf.mxu1  ;;  %4952 = vmatprep.subr.mxu1 %v3268_v43  ;;  %v3261_v36 = vld [vmem:[%s8902_s5 + $0xa8] sm:$0xff] }
 0x261   : > { %v4585_v55 = vadd.f32 %v4584_v57, %v4583_v56  ;;  %4953 = vmatpush3.msra.mxu1 %v3252_v5  ;;  %v3244_v57 = vld [vmem:[%s8902_s5 + $0x20] sm:$0xff] }
 0x262   : > { %v2233_v49 = vadd.f32 %v4529_v53, %v7765_v20  ;;  %v3299_v20 = vld [vmem:[%s8902_s5 + $0x1d8] sm:$0xff]  ;;  %4954 = vmatprep.subr.mxu1 %v3267_v60 }
 0x263   : > { %v4618_v28 = vpop.f32.mrf.mxu0  ;;  %4989 = vmatprep.subr.mxu0 %v3299_v20  ;;  %4955 = vmatpush3.msra.mxu1 %v3251_v30  ;;  %v3274_v20 = vld [vmem:[%s8902_s5 + $0x110] sm:$0xff]  ;;  %v3257_v30 = vld [vmem:[%s8902_s5 + $0x88] sm:$0xff] }
 0x264   : > { %v7844_v22 = vadd.f32 %v4585_v55, %v2233_v49  ;;  %v4674_v12 = vpop.f32.mrf.mxu1  ;;  %4990 = vmatpush3.msra.mxu0 %v3283_v13  ;;  %4956 = vmatprep.subr.mxu1 %v3266_v59  ;;  %v3291_v55 = vld [vmem:[%s8902_s5 + $0x198] sm:$0xff]  ;;  %v3289_v13 = vld [vmem:[%s8902_s5 + $0x188] sm:$0xff] }
 0x265   : > { %v4619_v35 = vpop.f32.mrf.mxu0  ;;  %4991 = vmatprep.subr.mxu0 %v3298_v51  ;;  %4957 = vmatpush3.msra.mxu1 %v3250_v16  ;;  %v3275_v49 = vld [vmem:[%s8902_s5 + $0x118] sm:$0xff]  ;;  %v3241_v51 = vld [vmem:[%s8902_s5 + $0x8] sm:$0xff]  ;;  %v3288_v16 = vld [vmem:[%s8902_s5 + $0x180] sm:$0xff] }
 0x266   : > { %v4620_v61 = vadd.f32 %v4619_v35, %v4618_v28  ;;  %v4675_v18 = vpop.f32.mrf.mxu1  ;;  %4992 = vmatpush3.msra.mxu0 %v3282_v42  ;;  %4958 = vmatprep.subr.mxu1 %v3265_v46  ;;  %v3242_v28 = vld [vmem:[%s8902_s5 + $0x10] sm:$0xff]  ;;  %v3240_v46 = vld [vmem:[%s8902_s5] sm:$0xff] }
 0x267   : > { %v4676_v25 = vadd.f32 %v4675_v18, %v4674_v12  ;;  %4993 = vmatprep.subr.mxu0 %v3297_v23  ;;  %4959 = vmatpush3.msra.mxu1 %v3249_v54  ;;  %v3256_v18 = vld [vmem:[%s8902_s5 + $0x80] sm:$0xff] }
 0x268   : > { %v2408_v39 = vadd.f32 %v4620_v61, %v7769_v45  ;;  %4994 = vmatpush3.msra.mxu0 %v3281_v29  ;;  %v3296_v45 = vld [vmem:[%s8902_s5 + $0x1c0] sm:$0xff]  ;;  %4960 = vmatprep.subr.mxu1 %v3264_v38  ;;  %v3273_v61 = vld [vmem:[%s8902_s5 + $0x108] sm:$0xff] }
 0x269   : > { %v4621_v24 = vpop.f32.mrf.mxu0  ;;  %4995 = vmatprep.subr.mxu0 %v3296_v45  ;;  %4961 = vmatpush3.msra.mxu1 %v3248_v1  ;;  %v3272_v23 = vld [vmem:[%s8902_s5 + $0x100] sm:$0xff]  ;;  %v8932_v45 = vlaneseq }
 0x26a   : > { %v7883_v19 = vadd.f32 %v4676_v25, %v2408_v39  ;;  %v7885_v21 = vpop.f32.mrf.mxu1  ;;  %4996 = vmatpush3.msra.mxu0 %v3280_v40  ;;  %4962 = vmatprep.subr.mxu1 %v3263_v11  ;;  %v3335_v25 = vld [vmem:[%s8902_s5 + $0x2f8] sm:$0xff] }
 0x26b   : > { %v4622_v32 = vpop.f32.mrf.mxu0  ;;  %4997 = vmatprep.subr.mxu0 %v3295_v34  ;;  %4963 = vmatpush3.msra.mxu1 %v3247_v47 }
 0x26c   : > { %v4623_v62 = vadd.f32 %v4622_v32, %v4621_v24  ;;  %v7899_v15 = vpop.f32.mrf.mxu1  ;;  %4998 = vmatpush3.msra.mxu0 %v3279_v48  ;;  %4964 = vmatprep.subr.mxu1 %v3262_v0 }
 0x26d   : > { %4999 = vmatprep.subr.mxu0 %v3294_v52  ;;  %4965 = vmatpush3.msra.mxu1 %v3246_v27 }
 0x26e   : > { %v7914_v41 = vadd.f32 %v4623_v62, %v7772_v63  ;;  %5000 = vmatpush3.msra.mxu0 %v3278_v14  ;;  %v3293_v63 = vld [vmem:[%s8902_s5 + $0x1a8] sm:$0xff]  ;;  %4966 = vmatprep.subr.mxu1 %v3261_v36  ;;  %v8016_v62 = vshrl.u32 %v8932_v45, 7 }
 0x26f   : > { %v4624_v7 = vpop.f32.mrf.mxu0  ;;  %5001 = vmatprep.subr.mxu0 %v3293_v63  ;;  %4967 = vmatpush3.msra.mxu1 %v3245_v3  ;;  %v8022_v14 = vld [vmem:[%s8901_s4 + $0x8] sm:$0xff] }
 0x270   : > { %v7928_v10 = vpop.f32.mrf.mxu1  ;;  %5002 = vmatpush3.msra.mxu0 %v3277_v6  ;;  %4968 = vmatprep.subr.mxu1 %v3260_v50  ;;  %v8934_v52 = vsub.s32 4, %v8016_v62  ;;  %8968 = vst [vmem:[#allocation5_spill] sm:$0xff] %v8022_v14 }
 0x271   : > { %v4625_v56 = vpop.f32.mrf.mxu0  ;;  %5003 = vmatprep.subr.mxu0 %v3292_v37  ;;  %4969 = vmatpush3.msra.mxu1 %v3244_v57 }
 0x272   : > { %v4626_v8 = vadd.f32 %v4625_v56, %v4624_v7  ;;  %v7942_v53 = vpop.f32.mrf.mxu1  ;;  %5004 = vmatpush3.msra.mxu0 %v3276_v33  ;;  %4970 = vmatprep.subr.mxu1 %v3259_v4  ;;  %v8029_v36 = vrot.slane %v8022_v14, %v8934_v52 }
 0x273   : > { %5005 = vmatprep.subr.mxu0 %v3291_v55  ;;  %4971 = vmatpush3.msra.mxu1 %v3243_v44 }
 0x274   : > { %v7957_v43 = vadd.f32 %v4626_v8, %v7775_v17  ;;  %5006 = vmatpush3.msra.mxu0 %v3275_v49  ;;  %v3290_v17 = vld [vmem:[%s8902_s5 + $0x190] sm:$0xff]  ;;  %4972 = vmatprep.subr.mxu1 %v3258_v26  ;;  %8969 = vst [vmem:[#allocation6_spill] sm:$0xff] %v8029_v36  ;;  %v4682_v36 = vadd.f32 %v7942_v53, %v7928_v10 }
 0x275   : > { %v4627_v5 = vpop.f32.mrf.mxu0  ;;  %5007 = vmatprep.subr.mxu0 %v3290_v17  ;;  %4973 = vmatpush3.msra.mxu1 %v3242_v28 }
 0x276   : > { %v7971_v60 = vpop.f32.mrf.mxu1  ;;  %5008 = vmatpush3.msra.mxu0 %v3274_v20  ;;  %4974 = vmatprep.subr.mxu1 %v3257_v30 }
 0x277   : > { %v4628_v12 = vpop.f32.mrf.mxu0  ;;  %5009 = vmatprep.subr.mxu0 %v3289_v13  ;;  %4975 = vmatpush3.msra.mxu1 %v3241_v51 }
 0x278   : > { %v4629_v35 = vadd.f32 %v4628_v12, %v4627_v5  ;;  %v7985_v59 = vpop.f32.mrf.mxu1  ;;  %5010 = vmatpush3.msra.mxu0 %v3273_v61  ;;  %4976 = vmatprep.subr.mxu1 %v3256_v18 }
 0x279   : > { %5011 = vmatprep.subr.mxu0 %v3288_v16  ;;  %4977 = vmatpush3.msra.mxu1 %v3240_v46 }
 0x27a   : > { %v8000_v42 = vadd.f32 %v4629_v35, %v7778_v31  ;;  %5012 = vmatpush3.msra.mxu0 %v3272_v23  ;;  %v3367_v31 = vld [vmem:[%s8902_s5 + $0x3f8] sm:$0xff]  ;;  %5016 = vmatprep.subr.mxu1 %v3335_v25 }
 0x27b   : > { %v4630_v39 = vpop.f32.mrf.mxu0  ;;  %5051 = vmatprep.subr.mxu0 %v3367_v31 }
 0x27c   : > { %v4686_v54 = vpop.f32.mrf.mxu1 }
 0x27d   : > { %v4631_v29 = vpop.f32.mrf.mxu0 }
 0x27e   : > { %v4632_v24 = vadd.f32 %v4631_v29, %v4630_v39  ;;  %v4687_v38 = vpop.f32.mrf.mxu1 }
 0x27f   : > { %v4688_v1 = vadd.f32 %v4687_v38, %v4686_v54 }
 0x280   : > { %v2428_v40 = vadd.f32 %v4632_v24, %v7781_v2  ;;  %v8933_v2 = vsub.s32 6, %v8016_v62 }
 0x281   : > { %v4633_v32 = vpop.f32.mrf.mxu0 }
 0x282   : > { %v2533_v11 = vadd.f32 %v4688_v1, %v2428_v40  ;;  %v4689_v34 = vpop.f32.mrf.mxu1  ;;  %v8034_v56 = vrot.slane %v8022_v14, %v8933_v2 }
 0x283   : > { %v4634_v47 = vpop.f32.mrf.mxu0 }
 0x284   : > { %v4635_v48 = vadd.f32 %v4634_v47, %v4633_v32  ;;  %v4690_v0 = vpop.f32.mrf.mxu1  ;;  %8970 = vst [vmem:[#allocation7_spill] sm:$0xff] %v8034_v56 }
 0x285   : > { %v4691_v27 = vadd.f32 %v4690_v0, %v4689_v34 }
 0x286   : > { %v2433_v7 = vadd.f32 %v4635_v48, %v7784_v9 }
 0x287   : > { %v4636_v63 = vpop.f32.mrf.mxu0 }
 0x288   : > { %v2538_v3 = vadd.f32 %v4691_v27, %v2433_v7  ;;  %v4692_v6 = vpop.f32.mrf.mxu1 }
 0x289   : > { %v4637_v50 = vpop.f32.mrf.mxu0 }
 0x28a   : > { %v4638_v37 = vadd.f32 %v4637_v50, %v4636_v63  ;;  %v4693_v8 = vpop.f32.mrf.mxu1 }
 0x28b   : > { %v4694_v57 = vadd.f32 %v4693_v8, %v4692_v6 }
 0x28c   : > { %v2438_v9 = vadd.f32 %v4638_v37, %v7811_v58 }
 0x28d   : > { %v4639_v33 = vpop.f32.mrf.mxu0 }
 0x28e   : > { %v2543_v4 = vadd.f32 %v4694_v57, %v2438_v9  ;;  %v4695_v55 = vpop.f32.mrf.mxu1 }
 0x28f   : > { %v4640_v44 = vpop.f32.mrf.mxu0 }
 0x290   : > { %v4641_v49 = vadd.f32 %v4640_v44, %v4639_v33  ;;  %v4696_v5 = vpop.f32.mrf.mxu1 }
 0x291   : > { %v4697_v26 = vadd.f32 %v4696_v5, %v4695_v55 }
 0x292   : > { %v2443_v17 = vadd.f32 %v4641_v49, %v7844_v22 }
 0x293   : > { %v8038_v28 = vpop.f32.mrf.mxu0 }
 0x294   : > { %v2548_v20 = vadd.f32 %v4697_v26, %v2443_v17  ;;  %v8040_v12 = vpop.f32.mrf.mxu1 }
 0x295   : > { %v8042_v30 = vpop.f32.mrf.mxu0 }
 0x296   : > { %v8044_v13 = vpop.f32.mrf.mxu1 }
 0x299   : > { %v4733_v35 = vpop.f32.mrf.mxu0 }
 0x29a   : > { %v8046_v58 = vpop.f32.mrf.mxu1 }
 0x29b   : > { %v4734_v51 = vpop.f32.mrf.mxu0 }
 0x29c   : > { %v8048_v61 = vpop.f32.mrf.mxu1 }
 0x29f   : > { %v8050_v18 = vpop.f32.mrf.mxu0 }
 0x2a0   : > { %v8052_v16 = vpop.f32.mrf.mxu1 }
 0x2a1   : > { %v8054_v22 = vpop.f32.mrf.mxu0 }
 0x2a2   : > { %v8056_v46 = vpop.f32.mrf.mxu1 }
 0x2a5   : > { %v8058_v23 = vpop.f32.mrf.mxu0 }
 0x2a6   : > { %v8060_v39 = vpop.f32.mrf.mxu1 }
 0x2a7   : > { %v8062_v25 = vpop.f32.mrf.mxu0 }
 0x2a8   : > { %v8064_v31 = vpop.f32.mrf.mxu1 }
 0x2ab   : > { %v4742_v54 = vpop.f32.mrf.mxu0 }
 0x2ac   : > { %v8066_v29 = vpop.f32.mrf.mxu1 }
 0x2ad   : > { %v4743_v24 = vpop.f32.mrf.mxu0 }
 0x2ae   : > { %v4744_v38 = vadd.f32 %v4743_v24, %v4742_v54  ;;  %v8068_v1 = vpop.f32.mrf.mxu1 }
 0x2b0   : > { %v8070_v40 = vadd.f32 %v4744_v38, %v2533_v11 }
 0x2b1   : > { %v4745_v32 = vpop.f32.mrf.mxu0 }
 0x2b2   : > { %v8072_v34 = vpop.f32.mrf.mxu1 }
 0x2b3   : > { %v4746_v47 = vpop.f32.mrf.mxu0 }
 0x2b4   : > { %v4747_v48 = vadd.f32 %v4746_v47, %v4745_v32  ;;  %v8074_v0 = vpop.f32.mrf.mxu1 }
 0x2b6   : > { %v8076_v27 = vadd.f32 %v4747_v48, %v2538_v3 }
 0x2b7   : > { %v4748_v7 = vpop.f32.mrf.mxu0 }
 0x2b8   : > { %v4804_v63 = vpop.f32.mrf.mxu1 }
 0x2b9   : > { %v4749_v6 = vpop.f32.mrf.mxu0 }
 0x2ba   : > { %v4750_v50 = vadd.f32 %v4749_v6, %v4748_v7  ;;  %v4805_v37 = vpop.f32.mrf.mxu1 }
 0x2bb   : > { %v4806_v8 = vadd.f32 %v4805_v37, %v4804_v63 }
 0x2bc   : > { %v2648_v57 = vadd.f32 %v4750_v50, %v2543_v4 }
 0x2bd   : > { %v4751_v9 = vpop.f32.mrf.mxu0 }
 0x2be   : > { %v2753_v33 = vadd.f32 %v4806_v8, %v2648_v57  ;;  %v4807_v11 = vpop.f32.mrf.mxu1 }
 0x2bf   : > { %v4752_v55 = vpop.f32.mrf.mxu0 }
 0x2c0   : > { %v4753_v44 = vadd.f32 %v4752_v55, %v4751_v9  ;;  %v4808_v49 = vpop.f32.mrf.mxu1 }
 0x2c1   : > { %v4809_v5 = vadd.f32 %v4808_v49, %v4807_v11  ;;  %v4679_v49 = vadd.f32 %v7899_v15, %v7885_v21  ;;  %v2523_v21 = vadd.f32 %v4682_v36, %v7957_v43  ;;  %v4685_v15 = vadd.f32 %v7985_v59, %v7971_v60 }
 0x2c2   : > { %v2653_v26 = vadd.f32 %v4753_v44, %v2548_v20  ;;  %v4794_v59 = vadd.f32 %v8056_v46, %v8052_v16  ;;  %v4800_v16 = vadd.f32 %v8068_v1, %v8066_v29  ;;  %v3130_v1 = vsub.s32 0, %v8016_v62 }
 0x2c3   : > { %v4842_v17 = vpop.f32.mrf.mxu0  ;;  %v2518_v52 = vadd.f32 %v4679_v49, %v7914_v41 }
 0x2c4   : > { %v8078_v54 = vadd.f32 %v4809_v5, %v2653_v26  ;;  %v4898_v3 = vpop.f32.mrf.mxu1  ;;  %v4732_v5 = vadd.f32 %v8042_v30, %v8038_v28  ;;  %v4735_v26 = vadd.f32 %v4734_v51, %v4733_v35  ;;  %v4741_v28 = vadd.f32 %v8062_v25, %v8058_v23 }
 0x2c5   : > { %v4843_v24 = vpop.f32.mrf.mxu0  ;;  %v4788_v35 = vadd.f32 %v8044_v13, %v8040_v12 }
 0x2c6   : > { %v4899_v38 = vpop.f32.mrf.mxu1  ;;  %v2618_v14 = vadd.f32 %v4732_v5, %v7883_v19  ;;  %v4791_v19 = vadd.f32 %v8048_v61, %v8046_v58  ;;  %v4844_v10 = vadd.f32 %v4843_v24, %v4842_v17  ;;  %v4797_v61 = vadd.f32 %v8064_v31, %v8060_v39 }
 0x2c8   : > { %v4845_v32 = vpop.f32.mrf.mxu0  ;;  %v2723_v43 = vadd.f32 %v4788_v35, %v2618_v14  ;;  %v4900_v14 = vadd.f32 %v4899_v38, %v4898_v3  ;;  %v2743_v38 = vadd.f32 %v4800_v16, %v8070_v40  ;;  %v3134_v40 = vsub.s32 1, %v8016_v62 }
 0x2c9   : > { %v4901_v47 = vpop.f32.mrf.mxu1 }
 0x2ca   : > { %v4846_v48 = vpop.f32.mrf.mxu0  ;;  %v2828_v25 = vadd.f32 %v4844_v10, %v2723_v43 }
 0x2cb   : > { %v4902_v7 = vpop.f32.mrf.mxu1  ;;  %v4847_v53 = vadd.f32 %v4846_v48, %v4845_v32 }
 0x2cc   : > { %v4903_v24 = vadd.f32 %v4902_v7, %v4901_v47  ;;  %v2933_v5 = vadd.f32 %v4900_v14, %v2828_v25 }
 0x2cd   : > { %v4848_v63 = vpop.f32.mrf.mxu0 }
 0x2ce   : > { %v8080_v4 = vpop.f32.mrf.mxu1 }
 0x2cf   : > { %v4849_v6 = vpop.f32.mrf.mxu0 }
 0x2d0   : > { %v8082_v50 = vpop.f32.mrf.mxu1  ;;  %v4850_v12 = vadd.f32 %v4849_v6, %v4848_v63  ;;  %v4803_v63 = vadd.f32 %v8074_v0, %v8072_v34 }
 0x2d1   : > { %v4906_v47 = vadd.f32 %v8082_v50, %v8080_v4 }
 0x2d2   : > { %v4851_v37 = vpop.f32.mrf.mxu0  ;;  %v2748_v7 = vadd.f32 %v4803_v63, %v8076_v27  ;;  %v8138_v27 = vld [vmem:[%s8901_s4] sm:$0xff] }
 0x2d3   : > { %v8084_v8 = vpop.f32.mrf.mxu1 }
 0x2d4   : > { %v4852_v20 = vpop.f32.mrf.mxu0 }
 0x2d5   : > { %v8086_v57 = vpop.f32.mrf.mxu1 }
 0x2d6   : > { %v4909_v34 = vadd.f32 %v8086_v57, %v8084_v8 }
 0x2d7   : > { %v4854_v9 = vpop.f32.mrf.mxu0 }
 0x2d8   : > { %v8088_v11 = vpop.f32.mrf.mxu1 }
 0x2d9   : > { %8971 = vst [vmem:[#allocation8_spill] sm:$0xff] %v8088_v11  ;;  %v4855_v55 = vpop.f32.mrf.mxu0  ;;  %v2623_v11 = vadd.f32 %v4735_v26, %v2518_v52  ;;  %v2528_v52 = vadd.f32 %v4685_v15, %v8000_v42  ;;  %v4853_v42 = vadd.f32 %v4852_v20, %v4851_v37 }
 0x2da   : > { %v8090_v44 = vpop.f32.mrf.mxu1  ;;  %v4856_v39 = vadd.f32 %v4855_v55, %v4854_v9  ;;  %v3142_v9 = vsub.s32 3, %v8016_v62 }
 0x2db   : > { %8972 = vst [vmem:[#allocation9_spill] sm:$0xff] %v8090_v44  ;;  %v4738_v44 = vadd.f32 %v8054_v22, %v8050_v18  ;;  %v2728_v36 = vadd.f32 %v4791_v19, %v2623_v11  ;;  %v2633_v22 = vadd.f32 %v4741_v28, %v2528_v52 }
 0x2dc   : > { %v4857_v45 = vpop.f32.mrf.mxu0  ;;  %v2848_v4 = vadd.f32 %v4856_v39, %v2743_v38 }
 0x2dd   : > { %v8096_v2 = vpop.f32.mrf.mxu1  ;;  %v2628_v18 = vadd.f32 %v4738_v44, %v2523_v21  ;;  %v2833_v49 = vadd.f32 %v4847_v53, %v2728_v36  ;;  %v2738_v48 = vadd.f32 %v4797_v61, %v2633_v22  ;;  %v3158_v61 = vsub.s32 7, %v8016_v62 }
 0x2de   : > { %v4858_v56 = vpop.f32.mrf.mxu0 }
 0x2df   : > { %v4914_v30 = vpop.f32.mrf.mxu1  ;;  %v2733_v17 = vadd.f32 %v4794_v59, %v2628_v18  ;;  %v2938_v6 = vadd.f32 %v4903_v24, %v2833_v49  ;;  %v2843_v26 = vadd.f32 %v4853_v42, %v2738_v48  ;;  %v4859_v31 = vadd.f32 %v4858_v56, %v4857_v45 }
 0x2e0   : > { %v3138_v45 = vsub.s32 2, %v8016_v62  ;;  %v8973_v57 = vld [vmem:[#allocation8_spill] sm:$0xff]  ;;  %v4915_v35 = vadd.f32 %v4914_v30, %v8096_v2  ;;  %v3135_v18 = vrot.slane %v8138_v27, %v3134_v40  ;;  %v3159_v39 = vrot.slane %v8138_v27, %v3158_v61 }
 0x2e1   : > { %v4860_v41 = vpop.f32.mrf.mxu0  ;;  %v2853_v50 = vadd.f32 %v4859_v31, %v2748_v7  ;;  %v2948_v8 = vadd.f32 %v4909_v34, %v2843_v26  ;;  %v8975_v31 = vld [vmem:[#allocation5_spill] sm:$0xff] }
 0x2e2   : > { %v4916_v23 = vpop.f32.mrf.mxu1  ;;  %v8974_v21 = vld [vmem:[#allocation9_spill] sm:$0xff]  ;;  %v3139_v43 = vrot.slane %v8138_v27, %v3138_v45  ;;  %v3163_v38 = vrot.slane %v8975_v31, %v3130_v1 }
 0x2e3   : > { %v4861_v51 = vpop.f32.mrf.mxu0  ;;  %v4912_v15 = vadd.f32 %v8974_v21, %v8973_v57  ;;  %v2958_v59 = vadd.f32 %v4915_v35, %v2853_v50  ;;  %v3171_v50 = vrot.slane %v8975_v31, %v3138_v45  ;;  %v3318_v45 = vld [vmem:[%s8902_s5 + $0x270] sm:$0xff] }
 0x2e4   : > { %v4862_v60 = vadd.f32 %v4861_v51, %v4860_v41  ;;  %v4917_v46 = vpop.f32.mrf.mxu1  ;;  %v3150_v41 = vsub.s32 5, %v8016_v62  ;;  %v3131_v51 = vrot.slane %v8138_v27, %v3130_v1  ;;  %v3351_v1 = vld [vmem:[%s8902_s5 + $0x378] sm:$0xff]  ;;  %v3350_v35 = vld [vmem:[%s8902_s5 + $0x370] sm:$0xff] }
 0x2e5   : > { %v2953_v22 = vadd.f32 %v4912_v15, %v2848_v4  ;;  %v4918_v25 = vadd.f32 %v4917_v46, %v4916_v23  ;;  %v3319_v4 = vld [vmem:[%s8902_s5 + $0x278] sm:$0xff] }
 0x2e6   : > { %v8116_v13 = vadd.f32 %v4862_v60, %v2753_v33  ;;  %v4863_v58 = vpop.f32.mrf.mxu0  ;;  %v2838_v33 = vadd.f32 %v4850_v12, %v2733_v17  ;;  %v3143_v60 = vrot.slane %v8138_v27, %v3142_v9 }
 0x2e7   : > { %v4919_v0 = vpop.f32.mrf.mxu1 }
 0x2e8   : > { %v4864_v32 = vpop.f32.mrf.mxu0  ;;  %v2963_v16 = vadd.f32 %v4918_v25, %v8116_v13 }
 0x2e9   : > { %v4865_v11 = vadd.f32 %v4864_v32, %v4863_v58  ;;  %v4920_v19 = vpop.f32.mrf.mxu1  ;;  %v3151_v58 = vrot.slane %v8138_v27, %v3150_v41 }
 0x2ea   : > { %v5277_v44 = vpop.f32.mrf.mxu0  ;;  %v4921_v49 = vadd.f32 %v4920_v19, %v4919_v0  ;;  %v3333_v19 = vld [vmem:[%s8902_s5 + $0x2e8] sm:$0xff] }
 0x2eb   : > { %v2863_v3 = vadd.f32 %v4865_v11, %v8078_v54  ;;  %v3043_v37 = vadd.f32 %v5277_v44, %v2938_v6  ;;  %v2943_v54 = vadd.f32 %v4906_v47, %v2838_v33 }
 0x2ec   : > { %v3037_v29 = vpop.f32.mrf.mxu0 }
 0x2ed   : > { %v3038_v20 = vadd.f32 %v3037_v29, %v2933_v5  ;;  %v2968_v32 = vadd.f32 %v4921_v49, %v2863_v3  ;;  %v3316_v49 = vld [vmem:[%s8902_s5 + $0x260] sm:$0xff] }
 0x2ee   : > { %v5280_v56 = vpop.f32.mrf.mxu0 }
 0x2ef   : > { %v3076_v55 = vmax.f32 %v3038_v20, %v3043_v37  ;;  %v3053_v53 = vadd.f32 %v5280_v56, %v2948_v8  ;;  %v3366_v8 = vld [vmem:[%s8902_s5 + $0x3f0] sm:$0xff] }
 0x2f0   : > { %v3047_v28 = vpop.f32.mrf.mxu0 }
 0x2f1   : > { %v3078_v10 = vrot.slane %v3076_v55, 1  ;;  %v3048_v52 = vadd.f32 %v3047_v28, %v2943_v54 }
 0x2f2   : > { %v5283_v36 = vpop.f32.mrf.mxu0 }
 0x2f3   : > { %v3080_v2 = vmax.f32 %v3076_v55, %v3078_v10  ;;  %v3081_v30 = vmax.f32 %v3048_v52, %v3053_v53  ;;  %v3063_v14 = vadd.f32 %v5283_v36, %v2958_v59  ;;  %v3334_v55 = vld [vmem:[%s8902_s5 + $0x2f0] sm:$0xff]  ;;  %v3183_v52 = vrot.slane %v8975_v31, %v3150_v41  ;;  %v3349_v41 = vld [vmem:[%s8902_s5 + $0x368] sm:$0xff]  ;;  %v3332_v59 = vld [vmem:[%s8902_s5 + $0x2e0] sm:$0xff] }
 0x2f4   : > { %v3057_v12 = vpop.f32.mrf.mxu0 }
 0x2f5   : > { %v3099_v42 = vrot.slane %v3080_v2, 4  ;;  %v3083_v17 = vrot.slane %v3081_v30, 1  ;;  %v3058_v24 = vadd.f32 %v3057_v12, %v2953_v22  ;;  %v3097_v11 = vrot.slane %v3080_v2, 2  ;;  %v3364_v22 = vld [vmem:[%s8902_s5 + $0x3e0] sm:$0xff] }
 0x2f6   : > { %v5286_v48 = vpop.f32.mrf.mxu0  ;;  %v3101_v63 = vrot.slane %v3080_v2, 6  ;;  %v3208_v33 = vadd.f32 %v3131_v51, %v3080_v2  ;;  %v3191_v2 = vrot.slane %v8975_v31, %v3158_v61  ;;  %v3348_v12 = vld [vmem:[%s8902_s5 + $0x360] sm:$0xff]  ;;  %v8976_v61 = vld [vmem:[#allocation6_spill] sm:$0xff] }
 0x2f7   : > { %v3210_v23 = vadd.f32 %v3139_v43, %v3099_v42  ;;  %v8159_v46 = vmax.f32 %v3081_v30, %v3083_v17  ;;  %v3086_v6 = vmax.f32 %v3058_v24, %v3063_v14  ;;  %v3209_v5 = vadd.f32 %v3135_v18, %v3097_v11  ;;  %v3365_v43 = vld [vmem:[%s8902_s5 + $0x3e8] sm:$0xff]  ;;  %v3331_v17 = vld [vmem:[%s8902_s5 + $0x2d8] sm:$0xff] }
 0x2f8   : > { %v3067_v44 = vpop.f32.mrf.mxu0  ;;  %v3211_v26 = vadd.f32 %v3143_v60, %v3101_v63  ;;  %v3073_v3 = vadd.f32 %v5286_v48, %v2968_v32  ;;  %v3224_v20 = vmax.f32 %v3208_v33, 0.0  ;;  %v3317_v60 = vld [vmem:[%s8902_s5 + $0x268] sm:$0xff]  ;;  %v3363_v14 = vld [vmem:[%s8902_s5 + $0x3d8] sm:$0xff]  ;;  %v3330_v33 = vld [vmem:[%s8902_s5 + $0x2d0] sm:$0xff] }
 0x2f9   : > { %v3226_v47 = vmax.f32 %v3210_v23, 0.0  ;;  %v3088_v29 = vrot.slane %v3086_v6, 1  ;;  %v3068_v7 = vadd.f32 %v3067_v44, %v2963_v16  ;;  %v3225_v34 = vmax.f32 %v3209_v5, 0.0  ;;  %v8977_v32 = vld [vmem:[#allocation7_spill] sm:$0xff]  ;;  %v3329_v5 = vld [vmem:[%s8902_s5 + $0x2c8] sm:$0xff] }
 0x2fa   : > { %v3227_v13 = vmax.f32 %v3211_v26, 0.0  ;;  %v3104_v0 = vrot.slane %v8159_v46, 2  ;;  %v3108_v37 = vrot.slane %v8159_v46, 6  ;;  %v3315_v16 = vld [vmem:[%s8902_s5 + $0x258] sm:$0xff]  ;;  %v3362_v23 = vld [vmem:[%s8902_s5 + $0x3d0] sm:$0xff]  ;;  %v3361_v26 = vld [vmem:[%s8902_s5 + $0x3c8] sm:$0xff] }
 0x2fb   : > { %v8165_v56 = vmax.f32 %v3086_v6, %v3088_v29  ;;  %v3091_v54 = vmax.f32 %v3068_v7, %v3073_v3  ;;  %3561 = vmatprep.mubr.f32.mxu1 %v3225_v34  ;;  %v3347_v11 = vld [vmem:[%s8902_s5 + $0x358] sm:$0xff]  ;;  %v3314_v6 = vld [vmem:[%s8902_s5 + $0x250] sm:$0xff]  ;;  %v3360_v29 = vld [vmem:[%s8902_s5 + $0x3c0] sm:$0xff] }
 0x2fc   : > { %3631 = vmatprep.mubr.f32.mxu0 %v3227_v13  ;;  %v3213_v57 = vadd.f32 %v3151_v58, %v3104_v0  ;;  %v3215_v21 = vadd.f32 %v3159_v39, %v3108_v37  ;;  %3562 = vmatmul.mubr.f32.vlgmr.msra.gmra.mxu1 %v3224_v20  ;;  %v3346_v44 = vld [vmem:[%s8902_s5 + $0x350] sm:$0xff]  ;;  %v3313_v39 = vld [vmem:[%s8902_s5 + $0x248] sm:$0xff]  ;;  %v3312_v3 = vld [vmem:[%s8902_s5 + $0x240] sm:$0xff] }
 0x2fd   : > { %v3113_v15 = vrot.slane %v8165_v56, 4  ;;  %v3093_v28 = vrot.slane %v3091_v54, 1  ;;  %3632 = vmatmul.mubr.f32.vlgmr.msra.gmra.mxu0 %v3226_v47  ;;  %5017 = vmatpush3.msra.mxu1 %v3319_v4  ;;  %v8199_v36 = vadd.f32 %v3163_v38, %v8165_v56  ;;  %v3345_v38 = vld [vmem:[%s8902_s5 + $0x348] sm:$0xff]  ;;  %v3328_v47 = vld [vmem:[%s8902_s5 + $0x2c0] sm:$0xff]  ;;  %v3327_v34 = vld [vmem:[%s8902_s5 + $0x2b8] sm:$0xff] }
 0x2fe   : > { %5052 = vmatpush3.msra.mxu0 %v3351_v1  ;;  %v3229_v10 = vmax.f32 %v3213_v57, 0.0  ;;  %v3231_v53 = vmax.f32 %v3215_v21, 0.0  ;;  %5018 = vmatprep.subr.mxu1 %v3334_v55  ;;  %v3344_v7 = vld [vmem:[%s8902_s5 + $0x340] sm:$0xff]  ;;  %v3359_v13 = vld [vmem:[%s8902_s5 + $0x3b8] sm:$0xff]  ;;  %v3326_v20 = vld [vmem:[%s8902_s5 + $0x2b0] sm:$0xff] }
 0x2ff   : > { %v3095_v51 = vmax.f32 %v3091_v54, %v3093_v28  ;;  %5053 = vmatprep.subr.mxu0 %v3366_v8  ;;  %v8201_v18 = vadd.f32 %v3171_v50, %v3113_v15  ;;  %5019 = vmatpush3.msra.mxu1 %v3318_v45  ;;  %v3311_v0 = vld [vmem:[%s8902_s5 + $0x238] sm:$0xff]  ;;  %v3358_v54 = vld [vmem:[%s8902_s5 + $0x3b0] sm:$0xff]  ;;  %v3325_v50 = vld [vmem:[%s8902_s5 + $0x2a8] sm:$0xff] }
 0x300   : > { %5054 = vmatpush3.msra.mxu0 %v3350_v35  ;;  %5020 = vmatprep.subr.mxu1 %v3333_v19  ;;  %v3343_v37 = vld [vmem:[%s8902_s5 + $0x338] sm:$0xff]  ;;  %v3310_v4 = vld [vmem:[%s8902_s5 + $0x230] sm:$0xff]  ;;  %v3357_v55 = vld [vmem:[%s8902_s5 + $0x3a8] sm:$0xff] }
 0x301   : > { %v3120_v30 = vrot.slane %v3095_v51, 4  ;;  %3701 = vmatprep.mubr.f32.mxu1 %v3229_v10  ;;  %v3118_v25 = vrot.slane %v3095_v51, 2  ;;  %5055 = vmatprep.subr.mxu0 %v3365_v43  ;;  %v3122_v58 = vrot.slane %v3095_v51, 6  ;;  %v8223_v42 = vadd.f32 %v8976_v61, %v3095_v51  ;;  %v3342_v1 = vld [vmem:[%s8902_s5 + $0x330] sm:$0xff]  ;;  %v3309_v8 = vld [vmem:[%s8902_s5 + $0x228] sm:$0xff]  ;;  %v3324_v21 = vld [vmem:[%s8902_s5 + $0x2a0] sm:$0xff] }
 0x302   : > { %3771 = vmatprep.mubr.f32.mxu0 %v3231_v53  ;;  %5021 = vmatpush3.msra.mxu1 %v3317_v60  ;;  %v3341_v57 = vld [vmem:[%s8902_s5 + $0x328] sm:$0xff]  ;;  %v3356_v15 = vld [vmem:[%s8902_s5 + $0x3a0] sm:$0xff]  ;;  %v3323_v35 = vld [vmem:[%s8902_s5 + $0x298] sm:$0xff]  ;;  %v3106_v10 = vrot.slane %v8159_v46, 4  ;;  %v8978_v51 = vsub.s32 4, %v8016_v62  ;;  %v8979_v60 = vsub.s32 6, %v8016_v62  ;;  %v3175_v61 = vrot.slane %v8975_v31, %v3142_v9 }
 0x303   : > { %5056 = vmatpush3.msra.mxu0 %v3349_v41  ;;  %v8231_v24 = vadd.f32 %v3183_v52, %v3118_v25  ;;  %v8234_v48 = vadd.f32 %v8977_v32, %v3120_v30  ;;  %5022 = vmatprep.subr.mxu1 %v3332_v59  ;;  %v8242_v63 = vadd.f32 %v3191_v2, %v3122_v58  ;;  %v3308_v28 = vld [vmem:[%s8902_s5 + $0x220] sm:$0xff]  ;;  %v3355_v19 = vld [vmem:[%s8902_s5 + $0x398] sm:$0xff]  ;;  %v3322_v2 = vld [vmem:[%s8902_s5 + $0x290] sm:$0xff]  ;;  %v3115_v58 = vrot.slane %v8165_v56, 6 }
 0x304   : > { %5057 = vmatprep.subr.mxu0 %v3364_v22  ;;  %5023 = vmatpush3.msra.mxu1 %v3316_v49  ;;  %v3340_v45 = vld [vmem:[%s8902_s5 + $0x320] sm:$0xff]  ;;  %v3307_v53 = vld [vmem:[%s8902_s5 + $0x218] sm:$0xff]  ;;  %v3147_v43 = vrot.slane %v8138_v27, %v8978_v51  ;;  %v3155_v41 = vrot.slane %v8138_v27, %v8979_v60  ;;  %v3354_v30 = vld [vmem:[%s8902_s5 + $0x390] sm:$0xff]  ;;  %v3111_v22 = vrot.slane %v8165_v56, 2  ;;  %v3167_v25 = vrot.slane %v8975_v31, %v3134_v40 }
 0x305   : > { %5058 = vmatpush3.msra.mxu0 %v3348_v12  ;;  %5024 = vmatprep.subr.mxu1 %v3331_v17  ;;  %v3339_v52 = vld [vmem:[%s8902_s5 + $0x318] sm:$0xff]  ;;  %v3306_v59 = vld [vmem:[%s8902_s5 + $0x210] sm:$0xff]  ;;  %v3321_v49 = vld [vmem:[%s8902_s5 + $0x288] sm:$0xff] }
 0x306   : > { %5059 = vmatprep.subr.mxu0 %v3363_v14  ;;  %5025 = vmatpush3.msra.mxu1 %v3315_v16  ;;  %v3338_v27 = vld [vmem:[%s8902_s5 + $0x310] sm:$0xff]  ;;  %v3353_v12 = vld [vmem:[%s8902_s5 + $0x388] sm:$0xff]  ;;  %v3212_v14 = vadd.f32 %v3147_v43, %v8159_v46  ;;  %v3214_v32 = vadd.f32 %v3155_v41, %v3106_v10  ;;  %v3320_v62 = vld [vmem:[%s8902_s5 + $0x280] sm:$0xff]  ;;  %v3217_v56 = vadd.f32 %v3167_v25, %v3111_v22 }
 0x307   : > { %5060 = vmatpush3.msra.mxu0 %v3347_v11  ;;  %5026 = vmatprep.subr.mxu1 %v3330_v33  ;;  %v3305_v40 = vld [vmem:[%s8902_s5 + $0x208] sm:$0xff]  ;;  %v3352_v9 = vld [vmem:[%s8902_s5 + $0x380] sm:$0xff]  ;;  %v3219_v16 = vadd.f32 %v3175_v61, %v3115_v58  ;;  %v3391_v60 = vld [vmem:[%s8902_s5 + $0x4b8] sm:$0xff] }
 0x308   : > { %5061 = vmatprep.subr.mxu0 %v3362_v23  ;;  %5027 = vmatpush3.msra.mxu1 %v3314_v6  ;;  %v3337_v17 = vld [vmem:[%s8902_s5 + $0x308] sm:$0xff]  ;;  %v3304_v31 = vld [vmem:[%s8902_s5 + $0x200] sm:$0xff]  ;;  %v3228_v11 = vmax.f32 %v3212_v14, 0.0  ;;  %v3230_v33 = vmax.f32 %v3214_v32, 0.0  ;;  %v3399_v23 = vld [vmem:[%s8902_s5 + $0x4f8] sm:$0xff] }
 0x309   : > { %5062 = vmatpush3.msra.mxu0 %v3346_v44  ;;  %5028 = vmatprep.subr.mxu1 %v3329_v5  ;;  %v3336_v46 = vld [vmem:[%s8902_s5 + $0x300] sm:$0xff]  ;;  %v3431_v6 = vld [vmem:[%s8902_s5 + $0x5f8] sm:$0xff]  ;;  %v3233_v5 = vmax.f32 %v3217_v56, 0.0  ;;  %v3409_v10 = vld [vmem:[%s8902_s5 + $0x548] sm:$0xff] }
 0x30a   : > { %5063 = vmatprep.subr.mxu0 %v3361_v26  ;;  %5029 = vmatpush3.msra.mxu1 %v3313_v39  ;;  %v3383_v44 = vld [vmem:[%s8902_s5 + $0x478] sm:$0xff]  ;;  %v3235_v39 = vmax.f32 %v3219_v16, 0.0  ;;  %v3376_v51 = vld [vmem:[%s8902_s5 + $0x440] sm:$0xff]  ;;  %v3374_v22 = vld [vmem:[%s8902_s5 + $0x430] sm:$0xff] }
 0x30b   : > { %5064 = vmatpush3.msra.mxu0 %v3345_v38  ;;  %5030 = vmatprep.subr.mxu1 %v3328_v47  ;;  %v3415_v26 = vld [vmem:[%s8902_s5 + $0x578] sm:$0xff]  ;;  %v3398_v38 = vld [vmem:[%s8902_s5 + $0x4f0] sm:$0xff]  ;;  %v3408_v43 = vld [vmem:[%s8902_s5 + $0x540] sm:$0xff] }
 0x30c   : > { %5065 = vmatprep.subr.mxu0 %v3360_v29  ;;  %5031 = vmatpush3.msra.mxu1 %v3312_v3  ;;  %v3430_v47 = vld [vmem:[%s8902_s5 + $0x5f0] sm:$0xff]  ;;  %v3423_v41 = vld [vmem:[%s8902_s5 + $0x5b8] sm:$0xff]  ;;  %v3373_v58 = vld [vmem:[%s8902_s5 + $0x428] sm:$0xff] }
 0x30d   : > { %5066 = vmatpush3.msra.mxu0 %v3344_v7  ;;  %5032 = vmatprep.subr.mxu1 %v3327_v34  ;;  %v3382_v29 = vld [vmem:[%s8902_s5 + $0x470] sm:$0xff]  ;;  %v3397_v7 = vld [vmem:[%s8902_s5 + $0x4e8] sm:$0xff]  ;;  %v3372_v14 = vld [vmem:[%s8902_s5 + $0x420] sm:$0xff] }
 0x30e   : > { %5067 = vmatprep.subr.mxu0 %v3359_v13  ;;  %5033 = vmatpush3.msra.mxu1 %v3311_v0  ;;  %v3414_v3 = vld [vmem:[%s8902_s5 + $0x570] sm:$0xff]  ;;  %v3429_v34 = vld [vmem:[%s8902_s5 + $0x5e8] sm:$0xff]  ;;  %v3404_v32 = vld [vmem:[%s8902_s5 + $0x520] sm:$0xff] }
 0x30f   : > { %5068 = vmatpush3.msra.mxu0 %v3343_v37  ;;  %5034 = vmatprep.subr.mxu1 %v3326_v20  ;;  %v3381_v13 = vld [vmem:[%s8902_s5 + $0x468] sm:$0xff]  ;;  %v3396_v37 = vld [vmem:[%s8902_s5 + $0x4e0] sm:$0xff]  ;;  %v3406_v25 = vld [vmem:[%s8902_s5 + $0x530] sm:$0xff] }
 0x310   : > { %5069 = vmatprep.subr.mxu0 %v3358_v54  ;;  %5035 = vmatpush3.msra.mxu1 %v3310_v4  ;;  %v3413_v0 = vld [vmem:[%s8902_s5 + $0x568] sm:$0xff]  ;;  %v3428_v20 = vld [vmem:[%s8902_s5 + $0x5e0] sm:$0xff]  ;;  %v3386_v56 = vld [vmem:[%s8902_s5 + $0x490] sm:$0xff] }
 0x311   : > { %5070 = vmatpush3.msra.mxu0 %v3342_v1  ;;  %5036 = vmatprep.subr.mxu1 %v3325_v50  ;;  %v3380_v54 = vld [vmem:[%s8902_s5 + $0x460] sm:$0xff]  ;;  %v3395_v1 = vld [vmem:[%s8902_s5 + $0x4d8] sm:$0xff]  ;;  %v3405_v61 = vld [vmem:[%s8902_s5 + $0x528] sm:$0xff] }
 0x312   : > { %5071 = vmatprep.subr.mxu0 %v3357_v55  ;;  %5037 = vmatpush3.msra.mxu1 %v3309_v8  ;;  %v3412_v4 = vld [vmem:[%s8902_s5 + $0x560] sm:$0xff]  ;;  %v3427_v50 = vld [vmem:[%s8902_s5 + $0x5d8] sm:$0xff]  ;;  %v3418_v16 = vld [vmem:[%s8902_s5 + $0x590] sm:$0xff] }
 0x313   : > { %5072 = vmatpush3.msra.mxu0 %v3341_v57  ;;  %5038 = vmatprep.subr.mxu1 %v3324_v21  ;;  %v3379_v55 = vld [vmem:[%s8902_s5 + $0x458] sm:$0xff]  ;;  %v3394_v57 = vld [vmem:[%s8902_s5 + $0x4d0] sm:$0xff] }
 0x314   : > { %5073 = vmatprep.subr.mxu0 %v3356_v15  ;;  %5039 = vmatpush3.msra.mxu1 %v3308_v28  ;;  %v3411_v8 = vld [vmem:[%s8902_s5 + $0x558] sm:$0xff]  ;;  %v3426_v21 = vld [vmem:[%s8902_s5 + $0x5d0] sm:$0xff] }
 0x315   : > { %5074 = vmatpush3.msra.mxu0 %v3340_v45  ;;  %5040 = vmatprep.subr.mxu1 %v3323_v35  ;;  %v3378_v15 = vld [vmem:[%s8902_s5 + $0x450] sm:$0xff]  ;;  %v3393_v45 = vld [vmem:[%s8902_s5 + $0x4c8] sm:$0xff] }
 0x316   : > { %5075 = vmatprep.subr.mxu0 %v3355_v19  ;;  %5041 = vmatpush3.msra.mxu1 %v3307_v53  ;;  %v3410_v28 = vld [vmem:[%s8902_s5 + $0x550] sm:$0xff]  ;;  %v3425_v35 = vld [vmem:[%s8902_s5 + $0x5c8] sm:$0xff]  ;;  %v3392_v53 = vld [vmem:[%s8902_s5 + $0x4c0] sm:$0xff] }
 0x317   : > { %5076 = vmatpush3.msra.mxu0 %v3339_v52  ;;  %5042 = vmatprep.subr.mxu1 %v3322_v2  ;;  %v3377_v19 = vld [vmem:[%s8902_s5 + $0x448] sm:$0xff]  ;;  %v3424_v52 = vld [vmem:[%s8902_s5 + $0x5c0] sm:$0xff]  ;;  %v3375_v2 = vld [vmem:[%s8902_s5 + $0x438] sm:$0xff] }
 0x318   : > { %5077 = vmatprep.subr.mxu0 %v3354_v30  ;;  %5043 = vmatpush3.msra.mxu1 %v3306_v59  ;;  %v3407_v30 = vld [vmem:[%s8902_s5 + $0x538] sm:$0xff]  ;;  %v3390_v59 = vld [vmem:[%s8902_s5 + $0x4b0] sm:$0xff] }
 0x319   : > { %5078 = vmatpush3.msra.mxu0 %v3338_v27  ;;  %5044 = vmatprep.subr.mxu1 %v3321_v49  ;;  %v3422_v27 = vld [vmem:[%s8902_s5 + $0x5b0] sm:$0xff]  ;;  %v3389_v49 = vld [vmem:[%s8902_s5 + $0x4a8] sm:$0xff] }
 0x31a   : > { %5079 = vmatprep.subr.mxu0 %v3353_v12  ;;  %5045 = vmatpush3.msra.mxu1 %v3305_v40  ;;  %v3421_v12 = vld [vmem:[%s8902_s5 + $0x5a8] sm:$0xff]  ;;  %v3388_v40 = vld [vmem:[%s8902_s5 + $0x4a0] sm:$0xff] }
 0x31b   : > { %5080 = vmatpush3.msra.mxu0 %v3337_v17  ;;  %5046 = vmatprep.subr.mxu1 %v3320_v62  ;;  %v3420_v17 = vld [vmem:[%s8902_s5 + $0x5a0] sm:$0xff]  ;;  %v3387_v62 = vld [vmem:[%s8902_s5 + $0x498] sm:$0xff] }
 0x31c   : > { %5081 = vmatprep.subr.mxu0 %v3352_v9  ;;  %5047 = vmatpush3.msra.mxu1 %v3304_v31  ;;  %v3419_v9 = vld [vmem:[%s8902_s5 + $0x598] sm:$0xff] }
 0x31d   : > { %5082 = vmatpush3.msra.mxu0 %v3336_v46  ;;  %3702 = vmatmul.mubr.f32.vlgmr.msra.gmra.mxu1 %v3228_v11  ;;  %v3371_v31 = vld [vmem:[%s8902_s5 + $0x418] sm:$0xff]  ;;  %v3370_v11 = vld [vmem:[%s8902_s5 + $0x410] sm:$0xff] }
 0x31e   : > { %3772 = vmatmul.mubr.f32.vlgmr.msra.gmra.mxu0 %v3230_v33  ;;  %5086 = vmatprep.subr.mxu1 %v3399_v23  ;;  %v3403_v46 = vld [vmem:[%s8902_s5 + $0x518] sm:$0xff]  ;;  %v3402_v33 = vld [vmem:[%s8902_s5 + $0x510] sm:$0xff]  ;;  %v3385_v23 = vld [vmem:[%s8902_s5 + $0x488] sm:$0xff] }
 0x31f   : > { %5121 = vmatprep.subr.mxu0 %v3431_v6  ;;  %5087 = vmatpush3.msra.mxu1 %v3383_v44  ;;  %v3417_v6 = vld [vmem:[%s8902_s5 + $0x588] sm:$0xff] }
 0x320   : > { %3841 = vmatprep.mubr.f32.mxu1 %v3233_v5  ;;  %5122 = vmatpush3.msra.mxu0 %v3415_v26  ;;  %v3369_v44 = vld [vmem:[%s8902_s5 + $0x408] sm:$0xff]  ;;  %v3384_v26 = vld [vmem:[%s8902_s5 + $0x480] sm:$0xff] }
 0x321   : > { %3911 = vmatprep.mubr.f32.mxu0 %v3235_v39  ;;  %5088 = vmatprep.subr.mxu1 %v3398_v38  ;;  %v3401_v5 = vld [vmem:[%s8902_s5 + $0x508] sm:$0xff]  ;;  %v3416_v39 = vld [vmem:[%s8902_s5 + $0x580] sm:$0xff] }
 0x322   : > { %5123 = vmatprep.subr.mxu0 %v3430_v47  ;;  %5089 = vmatpush3.msra.mxu1 %v3382_v29  ;;  %v3368_v38 = vld [vmem:[%s8902_s5 + $0x400] sm:$0xff]  ;;  %v3232_v29 = vmax.f32 %v8199_v36, 0.0  ;;  %v3237_v36 = vmax.f32 %v8231_v24, 0.0  ;;  %v3446_v24 = vld [vmem:[%s8902_s5 + $0x670] sm:$0xff] }
 0x323   : > { %5124 = vmatpush3.msra.mxu0 %v3414_v3  ;;  %5090 = vmatprep.subr.mxu1 %v3397_v7  ;;  %v3400_v47 = vld [vmem:[%s8902_s5 + $0x500] sm:$0xff]  ;;  %v3234_v3 = vmax.f32 %v8201_v18, 0.0  ;;  %v3463_v7 = vld [vmem:[%s8902_s5 + $0x6f8] sm:$0xff] }
 0x324   : > { %5125 = vmatprep.subr.mxu0 %v3429_v34  ;;  %5091 = vmatpush3.msra.mxu1 %v3381_v13  ;;  %v3495_v34 = vld [vmem:[%s8902_s5 + $0x7f8] sm:$0xff] }
 0x325   : > { %5126 = vmatpush3.msra.mxu0 %v3413_v0  ;;  %5092 = vmatprep.subr.mxu1 %v3396_v37  ;;  %v3447_v13 = vld [vmem:[%s8902_s5 + $0x678] sm:$0xff]  ;;  %v3239_v0 = vmax.f32 %v8242_v63, 0.0  ;;  %v3462_v37 = vld [vmem:[%s8902_s5 + $0x6f0] sm:$0xff]  ;;  %v3461_v63 = vld [vmem:[%s8902_s5 + $0x6e8] sm:$0xff] }
 0x326   : > { %5127 = vmatprep.subr.mxu0 %v3428_v20  ;;  %5093 = vmatpush3.msra.mxu1 %v3380_v54  ;;  %v3479_v18 = vld [vmem:[%s8902_s5 + $0x778] sm:$0xff]  ;;  %v3494_v20 = vld [vmem:[%s8902_s5 + $0x7f0] sm:$0xff] }
 0x327   : > { %5128 = vmatpush3.msra.mxu0 %v3412_v4  ;;  %5094 = vmatprep.subr.mxu1 %v3395_v1  ;;  %v3478_v54 = vld [vmem:[%s8902_s5 + $0x770] sm:$0xff]  ;;  %v3493_v4 = vld [vmem:[%s8902_s5 + $0x7e8] sm:$0xff] }
 0x328   : > { %5129 = vmatprep.subr.mxu0 %v3427_v50  ;;  %5095 = vmatpush3.msra.mxu1 %v3379_v55  ;;  %v3445_v1 = vld [vmem:[%s8902_s5 + $0x668] sm:$0xff]  ;;  %v3460_v55 = vld [vmem:[%s8902_s5 + $0x6e0] sm:$0xff] }
 0x329   : > { %5130 = vmatpush3.msra.mxu0 %v3411_v8  ;;  %5096 = vmatprep.subr.mxu1 %v3394_v57  ;;  %v3477_v50 = vld [vmem:[%s8902_s5 + $0x768] sm:$0xff]  ;;  %v3492_v8 = vld [vmem:[%s8902_s5 + $0x7e0] sm:$0xff] }
 0x32a   : > { %5131 = vmatprep.subr.mxu0 %v3426_v21  ;;  %5097 = vmatpush3.msra.mxu1 %v3378_v15  ;;  %v3444_v57 = vld [vmem:[%s8902_s5 + $0x660] sm:$0xff]  ;;  %v3459_v15 = vld [vmem:[%s8902_s5 + $0x6d8] sm:$0xff] }
 0x32b   : > { %5132 = vmatpush3.msra.mxu0 %v3410_v28  ;;  %5098 = vmatprep.subr.mxu1 %v3393_v45  ;;  %v3476_v21 = vld [vmem:[%s8902_s5 + $0x760] sm:$0xff]  ;;  %v3491_v28 = vld [vmem:[%s8902_s5 + $0x7d8] sm:$0xff] }
 0x32c   : > { %5133 = vmatprep.subr.mxu0 %v3425_v35  ;;  %5099 = vmatpush3.msra.mxu1 %v3377_v19  ;;  %v3443_v45 = vld [vmem:[%s8902_s5 + $0x658] sm:$0xff]  ;;  %v3458_v19 = vld [vmem:[%s8902_s5 + $0x6d0] sm:$0xff] }
 0x32d   : > { %5134 = vmatpush3.msra.mxu0 %v3409_v10  ;;  %5100 = vmatprep.subr.mxu1 %v3392_v53  ;;  %v3475_v35 = vld [vmem:[%s8902_s5 + $0x758] sm:$0xff]  ;;  %v3490_v10 = vld [vmem:[%s8902_s5 + $0x7d0] sm:$0xff] }
 0x32e   : > { %5135 = vmatprep.subr.mxu0 %v3424_v52  ;;  %5101 = vmatpush3.msra.mxu1 %v3376_v51  ;;  %v3442_v53 = vld [vmem:[%s8902_s5 + $0x650] sm:$0xff]  ;;  %v3457_v51 = vld [vmem:[%s8902_s5 + $0x6c8] sm:$0xff] }
 0x32f   : > { %5136 = vmatpush3.msra.mxu0 %v3408_v43  ;;  %5102 = vmatprep.subr.mxu1 %v3391_v60  ;;  %v3474_v52 = vld [vmem:[%s8902_s5 + $0x750] sm:$0xff]  ;;  %v3489_v43 = vld [vmem:[%s8902_s5 + $0x7c8] sm:$0xff] }
 0x330   : > { %5137 = vmatprep.subr.mxu0 %v3423_v41  ;;  %5103 = vmatpush3.msra.mxu1 %v3375_v2  ;;  %v3441_v60 = vld [vmem:[%s8902_s5 + $0x648] sm:$0xff]  ;;  %v3456_v2 = vld [vmem:[%s8902_s5 + $0x6c0] sm:$0xff] }
 0x331   : > { %5138 = vmatpush3.msra.mxu0 %v3407_v30  ;;  %5104 = vmatprep.subr.mxu1 %v3390_v59  ;;  %v3473_v41 = vld [vmem:[%s8902_s5 + $0x748] sm:$0xff]  ;;  %v3488_v30 = vld [vmem:[%s8902_s5 + $0x7c0] sm:$0xff] }
 0x332   : > { %5139 = vmatprep.subr.mxu0 %v3422_v27  ;;  %5105 = vmatpush3.msra.mxu1 %v3374_v22  ;;  %v3440_v59 = vld [vmem:[%s8902_s5 + $0x640] sm:$0xff]  ;;  %v3455_v22 = vld [vmem:[%s8902_s5 + $0x6b8] sm:$0xff] }
 0x333   : > { %5140 = vmatpush3.msra.mxu0 %v3406_v25  ;;  %5106 = vmatprep.subr.mxu1 %v3389_v49  ;;  %v3472_v27 = vld [vmem:[%s8902_s5 + $0x740] sm:$0xff]  ;;  %v3487_v25 = vld [vmem:[%s8902_s5 + $0x7b8] sm:$0xff] }
 0x334   : > { %5141 = vmatprep.subr.mxu0 %v3421_v12  ;;  %5107 = vmatpush3.msra.mxu1 %v3373_v58  ;;  %v3439_v49 = vld [vmem:[%s8902_s5 + $0x638] sm:$0xff]  ;;  %v3454_v58 = vld [vmem:[%s8902_s5 + $0x6b0] sm:$0xff] }
 0x335   : > { %5142 = vmatpush3.msra.mxu0 %v3405_v61  ;;  %5108 = vmatprep.subr.mxu1 %v3388_v40  ;;  %v3471_v12 = vld [vmem:[%s8902_s5 + $0x738] sm:$0xff]  ;;  %v3486_v61 = vld [vmem:[%s8902_s5 + $0x7b0] sm:$0xff] }
 0x336   : > { %5143 = vmatprep.subr.mxu0 %v3420_v17  ;;  %5109 = vmatpush3.msra.mxu1 %v3372_v14  ;;  %v3438_v40 = vld [vmem:[%s8902_s5 + $0x630] sm:$0xff]  ;;  %v3453_v14 = vld [vmem:[%s8902_s5 + $0x6a8] sm:$0xff] }
 0x337   : > { %5144 = vmatpush3.msra.mxu0 %v3404_v32  ;;  %5110 = vmatprep.subr.mxu1 %v3387_v62  ;;  %v3470_v17 = vld [vmem:[%s8902_s5 + $0x730] sm:$0xff]  ;;  %v3485_v32 = vld [vmem:[%s8902_s5 + $0x7a8] sm:$0xff] }
 0x338   : > { %5145 = vmatprep.subr.mxu0 %v3419_v9  ;;  %5111 = vmatpush3.msra.mxu1 %v3371_v31  ;;  %v3437_v62 = vld [vmem:[%s8902_s5 + $0x628] sm:$0xff]  ;;  %v3452_v31 = vld [vmem:[%s8902_s5 + $0x6a0] sm:$0xff] }
 0x339   : > { %5146 = vmatpush3.msra.mxu0 %v3403_v46  ;;  %5112 = vmatprep.subr.mxu1 %v3386_v56  ;;  %v3469_v9 = vld [vmem:[%s8902_s5 + $0x728] sm:$0xff]  ;;  %v3484_v46 = vld [vmem:[%s8902_s5 + $0x7a0] sm:$0xff] }
 0x33a   : > { %5147 = vmatprep.subr.mxu0 %v3418_v16  ;;  %5113 = vmatpush3.msra.mxu1 %v3370_v11  ;;  %v3436_v56 = vld [vmem:[%s8902_s5 + $0x620] sm:$0xff]  ;;  %v3451_v11 = vld [vmem:[%s8902_s5 + $0x698] sm:$0xff] }
 0x33b   : > { %5148 = vmatpush3.msra.mxu0 %v3402_v33  ;;  %5114 = vmatprep.subr.mxu1 %v3385_v23  ;;  %v3468_v16 = vld [vmem:[%s8902_s5 + $0x720] sm:$0xff]  ;;  %v3483_v33 = vld [vmem:[%s8902_s5 + $0x798] sm:$0xff] }
 0x33c   : > { %5149 = vmatprep.subr.mxu0 %v3417_v6  ;;  %5115 = vmatpush3.msra.mxu1 %v3369_v44  ;;  %v3435_v23 = vld [vmem:[%s8902_s5 + $0x618] sm:$0xff]  ;;  %v3450_v44 = vld [vmem:[%s8902_s5 + $0x690] sm:$0xff] }
 0x33d   : > { %5150 = vmatpush3.msra.mxu0 %v3401_v5  ;;  %5116 = vmatprep.subr.mxu1 %v3384_v26  ;;  %v3467_v6 = vld [vmem:[%s8902_s5 + $0x718] sm:$0xff]  ;;  %v3482_v5 = vld [vmem:[%s8902_s5 + $0x790] sm:$0xff] }
 0x33e   : > { %5151 = vmatprep.subr.mxu0 %v3416_v39  ;;  %5117 = vmatpush3.msra.mxu1 %v3368_v38  ;;  %v3434_v26 = vld [vmem:[%s8902_s5 + $0x610] sm:$0xff]  ;;  %v3449_v38 = vld [vmem:[%s8902_s5 + $0x688] sm:$0xff] }
 0x33f   : > { %5152 = vmatpush3.msra.mxu0 %v3400_v47  ;;  %3842 = vmatmul.mubr.f32.vlgmr.msra.gmra.mxu1 %v3232_v29  ;;  %v3466_v39 = vld [vmem:[%s8902_s5 + $0x710] sm:$0xff]  ;;  %v3481_v47 = vld [vmem:[%s8902_s5 + $0x788] sm:$0xff] }
 0x340   : > { %3912 = vmatmul.mubr.f32.vlgmr.msra.gmra.mxu0 %v3234_v3  ;;  %5156 = vmatprep.subr.mxu1 %v3463_v7  ;;  %v3433_v29 = vld [vmem:[%s8902_s5 + $0x608] sm:$0xff]  ;;  %v3448_v7 = vld [vmem:[%s8902_s5 + $0x680] sm:$0xff] }
 0x341   : > { %5191 = vmatprep.subr.mxu0 %v3495_v34  ;;  %5157 = vmatpush3.msra.mxu1 %v3447_v13  ;;  %v3465_v3 = vld [vmem:[%s8902_s5 + $0x708] sm:$0xff]  ;;  %v3480_v34 = vld [vmem:[%s8902_s5 + $0x780] sm:$0xff] }
 0x342   : > { %3981 = vmatprep.mubr.f32.mxu1 %v3237_v36  ;;  %5192 = vmatpush3.msra.mxu0 %v3479_v18  ;;  %v3432_v13 = vld [vmem:[%s8902_s5 + $0x600] sm:$0xff]  ;;  %v3236_v18 = vmax.f32 %v8223_v42, 0.0  ;;  %v4071_v42 = vld [vmem:[%s8904_s7 + $0x68] sm:$0xff] }
 0x343   : > { %4051 = vmatprep.mubr.f32.mxu0 %v3239_v0  ;;  %5158 = vmatprep.subr.mxu1 %v3462_v37  ;;  %v3464_v36 = vld [vmem:[%s8902_s5 + $0x700] sm:$0xff]  ;;  %v3238_v0 = vmax.f32 %v8234_v48, 0.0  ;;  %v8980_v37 = vmov 0.0  }
 0x344   : > { %5193 = vmatprep.subr.mxu0 %v3494_v20  ;;  %5159 = vmatpush3.msra.mxu1 %v3446_v24  ;;  %v4073_v20 = vld [vmem:[%s8904_s7 + $0x78] sm:$0xff]  ;;  %v4072_v24 = vld [vmem:[%s8904_s7 + $0x70] sm:$0xff]  ;;  %v4070_v48 = vld [vmem:[%s8904_s7 + $0x60] sm:$0xff] }
 0x345   : > { %5194 = vmatpush3.msra.mxu0 %v3478_v54  ;;  %5160 = vmatprep.subr.mxu1 %v3461_v63  ;;  %v4069_v54 = vld [vmem:[%s8904_s7 + $0x58] sm:$0xff]  ;;  %v4068_v63 = vld [vmem:[%s8904_s7 + $0x50] sm:$0xff] }
 0x346   : > { %5195 = vmatprep.subr.mxu0 %v3493_v4  ;;  %5161 = vmatpush3.msra.mxu1 %v3445_v1  ;;  %v4067_v4 = vld [vmem:[%s8904_s7 + $0x48] sm:$0xff]  ;;  %v4066_v1 = vld [vmem:[%s8904_s7 + $0x40] sm:$0xff] }
 0x347   : > { %5196 = vmatpush3.msra.mxu0 %v3477_v50  ;;  %5162 = vmatprep.subr.mxu1 %v3460_v55  ;;  %v4065_v50 = vld [vmem:[%s8904_s7 + $0x38] sm:$0xff]  ;;  %v4064_v55 = vld [vmem:[%s8904_s7 + $0x30] sm:$0xff] }
 0x348   : > { %5197 = vmatprep.subr.mxu0 %v3492_v8  ;;  %5163 = vmatpush3.msra.mxu1 %v3444_v57  ;;  %v4063_v8 = vld [vmem:[%s8904_s7 + $0x28] sm:$0xff]  ;;  %v4062_v57 = vld [vmem:[%s8904_s7 + $0x20] sm:$0xff] }
 0x349   : > { %5198 = vmatpush3.msra.mxu0 %v3476_v21  ;;  %5164 = vmatprep.subr.mxu1 %v3459_v15  ;;  %v4061_v21 = vld [vmem:[%s8904_s7 + $0x18] sm:$0xff]  ;;  %v4060_v15 = vld [vmem:[%s8904_s7 + $0x10] sm:$0xff] }
 0x34a   : > { %5199 = vmatprep.subr.mxu0 %v3491_v28  ;;  %5165 = vmatpush3.msra.mxu1 %v3443_v45  ;;  %v4059_v28 = vld [vmem:[%s8904_s7 + $0x8] sm:$0xff]  ;;  %v4058_v45 = vld [vmem:[%s8904_s7] sm:$0xff] }
 0x34b   : > { %5200 = vmatpush3.msra.mxu0 %v3475_v35  ;;  %5166 = vmatprep.subr.mxu1 %v3458_v19 }
 0x34c   : > { %5201 = vmatprep.subr.mxu0 %v3490_v10  ;;  %5167 = vmatpush3.msra.mxu1 %v3442_v53 }
 0x34d   : > { %5202 = vmatpush3.msra.mxu0 %v3474_v52  ;;  %5168 = vmatprep.subr.mxu1 %v3457_v51  ;;  %v3496_v51 = vld [vmem:[%s8903_s6] sm:$0x1] }
 0x34e   : > { %5203 = vmatprep.subr.mxu0 %v3489_v43  ;;  %5169 = vmatpush3.msra.mxu1 %v3441_v60 }
 0x34f   : > { %5204 = vmatpush3.msra.mxu0 %v3473_v41  ;;  %5170 = vmatprep.subr.mxu1 %v3456_v2 }
 0x350   : > { %5205 = vmatprep.subr.mxu0 %v3488_v30  ;;  %5171 = vmatpush3.msra.mxu1 %v3440_v59 }
 0x351   : > { %5206 = vmatpush3.msra.mxu0 %v3472_v27  ;;  %5172 = vmatprep.subr.mxu1 %v3455_v22 }
 0x352   : > { %5207 = vmatprep.subr.mxu0 %v3487_v25  ;;  %5173 = vmatpush3.msra.mxu1 %v3439_v49 }
 0x353   : > { %5208 = vmatpush3.msra.mxu0 %v3471_v12  ;;  %5174 = vmatprep.subr.mxu1 %v3454_v58 }
 0x354   : > { %5209 = vmatprep.subr.mxu0 %v3486_v61  ;;  %5175 = vmatpush3.msra.mxu1 %v3438_v40 }
 0x355   : > { %5210 = vmatpush3.msra.mxu0 %v3470_v17  ;;  %5176 = vmatprep.subr.mxu1 %v3453_v14 }
 0x356   : > { %5211 = vmatprep.subr.mxu0 %v3485_v32  ;;  %5177 = vmatpush3.msra.mxu1 %v3437_v62 }
 0x357   : > { %5212 = vmatpush3.msra.mxu0 %v3469_v9  ;;  %5178 = vmatprep.subr.mxu1 %v3452_v31 }
 0x358   : > { %5213 = vmatprep.subr.mxu0 %v3484_v46  ;;  %5179 = vmatpush3.msra.mxu1 %v3436_v56 }
 0x359   : > { %5214 = vmatpush3.msra.mxu0 %v3468_v16  ;;  %5180 = vmatprep.subr.mxu1 %v3451_v11 }
 0x35a   : > { %5215 = vmatprep.subr.mxu0 %v3483_v33  ;;  %5181 = vmatpush3.msra.mxu1 %v3435_v23 }
 0x35b   : > { %5216 = vmatpush3.msra.mxu0 %v3467_v6  ;;  %5182 = vmatprep.subr.mxu1 %v3450_v44 }
 0x35c   : > { %5217 = vmatprep.subr.mxu0 %v3482_v5  ;;  %5183 = vmatpush3.msra.mxu1 %v3434_v26  ;;  %v8981_v5 = vlaneseq }
 0x35d   : > { %5218 = vmatpush3.msra.mxu0 %v3466_v39  ;;  %5184 = vmatprep.subr.mxu1 %v3449_v38  ;;  %v4074_v39 = vld [vmem:[%s8905_s8] sm:$0x1] }
 0x35e   : > { %5219 = vmatprep.subr.mxu0 %v3481_v47  ;;  %5185 = vmatpush3.msra.mxu1 %v3433_v29  ;;  %v4146_v26 = vand.u32 127, %v8981_v5 }
 0x35f   : > { %5220 = vmatpush3.msra.mxu0 %v3465_v3  ;;  %5186 = vmatprep.subr.mxu1 %v3448_v7 }
 0x360   : > { %5221 = vmatprep.subr.mxu0 %v3480_v34  ;;  %5187 = vmatpush3.msra.mxu1 %v3432_v13  ;;  %vm4147_vm5 = vcmp.lt.s32.totalorder %v4146_v26, 10 }
 0x361   : > { %5222 = vmatpush3.msra.mxu0 %v3464_v36  ;;  %3982 = vmatmul.mubr.f32.vlgmr.msra.gmra.mxu1 %v3236_v18 }
 0x362   : > { %4052 = vmatmul.mubr.f32.vlgmr.msra.gmra.mxu0 %v3238_v0  ;;  %5287 = vmatprep.subr.mxu1 %v8980_v37 }
 0x363   : > { %5288 = vmatpush3.msra.mxu1 %v4073_v20  ;;  %5319 = vmatprep.mubr.msk.f32.mxu1 %vm5433_vm4, %v8980_v37 }
 0x364   : > { %5289 = vmatprep.subr.mxu1 %v8980_v37 }
 0x365   : > { %5290 = vmatpush3.msra.mxu1 %v4072_v24 }
 0x366   : > { %5291 = vmatprep.subr.mxu1 %v8980_v37 }
 0x367   : > { %5292 = vmatpush3.msra.mxu1 %v4071_v42 }
 0x368   : > { %5293 = vmatprep.subr.mxu1 %v8980_v37 }
 0x369   : > { %5294 = vmatpush3.msra.mxu1 %v4070_v48 }
 0x36a   : > { %5295 = vmatprep.subr.mxu1 %v8980_v37 }
 0x36b   : > { %5296 = vmatpush3.msra.mxu1 %v4069_v54 }
 0x36c   : > { %5297 = vmatprep.subr.mxu1 %v8980_v37 }
 0x36d   : > { %5298 = vmatpush3.msra.mxu1 %v4068_v63 }
 0x36e   : > { %5299 = vmatprep.subr.mxu1 %v8980_v37 }
 0x36f   : > { %5300 = vmatpush3.msra.mxu1 %v4067_v4 }
 0x370   : > { %5301 = vmatprep.subr.mxu1 %v8980_v37 }
 0x371   : > { %5302 = vmatpush3.msra.mxu1 %v4066_v1 }
 0x372   : > { %5303 = vmatprep.subr.mxu1 %v8980_v37 }
 0x373   : > { %5304 = vmatpush3.msra.mxu1 %v4065_v50 }
 0x374   : > { %5305 = vmatprep.subr.mxu1 %v8980_v37 }
 0x375   : > { %5306 = vmatpush3.msra.mxu1 %v4064_v55 }
 0x376   : > { %5307 = vmatprep.subr.mxu1 %v8980_v37 }
 0x377   : > { %5308 = vmatpush3.msra.mxu1 %v4063_v8 }
 0x378   : > { %5309 = vmatprep.subr.mxu1 %v8980_v37 }
 0x379   : > { %5310 = vmatpush3.msra.mxu1 %v4062_v57 }
 0x37a   : > { %5311 = vmatprep.subr.mxu1 %v8980_v37 }
 0x37b   : > { %5312 = vmatpush3.msra.mxu1 %v4061_v21 }
 0x37c   : > { %5313 = vmatprep.subr.mxu1 %v8980_v37 }
 0x37d   : > { %5314 = vmatpush3.msra.mxu1 %v4060_v15 }
 0x37e   : > { %5315 = vmatprep.subr.mxu1 %v8980_v37 }
 0x37f   : > { %5316 = vmatpush3.msra.mxu1 %v4059_v28 }
 0x380   : > { %5317 = vmatprep.subr.mxu1 %v8980_v37 }
 0x381   : > { %5318 = vmatpush3.msra.mxu1 %v4058_v45 }
 0x3bc   : > { %v4978_v35 = vpop.f32.mrf.mxu1 }
 0x3bd   : > { %v5013_v10 = vpop.f32.mrf.mxu0 }
 0x3be   : > { %v4979_v19 = vpop.f32.mrf.mxu1 }
 0x3bf   : > { %v4980_v52 = vadd.f32 %v4979_v19, %v4978_v35  ;;  %v5014_v43 = vpop.f32.mrf.mxu0 }
 0x3c0   : > { %v5015_v59 = vadd.f32 %v5014_v43, %v5013_v10 }
 0x3c1   : > { %v3564_v41 = vadd.f32 %v4980_v52, %v3496_v51 }
 0x3c3   : > { %v3634_v22 = vadd.f32 %v5015_v59, %v3564_v41 }
 0x3dd   : > { %v5048_v53 = vpop.f32.mrf.mxu1 }
 0x3de   : > { %v5083_v2 = vpop.f32.mrf.mxu0 }
 0x3df   : > { %v5049_v60 = vpop.f32.mrf.mxu1 }
 0x3e0   : > { %v5050_v27 = vadd.f32 %v5049_v60, %v5048_v53  ;;  %v5084_v25 = vpop.f32.mrf.mxu0 }
 0x3e1   : > { %v5085_v61 = vadd.f32 %v5084_v25, %v5083_v2 }
 0x3e2   : > { %v3704_v12 = vadd.f32 %v5050_v27, %v3634_v22 }
 0x3e4   : > { %v3774_v17 = vadd.f32 %v5085_v61, %v3704_v12 }
 0x3ff   : > { %v5118_v30 = vpop.f32.mrf.mxu1 }
 0x400   : > { %v5153_v58 = vpop.f32.mrf.mxu0 }
 0x401   : > { %v5119_v49 = vpop.f32.mrf.mxu1 }
 0x402   : > { %v5120_v40 = vadd.f32 %v5119_v49, %v5118_v30  ;;  %v5154_v14 = vpop.f32.mrf.mxu0 }
 0x403   : > { %v5155_v31 = vadd.f32 %v5154_v14, %v5153_v58 }
 0x404   : > { %v3844_v32 = vadd.f32 %v5120_v40, %v3774_v17 }
 0x406   : > { %v3914_v16 = vadd.f32 %v5155_v31, %v3844_v32 }
 0x421   : > { %v5188_v62 = vpop.f32.mrf.mxu1 }
 0x422   : > { %v5223_v9 = vpop.f32.mrf.mxu0 }
 0x423   : > { %v5189_v46 = vpop.f32.mrf.mxu1 }
 0x424   : > { %v5224_v56 = vpop.f32.mrf.mxu0  ;;  %v5190_v11 = vadd.f32 %v5189_v46, %v5188_v62 }
 0x425   : > { %v5225_v23 = vadd.f32 %v5224_v56, %v5223_v9 }
 0x426   : > { %v3984_v33 = vadd.f32 %v5190_v11, %v3914_v16 }
 0x428   : > { %v4054_v6 = vadd.f32 %v5225_v23, %v3984_v33 }
 0x42a   : > { %v4057_v44 = vmax.f32 %v4054_v6, 0.0 }
 0x42c   : > { %5320 = vmatmul.mubr.f32.vlgmr.msra.gmra.mxu1 %v4057_v44 }
 0x4ec   : > { %v4141_v38 = vpop.f32.mrf.mxu1 }
 0x4ed   : > { %v4142_v47 = vadd.f32 %v4141_v38, %v4074_v39 }
 0x4ee   : > { %v5321_v29 = vpop.f32.mrf.mxu1 }
 0x4ef   : > { %v4148_v3 = vsel %vm4147_vm5, %v4142_v47, -1e+30 }
 0x4f0   : > { %v4150_v7 = vsel %vm4149_vm6, %v4148_v3, -inf }
 0x4f1   : > { %4151 = vmax.xlane.f32.xlu0 %v4150_v7 }
 0x57a   : > { %v4152_v34 = vpop.xlane.xlu0 %4151 }
 0x57b   : > { %v4153_v13 = vsub.f32 %v4148_v3, %v4152_v34 }
 0x57d   : > { %v4154_v36 = vmul.f32 1.442695, %v4153_v13 }
 0x57f   : > { %5364 = vpow2.f32 %v4154_v36 }
 0x58c   : > { %v5365_v18 = vpop.eup %5364 }
 0x58d   : > { %v4156_v0 = vsel %vm4147_vm5, %v5365_v18, 0.0 }
 0x58e   : > { %v4157_v37 = vsel %vm4149_vm6, %v4156_v0, 0.0 }
 0x58f   : > { %4158 = vadd.xlane.f32.xlu0 %v4157_v37 }
 0x618   : > { %v4159_v20 = vpop.xlane.xlu0 %4158 }
 0x619   : > { %5366 = vlog2.f32 %v4159_v20 }
 0x626   : > { %v5367_v24 = vpop.eup %5366 }
 0x627   : > { %v4161_v42 = vmul.f32 0.6931472, %v5367_v24 }
 0x629   : > { %v4162_v48 = vsub.f32 %v4153_v13, %v4161_v42 }
 0x62b   : > { %v4163_v54 = vsel %vm4147_vm5, %v4162_v48, 0.0 }
 0x62c   : > { %4164 = vst [vmem:[%s324_s26] sm:$0x1] %v4163_v54 }
 0x62d   : > { %5383 = shalt.err (!%p5380_p3)
}
 0x62e   : > { %s5384_s23 = scalar_lea.hbm %s8861_s16, 16  ;;  %s5388_s26 = scalar_lea.hbm %s8906_s9, 32 }
 0x62f   : > { %p5385_p4 = scmp.ne.s32.totalorder %s8861_s16, %s5384_s23  ;;  %p5389_p9 = scmp.lt.s32.totalorder %s8861_s16, %s8906_s9 }
 0x630   : > { %p5390_p10 = scmp.lt.s32.totalorder %s5388_s26, %s5384_s23 }
 0x631   : > { %p5386_p7 = pnand %p5385_p4, %p5523_p5 }
 0x632   : > { %p5391_p11 = por %p5390_p10, %p5389_p9 }
 0x633   : > { %p5387_p8 = pneg %p5386_p7 }
 0x635   : > { %p5392_p12 = pnand %p5391_p11, %p5387_p8 }
 0x637   : > { %5395 = shalt.err (!%p5392_p12)
}
 0x638   : > { %5323 = dma.vmem_to_hbm [thread:$0]  (%p5523_p5), %s4179_s27, 16, %s8861_s16, %s4166_s29  }
 0x639 PF: > { %p5329_p13 = scmp.ge.s32.totalorder %s5430_s12, 2  ;;  %s4190_s21 = sand.u32 1, %s5418_s30  }
 0x63a   : > { %s4191_s22 = scalar_lea.sflag [#allocation3], %s4190_s21 }
 0x63b   : > { %p5326_p0 = pnand %p5329_p13, %p5527_p6 }
 0x63d   : > { %p5327_p1 = pneg %p5326_p0 }
 0x63f   : > { %5413 = dma.done.wait (%p5327_p1), %s4191_s22, 16  }
 0x640   : > { %5415 = vsyncadd (%p5327_p1), %s4191_s22, 4294967280  ;;  %p19_p2 = scmp.ge.s32.totalorder %s5510_s15, 4   ;;  %s8982_s30 = smov %s5422_s10 }
 0x641   : > { %s8983_s10 = smov %s5426_s11  ;;  %s8984_s11 = smov %s5521_s18 }
 0x642   : > { %s8985_s12 = smov %s5510_s15  ;;  %21 = sbr.rel (!%p19_p2) target bundleno = 3 (0x3), region = 91 }
 0x647   :  { %4195 = vsyncpa [#allocation3], 1 }
 0x648   :  { %4197 = vsyncpa [#allocation3 + $0x1], 1 }

</bundles_post_ra>
